<compile_context>
chip_gen: v7x
topology: tpu7x:2x2x1
jax: 0.10.0
libtpu: 0.0.40
codegen_flags: <defaults>
</compile_context>

<pallas_src>
from functools import partial

import jax
import jax.numpy as jnp
import numpy as np
from jax.experimental import pallas as pl
from jax.experimental.pallas import tpu as pltpu

EPS = 1e-5          # nn.BatchNorm2d default
LANE = 128          # TPU lane width


def _round_up(n, m):
    return ((n + m - 1) // m) * m


def _vmem_limit_bytes():
    """Generation-aware scoped-VMEM limit: half of physical, capped at 64 MiB."""
    try:
        cap = pltpu.get_tpu_info().vmem_capacity_bytes
    except Exception:
        cap = 64 * 1024 * 1024            # conservative fallback (v7x physical size)
    return int(min(cap // 2, 64 * 1024 * 1024))


# ---------------------------------------------------------------------------
# Fused DilConv kernel:
#   affine(+ReLU) -> depthwise KxK (stride in-kernel) -> 1x1 MXU matmul
#   -> resident per-channel sum / sum-of-squares (one-pass BN statistics).
# Grid = (core, image); the (8, Cp_out) stat blocks are resident across the
# "arbitrary" image axis and private to each "parallel" core slice.
# ---------------------------------------------------------------------------
def _make_dilconv_kernel(K, H, W, Ho, Wo, pad, dilation, stride, masked):
    def kernel(x_ref, scale_ref, shift_ref, dww_ref, pww_ref,
               y_ref, ssum_ref, ssq_ref):
        @pl.when(pl.program_id(1) == 0)
        def _():
            ssum_ref[...] = jnp.zeros_like(ssum_ref)
            ssq_ref[...] = jnp.zeros_like(ssq_ref)

        cp_in = x_ref.shape[-1]
        hp, wp = H + 2 * pad, W + 2 * pad
        scale = scale_ref[...].reshape(1, 1, cp_in)      # previous block's folded BN
        shift = shift_ref[...].reshape(1, 1, cp_in)
        dww = dww_ref[...].astype(jnp.float32)           # (K*K, cp_in)

        acc = jnp.zeros((Ho, Wo, cp_in), jnp.float32)

        if stride == 1:
            # Folded BN affine + ReLU on the whole padded image (VPU).
            a = x_ref[...].astype(jnp.float32) * scale + shift
            a = jnp.maximum(a, 0.0)
            if masked and pad > 0:
                # Spatial zero-padding must stay zero *after* the affine
                # (shift != 0 there); mask the border back to zero.
                ri = jax.lax.broadcasted_iota(jnp.int32, (hp, wp, cp_in), 0)
                ci = jax.lax.broadcasted_iota(jnp.int32, (hp, wp, cp_in), 1)
                inside = ((ri >= pad) & (ri < pad + H)
                          & (ci >= pad) & (ci < pad + W))
                a = jnp.where(inside, a, 0.0)
            for kh in range(K):                           # unrolled depthwise taps
                oh = kh * dilation
                for kw in range(K):
                    ow = kw * dilation
                    tap = a[oh:oh + Ho, ow:ow + Wo, :]
                    acc = acc + tap * dww[kh * K + kw, :].reshape(1, 1, cp_in)
        else:
            # Strided taps read straight from the ref: only the stride-s output
            # positions are ever touched (no stride-1 superset + subsample).
            for kh in range(K):
                oh = kh * dilation
                for kw in range(K):
                    ow = kw * dilation
                    raw = x_ref[pl.ds(oh, Ho, stride),
                                pl.ds(ow, Wo, stride), :].astype(jnp.float32)
                    t = jnp.maximum(raw * scale + shift, 0.0)
                    if masked and pad > 0:
                        ri = jax.lax.broadcasted_iota(jnp.int32, (Ho, Wo, cp_in), 0)
                        ci = jax.lax.broadcasted_iota(jnp.int32, (Ho, Wo, cp_in), 1)
                        src_r = ri * stride + oh
                        src_c = ci * stride + ow
                        inside = ((src_r >= pad) & (src_r < pad + H)
                                  & (src_c >= pad) & (src_c < pad + W))
                        t = jnp.where(inside, t, 0.0)
                    acc = acc + t * dww[kh * K + kw, :].reshape(1, 1, cp_in)

        # Pointwise 1x1 conv on the MXU (f32 accumulate), lane-dense output store.
        y = jnp.dot(acc.reshape(Ho * Wo, cp_in), pww_ref[...].astype(jnp.float32),
                    preferred_element_type=jnp.float32)
        y_ref[...] = y.astype(y_ref.dtype)

        # One-pass BN statistics; the 8 sublane rows hold redundant copies so the
        # accumulator block stays (8, 128)-aligned.  Wrapper uses row 0.
        ssum_ref[...] += jnp.sum(y, axis=0, keepdims=True)
        ssq_ref[...] += jnp.sum(y * y, axis=0, keepdims=True)

    return kernel


# ---------------------------------------------------------------------------
# One fused DilConv pass (NHWC, channels already padded to 128 lanes).
# Returns the *pre*-BN pointwise output plus its batch statistics; the caller
# folds BN into the next block's kernel (or into the final epilogue).
# ---------------------------------------------------------------------------
def _dil_conv_block(x_nhwc, scale_in, shift_in, dw_w, pw_w, *,
                    kernel_size, stride, padding, dilation=1, masked, out_dtype):
    N, H, W, Cp_in = x_nhwc.shape
    Cp_out = pw_w.shape[1]
    K = kernel_size
    d = dilation

    # Spatial zero pad in the wrapper (the kernel re-zeros the border after the
    # folded affine, so semantics match Conv2d padding-after-ReLU).
    xp = jnp.pad(x_nhwc, ((0, 0), (padding, padding), (padding, padding), (0, 0)))
    Hp, Wp = H + 2 * padding, W + 2 * padding
    Ho = (Hp - d * (K - 1) - 1) // stride + 1
    Wo = (Wp - d * (K - 1) - 1) // stride + 1

    # Megacore split of the batch axis (v7x: 2 TensorCores); per-core stat rows.
    G = 2 if (N % 2 == 0 and N >= 2) else 1
    npc = N // G

    in_bytes = x_nhwc.dtype.itemsize
    out_bytes = np.dtype(out_dtype).itemsize
    flops = (2 * N * Ho * Wo * Cp_in * K * K        # depthwise taps
             + 2 * N * Ho * Wo * Cp_in * Cp_out     # 1x1 matmul
             + 4 * N * Hp * Wp * Cp_in)             # affine + relu (+mask)
    bytes_accessed = (N * Hp * Wp * Cp_in * in_bytes
                      + (K * K + Cp_out + 2) * Cp_in * 4
                      + N * Ho * Wo * Cp_out * out_bytes
                      + 2 * G * 8 * Cp_out * 4)

    y, ssum, ssq = pl.pallas_call(
        _make_dilconv_kernel(K, H, W, Ho, Wo, padding, d, stride, masked),
        out_shape=(jax.ShapeDtypeStruct((N, Ho * Wo, Cp_out), out_dtype),
                   jax.ShapeDtypeStruct((G, 8, Cp_out), jnp.float32),
                   jax.ShapeDtypeStruct((G, 8, Cp_out), jnp.float32)),
        grid=(G, npc),
        in_specs=[
            pl.BlockSpec((None, Hp, Wp, Cp_in), lambda c, n: (c * npc + n, 0, 0, 0)),
            pl.BlockSpec((1, Cp_in), lambda c, n: (0, 0)),
            pl.BlockSpec((1, Cp_in), lambda c, n: (0, 0)),
            pl.BlockSpec((K * K, Cp_in), lambda c, n: (0, 0)),
            pl.BlockSpec((Cp_in, Cp_out), lambda c, n: (0, 0)),
        ],
        out_specs=(
            pl.BlockSpec((None, Ho * Wo, Cp_out), lambda c, n: (c * npc + n, 0, 0)),
            pl.BlockSpec((None, 8, Cp_out), lambda c, n: (c, 0, 0)),   # resident
            pl.BlockSpec((None, 8, Cp_out), lambda c, n: (c, 0, 0)),   # per core
        ),
        compiler_params=pltpu.CompilerParams(
            dimension_semantics=("parallel", "arbitrary"),
            vmem_limit_bytes=_vmem_limit_bytes()),
        cost_estimate=pl.CostEstimate(flops=flops, transcendentals=0,
                                      bytes_accessed=bytes_accessed),
    )(xp, scale_in, shift_in, dw_w, pw_w)

    # Combine the per-core partial sums (row 0 of each core's stat block).
    ssum = jnp.sum(ssum[:, 0, :], axis=0, keepdims=True)
    ssq = jnp.sum(ssq[:, 0, :], axis=0, keepdims=True)
    M = N * Ho * Wo
    return y.reshape(N, Ho, Wo, Cp_out), ssum, ssq, M


def _fold_bn(ssum, ssq, gamma2d, beta2d, count):
    """Fold training-mode BatchNorm into per-channel (scale, shift)."""
    # NOTE: one-pass var = E[y^2] - E[y]^2 in f32; adequate at this scale but
    # cancellation-prone if |mean| >> std on real workloads.
    mean = ssum / count
    var = jnp.maximum(ssq / count - mean * mean, 0.0)
    inv = jax.lax.rsqrt(var + EPS)
    scale = gamma2d * inv
    shift = beta2d - mean * scale
    return scale.astype(jnp.float32), shift.astype(jnp.float32)


# ---------------------------------------------------------------------------
# Parameter preparation (lane padding + torch->kernel layout).
# ---------------------------------------------------------------------------
def _prep_dw_weight(w, c_pad):
    c, _, k, _ = w.shape                       # torch depthwise: (C, 1, K, K)
    w = jnp.transpose(w.reshape(c, k, k), (1, 2, 0)).reshape(k * k, c)
    return jnp.pad(w, ((0, 0), (0, c_pad - c)))


def _prep_pw_weight(w, ci_pad, co_pad):
    co, ci = w.shape[0], w.shape[1]            # torch pointwise: (C_out, C_in, 1, 1)
    w2 = w.reshape(co, ci).T                   # (C_in, C_out)
    return jnp.pad(w2, ((0, ci_pad - ci), (0, co_pad - co)))


def _prep_bn_vec(v, c_pad):
    return jnp.pad(v.astype(jnp.float32), (0, c_pad - v.shape[0])).reshape(1, c_pad)


@partial(jax.jit, static_argnames=("kernel_size", "stride", "padding"))
def sep_conv_m(x_nchw, dw1, pw1, g1, b1, dw2, pw2, g2, b2,
               *, kernel_size, stride, padding):
    """SepConv_M forward: DilConv(C_in->C_in, stride) then DilConv(C_in->C_out, 1)."""
    N, C_in, H, W = x_nchw.shape
    C_out = pw2.shape[0]
    Cp_in = _round_up(C_in, LANE)
    Cp_out = _round_up(C_out, LANE)
    dtype = x_nchw.dtype
    inter_dtype = dtype                       # see bf16 TODO at top of file

    # NCHW -> NHWC, channels zero-padded to the 128-lane width (zeros preserved
    # end-to-end).  TODO(synk): in an NHWC-resident model these transposes/pads
    # happen once outside this op; they remain thin XLA wrapper ops here.
    x = jnp.transpose(x_nchw, (0, 2, 3, 1))
    x = jnp.pad(x, ((0, 0), (0, 0), (0, 0), (0, Cp_in - C_in)))

    dw1p = _prep_dw_weight(dw1, Cp_in)
    pw1p = _prep_pw_weight(pw1, Cp_in, Cp_in)
    g1p, b1p = _prep_bn_vec(g1, Cp_in), _prep_bn_vec(b1, Cp_in)
    dw2p = _prep_dw_weight(dw2, Cp_in)
    pw2p = _prep_pw_weight(pw2, Cp_in, Cp_out)
    g2p, b2p = _prep_bn_vec(g2, Cp_out), _prep_bn_vec(b2, Cp_out)

    ident_scale = jnp.ones((1, Cp_in), jnp.float32)
    ident_shift = jnp.zeros((1, Cp_in), jnp.float32)

    # Block 1: ReLU -> dw(K, stride) -> pw -> (stats only; BN1 folded forward).
    y1, s1, q1, m1 = _dil_conv_block(
        x, ident_scale, ident_shift, dw1p, pw1p,
        kernel_size=kernel_size, stride=stride, padding=padding,
        masked=False, out_dtype=inter_dtype)
    scale1, shift1 = _fold_bn(s1, q1, g1p, b1p, m1)

    # Block 2: BN1 affine + ReLU folded into its depthwise kernel.
    y2, s2, q2, m2 = _dil_conv_block(
        y1, scale1, shift1, dw2p, pw2p,
        kernel_size=kernel_size, stride=1, padding=padding,
        masked=True, out_dtype=inter_dtype)
    scale2, shift2 = _fold_bn(s2, q2, g2p, b2p, m2)

    # BN2 folded into the (XLA-fused) epilogue: un-pad channels, affine, NCHW.
    y2 = y2.astype(jnp.float32)[..., :C_out]
    out = y2 * scale2[0, :C_out] + shift2[0, :C_out]
    return jnp.transpose(out, (0, 3, 1, 2)).astype(dtype)


# ---------------------------------------------------------------------------
# Pure-JAX reference mirroring the PyTorch module (training-mode BN).
# ---------------------------------------------------------------------------
def _reference(x, dw1, pw1, g1, b1, dw2, pw2, g2, b2, *, kernel_size, stride, padding):
    def dil(x, dw, pw, g, b, s):
        C = x.shape[1]
        x = jnp.maximum(x, 0.0)
        y = jax.lax.conv_general_dilated(
            x, dw, window_strides=(s, s), padding=[(padding, padding)] * 2,
            dimension_numbers=("NCHW", "OIHW", "NCHW"), feature_group_count=C)
        y = jax.lax.conv_general_dilated(
            y, pw, window_strides=(1, 1), padding="VALID",
            dimension_numbers=("NCHW", "OIHW", "NCHW"))
        mean = jnp.mean(y, axis=(0, 2, 3), keepdims=True)
        var = jnp.mean((y - mean) ** 2, axis=(0, 2, 3), keepdims=True)
        yh = (y - mean) * jax.lax.rsqrt(var + EPS)
        return yh * g.reshape(1, -1, 1, 1) + b.reshape(1, -1, 1, 1)

    x = dil(x, dw1, pw1, g1, b1, stride)
    x = dil(x, dw2, pw2, g2, b2, 1)
    return x


if __name__ == "__main__":
    # SepConv_M(C_in=4, C_out=8, kernel_size=3, stride=1, padding=1, affine=True)
    N, C_in, H, W = 2, 4, 16, 16
    C_out, K, stride, padding = 8, 3, 1, 1

    key = jax.random.PRNGKey(0)
    k = jax.random.split(key, 9)
    x = jax.random.normal(k[0], (N, C_in, H, W), jnp.float32)
    dw1 = jax.random.normal(k[1], (C_in, 1, K, K), jnp.float32) * 0.3
    pw1 = jax.random.normal(k[2], (C_in, C_in, 1, 1), jnp.float32) * 0.3
    g1 = 1.0 + 0.1 * jax.random.normal(k[3], (C_in,), jnp.float32)
    b1 = 0.1 * jax.random.normal(k[4], (C_in,), jnp.float32)
    dw2 = jax.random.normal(k[5], (C_in, 1, K, K), jnp.float32) * 0.3
    pw2 = jax.random.normal(k[6], (C_out, C_in, 1, 1), jnp.float32) * 0.3
    g2 = 1.0 + 0.1 * jax.random.normal(k[7], (C_out,), jnp.float32)
    b2 = 0.1 * jax.random.normal(k[8], (C_out,), jnp.float32)

    out = sep_conv_m(x, dw1, pw1, g1, b1, dw2, pw2, g2, b2,
                     kernel_size=K, stride=stride, padding=padding)
    out = jax.block_until_ready(out)

    ref = _reference(x, dw1, pw1, g1, b1, dw2, pw2, g2, b2,
                     kernel_size=K, stride=stride, padding=padding)
    np.testing.assert_allclose(np.asarray(out), np.asarray(ref),
                               rtol=1e-3, atol=1e-3)
    print("KERNEL_OK")
</pallas_src>

<mosaic_0001>
module attributes {stable_mosaic.version = 11 : i64} {
  func.func @kernel(%arg0: i32, %arg1: i32, %arg2: memref<1x18x18x128xf32, #tpu.memory_space<vmem>>, %arg3: memref<1x128xf32, #tpu.memory_space<vmem>>, %arg4: memref<1x128xf32, #tpu.memory_space<vmem>>, %arg5: memref<9x128xf32, #tpu.memory_space<vmem>>, %arg6: memref<128x128xf32, #tpu.memory_space<vmem>>, %arg7: memref<1x256x128xf32, #tpu.memory_space<vmem>>, %arg8: memref<1x8x128xf32, #tpu.memory_space<vmem>>, %arg9: memref<1x8x128xf32, #tpu.memory_space<vmem>>) attributes {dimension_semantics = [#tpu.dimension_semantics<parallel>, #tpu.dimension_semantics<arbitrary>], iteration_bounds = array<i64: 2, 1>, scalar_prefetch = 0 : i64, scratch_operands = 0 : i64, tpu.core_type = #tpu.core_type<tc>, window_params = [{transform_indices = @transform_0, window_bounds = array<i64: 1, 18, 18, 128>}, {pipeline_mode = #tpu.pipeline_mode<synchronous>, transform_indices = @transform_1, window_bounds = array<i64: 1, 128>}, {pipeline_mode = #tpu.pipeline_mode<synchronous>, transform_indices = @transform_2, window_bounds = array<i64: 1, 128>}, {pipeline_mode = #tpu.pipeline_mode<synchronous>, transform_indices = @transform_3, window_bounds = array<i64: 9, 128>}, {pipeline_mode = #tpu.pipeline_mode<synchronous>, transform_indices = @transform_4, window_bounds = array<i64: 128, 128>}, {transform_indices = @transform_5, window_bounds = array<i64: 1, 256, 128>}, {transform_indices = @transform_6, window_bounds = array<i64: 1, 8, 128>}, {transform_indices = @transform_7, window_bounds = array<i64: 1, 8, 128>}]} {
    %c0_i32 = arith.constant 0 : i32
    %0 = arith.cmpi eq, %arg1, %c0_i32 : i32
    %1 = arith.extui %0 : i1 to i32
    %c0_i32_0 = arith.constant 0 : i32
    %2 = arith.cmpi ne, %1, %c0_i32_0 : i32
    scf.if %2 {
      %cst_31 = arith.constant 0.000000e+00 : f32
      %105 = vector.broadcast %cst_31 : f32 to vector<8x128xf32>
      %c0_32 = arith.constant 0 : index
      %c0_33 = arith.constant 0 : index
      %c0_34 = arith.constant 0 : index
      %106 = vector.load %arg8[%c0_32, %c0_33, %c0_34] : memref<1x8x128xf32, #tpu.memory_space<vmem>>, vector<1x8x128xf32>
      %107 = vector.shape_cast %106 : vector<1x8x128xf32> to vector<8x128xf32>
      %108 = vector.shape_cast %105 : vector<8x128xf32> to vector<1x8x128xf32>
      tpu.vector_store %arg8[%c0_32, %c0_33, %c0_34], %108 {strides = array<i32>} : memref<1x8x128xf32, #tpu.memory_space<vmem>>, vector<1x8x128xf32>,
      %cst_35 = arith.constant 0.000000e+00 : f32
      %109 = vector.broadcast %cst_35 : f32 to vector<8x128xf32>
      %c0_36 = arith.constant 0 : index
      %c0_37 = arith.constant 0 : index
      %c0_38 = arith.constant 0 : index
      %110 = vector.load %arg9[%c0_36, %c0_37, %c0_38] : memref<1x8x128xf32, #tpu.memory_space<vmem>>, vector<1x8x128xf32>
      %111 = vector.shape_cast %110 : vector<1x8x128xf32> to vector<8x128xf32>
      %112 = vector.shape_cast %109 : vector<8x128xf32> to vector<1x8x128xf32>
      tpu.vector_store %arg9[%c0_36, %c0_37, %c0_38], %112 {strides = array<i32>} : memref<1x8x128xf32, #tpu.memory_space<vmem>>, vector<1x8x128xf32>,
    } else {
    }
    %c0 = arith.constant 0 : index
    %c0_1 = arith.constant 0 : index
    %3 = vector.load %arg3[%c0, %c0_1] : memref<1x128xf32, #tpu.memory_space<vmem>>, vector<1x128xf32>
    %4 = vector.shape_cast %3 : vector<1x128xf32> to vector<1x1x128xf32>
    %c0_2 = arith.constant 0 : index
    %c0_3 = arith.constant 0 : index
    %5 = vector.load %arg4[%c0_2, %c0_3] : memref<1x128xf32, #tpu.memory_space<vmem>>, vector<1x128xf32>
    %6 = vector.shape_cast %5 : vector<1x128xf32> to vector<1x1x128xf32>
    %c0_4 = arith.constant 0 : index
    %c0_5 = arith.constant 0 : index
    %7 = vector.load %arg5[%c0_4, %c0_5] : memref<9x128xf32, #tpu.memory_space<vmem>>, vector<9x128xf32>
    %cst = arith.constant 0.000000e+00 : f32
    %8 = vector.broadcast %cst : f32 to vector<16x16x128xf32>
    %c0_6 = arith.constant 0 : index
    %c0_7 = arith.constant 0 : index
    %c0_8 = arith.constant 0 : index
    %c0_9 = arith.constant 0 : index
    %9 = vector.load %arg2[%c0_6, %c0_7, %c0_8, %c0_9] : memref<1x18x18x128xf32, #tpu.memory_space<vmem>>, vector<1x18x18x128xf32>
    %10 = vector.shape_cast %9 : vector<1x18x18x128xf32> to vector<18x18x128xf32>
    %11 = vector.broadcast %4 : vector<1x1x128xf32> to vector<18x18x128xf32>
    %12 = arith.mulf %10, %11 : vector<18x18x128xf32>
    %13 = vector.broadcast %6 : vector<1x1x128xf32> to vector<18x18x128xf32>
    %14 = arith.addf %12, %13 : vector<18x18x128xf32>
    %cst_10 = arith.constant 0.000000e+00 : f32
    %15 = vector.broadcast %cst_10 : f32 to vector<18x18x128xf32>
    %16 = arith.maximumf %14, %15 : vector<18x18x128xf32>
    %17 = vector.extract_strided_slice %16 {offsets = [0, 0, 0], sizes = [16, 16, 128], strides = [1, 1, 1]} : vector<18x18x128xf32> to vector<16x16x128xf32>
    %18 = vector.extract_strided_slice %7 {offsets = [0, 0], sizes = [1, 128], strides = [1, 1]} : vector<9x128xf32> to vector<1x128xf32>
    %19 = vector.shape_cast %18 : vector<1x128xf32> to vector<128xf32>
    %20 = vector.shape_cast %19 : vector<128xf32> to vector<1x1x128xf32>
    %21 = vector.broadcast %20 : vector<1x1x128xf32> to vector<16x16x128xf32>
    %22 = arith.mulf %17, %21 : vector<16x16x128xf32>
    %23 = arith.addf %8, %22 : vector<16x16x128xf32>
    %24 = vector.extract_strided_slice %16 {offsets = [0, 1, 0], sizes = [16, 16, 128], strides = [1, 1, 1]} : vector<18x18x128xf32> to vector<16x16x128xf32>
    %25 = vector.extract_strided_slice %7 {offsets = [1, 0], sizes = [1, 128], strides = [1, 1]} : vector<9x128xf32> to vector<1x128xf32>
    %26 = vector.shape_cast %25 : vector<1x128xf32> to vector<128xf32>
    %27 = vector.shape_cast %26 : vector<128xf32> to vector<1x1x128xf32>
    %28 = vector.broadcast %27 : vector<1x1x128xf32> to vector<16x16x128xf32>
    %29 = arith.mulf %24, %28 : vector<16x16x128xf32>
    %30 = arith.addf %23, %29 : vector<16x16x128xf32>
    %31 = vector.extract_strided_slice %16 {offsets = [0, 2, 0], sizes = [16, 16, 128], strides = [1, 1, 1]} : vector<18x18x128xf32> to vector<16x16x128xf32>
    %32 = vector.extract_strided_slice %7 {offsets = [2, 0], sizes = [1, 128], strides = [1, 1]} : vector<9x128xf32> to vector<1x128xf32>
    %33 = vector.shape_cast %32 : vector<1x128xf32> to vector<128xf32>
    %34 = vector.shape_cast %33 : vector<128xf32> to vector<1x1x128xf32>
    %35 = vector.broadcast %34 : vector<1x1x128xf32> to vector<16x16x128xf32>
    %36 = arith.mulf %31, %35 : vector<16x16x128xf32>
    %37 = arith.addf %30, %36 : vector<16x16x128xf32>
    %38 = vector.extract_strided_slice %16 {offsets = [1, 0, 0], sizes = [16, 16, 128], strides = [1, 1, 1]} : vector<18x18x128xf32> to vector<16x16x128xf32>
    %39 = vector.extract_strided_slice %7 {offsets = [3, 0], sizes = [1, 128], strides = [1, 1]} : vector<9x128xf32> to vector<1x128xf32>
    %40 = vector.shape_cast %39 : vector<1x128xf32> to vector<128xf32>
    %41 = vector.shape_cast %40 : vector<128xf32> to vector<1x1x128xf32>
    %42 = vector.broadcast %41 : vector<1x1x128xf32> to vector<16x16x128xf32>
    %43 = arith.mulf %38, %42 : vector<16x16x128xf32>
    %44 = arith.addf %37, %43 : vector<16x16x128xf32>
    %45 = vector.extract_strided_slice %16 {offsets = [1, 1, 0], sizes = [16, 16, 128], strides = [1, 1, 1]} : vector<18x18x128xf32> to vector<16x16x128xf32>
    %46 = vector.extract_strided_slice %7 {offsets = [4, 0], sizes = [1, 128], strides = [1, 1]} : vector<9x128xf32> to vector<1x128xf32>
    %47 = vector.shape_cast %46 : vector<1x128xf32> to vector<128xf32>
    %48 = vector.shape_cast %47 : vector<128xf32> to vector<1x1x128xf32>
    %49 = vector.broadcast %48 : vector<1x1x128xf32> to vector<16x16x128xf32>
    %50 = arith.mulf %45, %49 : vector<16x16x128xf32>
    %51 = arith.addf %44, %50 : vector<16x16x128xf32>
    %52 = vector.extract_strided_slice %16 {offsets = [1, 2, 0], sizes = [16, 16, 128], strides = [1, 1, 1]} : vector<18x18x128xf32> to vector<16x16x128xf32>
    %53 = vector.extract_strided_slice %7 {offsets = [5, 0], sizes = [1, 128], strides = [1, 1]} : vector<9x128xf32> to vector<1x128xf32>
    %54 = vector.shape_cast %53 : vector<1x128xf32> to vector<128xf32>
    %55 = vector.shape_cast %54 : vector<128xf32> to vector<1x1x128xf32>
    %56 = vector.broadcast %55 : vector<1x1x128xf32> to vector<16x16x128xf32>
    %57 = arith.mulf %52, %56 : vector<16x16x128xf32>
    %58 = arith.addf %51, %57 : vector<16x16x128xf32>
    %59 = vector.extract_strided_slice %16 {offsets = [2, 0, 0], sizes = [16, 16, 128], strides = [1, 1, 1]} : vector<18x18x128xf32> to vector<16x16x128xf32>
    %60 = vector.extract_strided_slice %7 {offsets = [6, 0], sizes = [1, 128], strides = [1, 1]} : vector<9x128xf32> to vector<1x128xf32>
    %61 = vector.shape_cast %60 : vector<1x128xf32> to vector<128xf32>
    %62 = vector.shape_cast %61 : vector<128xf32> to vector<1x1x128xf32>
    %63 = vector.broadcast %62 : vector<1x1x128xf32> to vector<16x16x128xf32>
    %64 = arith.mulf %59, %63 : vector<16x16x128xf32>
    %65 = arith.addf %58, %64 : vector<16x16x128xf32>
    %66 = vector.extract_strided_slice %16 {offsets = [2, 1, 0], sizes = [16, 16, 128], strides = [1, 1, 1]} : vector<18x18x128xf32> to vector<16x16x128xf32>
    %67 = vector.extract_strided_slice %7 {offsets = [7, 0], sizes = [1, 128], strides = [1, 1]} : vector<9x128xf32> to vector<1x128xf32>
    %68 = vector.shape_cast %67 : vector<1x128xf32> to vector<128xf32>
    %69 = vector.shape_cast %68 : vector<128xf32> to vector<1x1x128xf32>
    %70 = vector.broadcast %69 : vector<1x1x128xf32> to vector<16x16x128xf32>
    %71 = arith.mulf %66, %70 : vector<16x16x128xf32>
    %72 = arith.addf %65, %71 : vector<16x16x128xf32>
    %73 = vector.extract_strided_slice %16 {offsets = [2, 2, 0], sizes = [16, 16, 128], strides = [1, 1, 1]} : vector<18x18x128xf32> to vector<16x16x128xf32>
    %74 = vector.extract_strided_slice %7 {offsets = [8, 0], sizes = [1, 128], strides = [1, 1]} : vector<9x128xf32> to vector<1x128xf32>
    %75 = vector.shape_cast %74 : vector<1x128xf32> to vector<128xf32>
    %76 = vector.shape_cast %75 : vector<128xf32> to vector<1x1x128xf32>
    %77 = vector.broadcast %76 : vector<1x1x128xf32> to vector<16x16x128xf32>
    %78 = arith.mulf %73, %77 : vector<16x16x128xf32>
    %79 = arith.addf %72, %78 : vector<16x16x128xf32>
    %80 = vector.shape_cast %79 : vector<16x16x128xf32> to vector<256x128xf32>
    %c0_11 = arith.constant 0 : index
    %c0_12 = arith.constant 0 : index
    %81 = vector.load %arg6[%c0_11, %c0_12] : memref<128x128xf32, #tpu.memory_space<vmem>>, vector<128x128xf32>
    %cst_13 = arith.constant dense<0.000000e+00> : vector<256x128xf32>
    %82 = tpu.matmul %80, %81, %cst_13 {dimension_numbers = #tpu.dot_dimension_numbers<[1], [0], [0], [1], [0, 0, 1, 1], [], []>} : vector<256x128xf32>, vector<128x128xf32>, vector<256x128xf32> -> vector<256x128xf32>
    %c0_14 = arith.constant 0 : index
    %c0_15 = arith.constant 0 : index
    %c0_16 = arith.constant 0 : index
    %83 = vector.load %arg7[%c0_14, %c0_15, %c0_16] : memref<1x256x128xf32, #tpu.memory_space<vmem>>, vector<1x256x128xf32>
    %84 = vector.shape_cast %83 : vector<1x256x128xf32> to vector<256x128xf32>
    %85 = vector.shape_cast %82 : vector<256x128xf32> to vector<1x256x128xf32>
    tpu.vector_store %arg7[%c0_14, %c0_15, %c0_16], %85 {strides = array<i32>} : memref<1x256x128xf32, #tpu.memory_space<vmem>>, vector<1x256x128xf32>,
    %c0_17 = arith.constant 0 : index
    %c0_18 = arith.constant 0 : index
    %c0_19 = arith.constant 0 : index
    %86 = vector.load %arg8[%c0_17, %c0_18, %c0_19] : memref<1x8x128xf32, #tpu.memory_space<vmem>>, vector<1x8x128xf32>
    %87 = vector.shape_cast %86 : vector<1x8x128xf32> to vector<8x128xf32>
    %cst_20 = arith.constant dense<0.000000e+00> : vector<128xf32>
    %88 = vector.multi_reduction <add>, %82, %cst_20 [0] : vector<256x128xf32> to vector<128xf32>
    %89 = vector.shape_cast %88 : vector<128xf32> to vector<1x128xf32>
    %90 = vector.broadcast %89 : vector<1x128xf32> to vector<8x128xf32>
    %91 = arith.addf %87, %90 : vector<8x128xf32>
    %c0_21 = arith.constant 0 : index
    %c0_22 = arith.constant 0 : index
    %c0_23 = arith.constant 0 : index
    %92 = vector.load %arg8[%c0_21, %c0_22, %c0_23] : memref<1x8x128xf32, #tpu.memory_space<vmem>>, vector<1x8x128xf32>
    %93 = vector.shape_cast %92 : vector<1x8x128xf32> to vector<8x128xf32>
    %94 = vector.shape_cast %91 : vector<8x128xf32> to vector<1x8x128xf32>
    tpu.vector_store %arg8[%c0_21, %c0_22, %c0_23], %94 {strides = array<i32>} : memref<1x8x128xf32, #tpu.memory_space<vmem>>, vector<1x8x128xf32>,
    %c0_24 = arith.constant 0 : index
    %c0_25 = arith.constant 0 : index
    %c0_26 = arith.constant 0 : index
    %95 = vector.load %arg9[%c0_24, %c0_25, %c0_26] : memref<1x8x128xf32, #tpu.memory_space<vmem>>, vector<1x8x128xf32>
    %96 = vector.shape_cast %95 : vector<1x8x128xf32> to vector<8x128xf32>
    %97 = arith.mulf %82, %82 : vector<256x128xf32>
    %cst_27 = arith.constant dense<0.000000e+00> : vector<128xf32>
    %98 = vector.multi_reduction <add>, %97, %cst_27 [0] : vector<256x128xf32> to vector<128xf32>
    %99 = vector.shape_cast %98 : vector<128xf32> to vector<1x128xf32>
    %100 = vector.broadcast %99 : vector<1x128xf32> to vector<8x128xf32>
    %101 = arith.addf %96, %100 : vector<8x128xf32>
    %c0_28 = arith.constant 0 : index
    %c0_29 = arith.constant 0 : index
    %c0_30 = arith.constant 0 : index
    %102 = vector.load %arg9[%c0_28, %c0_29, %c0_30] : memref<1x8x128xf32, #tpu.memory_space<vmem>>, vector<1x8x128xf32>
    %103 = vector.shape_cast %102 : vector<1x8x128xf32> to vector<8x128xf32>
    %104 = vector.shape_cast %101 : vector<8x128xf32> to vector<1x8x128xf32>
    tpu.vector_store %arg9[%c0_28, %c0_29, %c0_30], %104 {strides = array<i32>} : memref<1x8x128xf32, #tpu.memory_space<vmem>>, vector<1x8x128xf32>,
    return
  }
  func.func @transform_0(%arg0: i32, %arg1: i32) -> (i32, i32, i32, i32) {
    %c1_i32 = arith.constant 1 : i32
    %0 = arith.muli %arg0, %c1_i32 : i32
    %1 = arith.addi %0, %arg1 : i32
    %c0_i32 = arith.constant 0 : i32
    %c0_i32_0 = arith.constant 0 : i32
    %c0_i32_1 = arith.constant 0 : i32
    %c0_i32_2 = arith.constant 0 : i32
    return %1, %c0_i32, %c0_i32_0, %c0_i32_1 : i32, i32, i32, i32
  }
  func.func @transform_1(%arg0: i32, %arg1: i32) -> (i32, i32) {
    %c0_i32 = arith.constant 0 : i32
    %c0_i32_0 = arith.constant 0 : i32
    %c0_i32_1 = arith.constant 0 : i32
    return %c0_i32, %c0_i32_0 : i32, i32
  }
  func.func @transform_2(%arg0: i32, %arg1: i32) -> (i32, i32) {
    %c0_i32 = arith.constant 0 : i32
    %c0_i32_0 = arith.constant 0 : i32
    %c0_i32_1 = arith.constant 0 : i32
    return %c0_i32, %c0_i32_0 : i32, i32
  }
  func.func @transform_3(%arg0: i32, %arg1: i32) -> (i32, i32) {
    %c0_i32 = arith.constant 0 : i32
    %c0_i32_0 = arith.constant 0 : i32
    %c0_i32_1 = arith.constant 0 : i32
    return %c0_i32, %c0_i32_0 : i32, i32
  }
  func.func @transform_4(%arg0: i32, %arg1: i32) -> (i32, i32) {
    %c0_i32 = arith.constant 0 : i32
    %c0_i32_0 = arith.constant 0 : i32
    %c0_i32_1 = arith.constant 0 : i32
    return %c0_i32, %c0_i32_0 : i32, i32
  }
  func.func @transform_5(%arg0: i32, %arg1: i32) -> (i32, i32, i32) {
    %c1_i32 = arith.constant 1 : i32
    %0 = arith.muli %arg0, %c1_i32 : i32
    %1 = arith.addi %0, %arg1 : i32
    %c0_i32 = arith.constant 0 : i32
    %c0_i32_0 = arith.constant 0 : i32
    %c0_i32_1 = arith.constant 0 : i32
    return %1, %c0_i32, %c0_i32_0 : i32, i32, i32
  }
  func.func @transform_6(%arg0: i32, %arg1: i32) -> (i32, i32, i32) {
    %c0_i32 = arith.constant 0 : i32
    %c0_i32_0 = arith.constant 0 : i32
    %c0_i32_1 = arith.constant 0 : i32
    return %arg0, %c0_i32, %c0_i32_0 : i32, i32, i32
  }
  func.func @transform_7(%arg0: i32, %arg1: i32) -> (i32, i32, i32) {
    %c0_i32 = arith.constant 0 : i32
    %c0_i32_0 = arith.constant 0 : i32
    %c0_i32_1 = arith.constant 0 : i32
    return %arg0, %c0_i32, %c0_i32_0 : i32, i32, i32
  }
}

module attributes {stable_mosaic.version = 11 : i64} {
  func.func @kernel(%arg0: i32, %arg1: i32, %arg2: memref<1x18x18x128xf32, #tpu.memory_space<vmem>>, %arg3: memref<1x128xf32, #tpu.memory_space<vmem>>, %arg4: memref<1x128xf32, #tpu.memory_space<vmem>>, %arg5: memref<9x128xf32, #tpu.memory_space<vmem>>, %arg6: memref<128x128xf32, #tpu.memory_space<vmem>>, %arg7: memref<1x256x128xf32, #tpu.memory_space<vmem>>, %arg8: memref<1x8x128xf32, #tpu.memory_space<vmem>>, %arg9: memref<1x8x128xf32, #tpu.memory_space<vmem>>) attributes {dimension_semantics = [#tpu.dimension_semantics<parallel>, #tpu.dimension_semantics<arbitrary>], iteration_bounds = array<i64: 2, 1>, scalar_prefetch = 0 : i64, scratch_operands = 0 : i64, tpu.core_type = #tpu.core_type<tc>, window_params = [{transform_indices = @transform_0, window_bounds = array<i64: 1, 18, 18, 128>}, {pipeline_mode = #tpu.pipeline_mode<synchronous>, transform_indices = @transform_1, window_bounds = array<i64: 1, 128>}, {pipeline_mode = #tpu.pipeline_mode<synchronous>, transform_indices = @transform_2, window_bounds = array<i64: 1, 128>}, {pipeline_mode = #tpu.pipeline_mode<synchronous>, transform_indices = @transform_3, window_bounds = array<i64: 9, 128>}, {pipeline_mode = #tpu.pipeline_mode<synchronous>, transform_indices = @transform_4, window_bounds = array<i64: 128, 128>}, {transform_indices = @transform_5, window_bounds = array<i64: 1, 256, 128>}, {transform_indices = @transform_6, window_bounds = array<i64: 1, 8, 128>}, {transform_indices = @transform_7, window_bounds = array<i64: 1, 8, 128>}]} {
    %c0_i32 = arith.constant 0 : i32
    %0 = arith.cmpi eq, %arg1, %c0_i32 : i32
    %1 = arith.extui %0 : i1 to i32
    %c0_i32_0 = arith.constant 0 : i32
    %2 = arith.cmpi ne, %1, %c0_i32_0 : i32
    scf.if %2 {
      %cst_34 = arith.constant 0.000000e+00 : f32
      %120 = vector.broadcast %cst_34 : f32 to vector<8x128xf32>
      %c0_35 = arith.constant 0 : index
      %c0_36 = arith.constant 0 : index
      %c0_37 = arith.constant 0 : index
      %121 = vector.load %arg8[%c0_35, %c0_36, %c0_37] : memref<1x8x128xf32, #tpu.memory_space<vmem>>, vector<1x8x128xf32>
      %122 = vector.shape_cast %121 : vector<1x8x128xf32> to vector<8x128xf32>
      %123 = vector.shape_cast %120 : vector<8x128xf32> to vector<1x8x128xf32>
      tpu.vector_store %arg8[%c0_35, %c0_36, %c0_37], %123 {strides = array<i32>} : memref<1x8x128xf32, #tpu.memory_space<vmem>>, vector<1x8x128xf32>,
      %cst_38 = arith.constant 0.000000e+00 : f32
      %124 = vector.broadcast %cst_38 : f32 to vector<8x128xf32>
      %c0_39 = arith.constant 0 : index
      %c0_40 = arith.constant 0 : index
      %c0_41 = arith.constant 0 : index
      %125 = vector.load %arg9[%c0_39, %c0_40, %c0_41] : memref<1x8x128xf32, #tpu.memory_space<vmem>>, vector<1x8x128xf32>
      %126 = vector.shape_cast %125 : vector<1x8x128xf32> to vector<8x128xf32>
      %127 = vector.shape_cast %124 : vector<8x128xf32> to vector<1x8x128xf32>
      tpu.vector_store %arg9[%c0_39, %c0_40, %c0_41], %127 {strides = array<i32>} : memref<1x8x128xf32, #tpu.memory_space<vmem>>, vector<1x8x128xf32>,
    } else {
    }
    %c0 = arith.constant 0 : index
    %c0_1 = arith.constant 0 : index
    %3 = vector.load %arg3[%c0, %c0_1] : memref<1x128xf32, #tpu.memory_space<vmem>>, vector<1x128xf32>
    %4 = vector.shape_cast %3 : vector<1x128xf32> to vector<1x1x128xf32>
    %c0_2 = arith.constant 0 : index
    %c0_3 = arith.constant 0 : index
    %5 = vector.load %arg4[%c0_2, %c0_3] : memref<1x128xf32, #tpu.memory_space<vmem>>, vector<1x128xf32>
    %6 = vector.shape_cast %5 : vector<1x128xf32> to vector<1x1x128xf32>
    %c0_4 = arith.constant 0 : index
    %c0_5 = arith.constant 0 : index
    %7 = vector.load %arg5[%c0_4, %c0_5] : memref<9x128xf32, #tpu.memory_space<vmem>>, vector<9x128xf32>
    %cst = arith.constant 0.000000e+00 : f32
    %8 = vector.broadcast %cst : f32 to vector<16x16x128xf32>
    %c0_6 = arith.constant 0 : index
    %c0_7 = arith.constant 0 : index
    %c0_8 = arith.constant 0 : index
    %c0_9 = arith.constant 0 : index
    %9 = vector.load %arg2[%c0_6, %c0_7, %c0_8, %c0_9] : memref<1x18x18x128xf32, #tpu.memory_space<vmem>>, vector<1x18x18x128xf32>
    %10 = vector.shape_cast %9 : vector<1x18x18x128xf32> to vector<18x18x128xf32>
    %11 = vector.broadcast %4 : vector<1x1x128xf32> to vector<18x18x128xf32>
    %12 = arith.mulf %10, %11 : vector<18x18x128xf32>
    %13 = vector.broadcast %6 : vector<1x1x128xf32> to vector<18x18x128xf32>
    %14 = arith.addf %12, %13 : vector<18x18x128xf32>
    %cst_10 = arith.constant 0.000000e+00 : f32
    %15 = vector.broadcast %cst_10 : f32 to vector<18x18x128xf32>
    %16 = arith.maximumf %14, %15 : vector<18x18x128xf32>
    %17 = tpu.iota {dimensions = array<i32: 0>} : vector<18x18x128xi32>
    %18 = tpu.iota {dimensions = array<i32: 1>} : vector<18x18x128xi32>
    %c1_i32 = arith.constant 1 : i32
    %19 = vector.broadcast %c1_i32 : i32 to vector<18x18x128xi32>
    %20 = arith.cmpi sge, %17, %19 : vector<18x18x128xi32>
    %c17_i32 = arith.constant 17 : i32
    %21 = vector.broadcast %c17_i32 : i32 to vector<18x18x128xi32>
    %22 = arith.cmpi slt, %17, %21 : vector<18x18x128xi32>
    %23 = arith.andi %20, %22 : vector<18x18x128xi1>
    %c1_i32_11 = arith.constant 1 : i32
    %24 = vector.broadcast %c1_i32_11 : i32 to vector<18x18x128xi32>
    %25 = arith.cmpi sge, %18, %24 : vector<18x18x128xi32>
    %26 = arith.andi %23, %25 : vector<18x18x128xi1>
    %c17_i32_12 = arith.constant 17 : i32
    %27 = vector.broadcast %c17_i32_12 : i32 to vector<18x18x128xi32>
    %28 = arith.cmpi slt, %18, %27 : vector<18x18x128xi32>
    %29 = arith.andi %26, %28 : vector<18x18x128xi1>
    %cst_13 = arith.constant 0.000000e+00 : f32
    %30 = vector.broadcast %cst_13 : f32 to vector<18x18x128xf32>
    %31 = arith.select %29, %16, %30 : vector<18x18x128xi1>, vector<18x18x128xf32>
    %32 = vector.extract_strided_slice %31 {offsets = [0, 0, 0], sizes = [16, 16, 128], strides = [1, 1, 1]} : vector<18x18x128xf32> to vector<16x16x128xf32>
    %33 = vector.extract_strided_slice %7 {offsets = [0, 0], sizes = [1, 128], strides = [1, 1]} : vector<9x128xf32> to vector<1x128xf32>
    %34 = vector.shape_cast %33 : vector<1x128xf32> to vector<128xf32>
    %35 = vector.shape_cast %34 : vector<128xf32> to vector<1x1x128xf32>
    %36 = vector.broadcast %35 : vector<1x1x128xf32> to vector<16x16x128xf32>
    %37 = arith.mulf %32, %36 : vector<16x16x128xf32>
    %38 = arith.addf %8, %37 : vector<16x16x128xf32>
    %39 = vector.extract_strided_slice %31 {offsets = [0, 1, 0], sizes = [16, 16, 128], strides = [1, 1, 1]} : vector<18x18x128xf32> to vector<16x16x128xf32>
    %40 = vector.extract_strided_slice %7 {offsets = [1, 0], sizes = [1, 128], strides = [1, 1]} : vector<9x128xf32> to vector<1x128xf32>
    %41 = vector.shape_cast %40 : vector<1x128xf32> to vector<128xf32>
    %42 = vector.shape_cast %41 : vector<128xf32> to vector<1x1x128xf32>
    %43 = vector.broadcast %42 : vector<1x1x128xf32> to vector<16x16x128xf32>
    %44 = arith.mulf %39, %43 : vector<16x16x128xf32>
    %45 = arith.addf %38, %44 : vector<16x16x128xf32>
    %46 = vector.extract_strided_slice %31 {offsets = [0, 2, 0], sizes = [16, 16, 128], strides = [1, 1, 1]} : vector<18x18x128xf32> to vector<16x16x128xf32>
    %47 = vector.extract_strided_slice %7 {offsets = [2, 0], sizes = [1, 128], strides = [1, 1]} : vector<9x128xf32> to vector<1x128xf32>
    %48 = vector.shape_cast %47 : vector<1x128xf32> to vector<128xf32>
    %49 = vector.shape_cast %48 : vector<128xf32> to vector<1x1x128xf32>
    %50 = vector.broadcast %49 : vector<1x1x128xf32> to vector<16x16x128xf32>
    %51 = arith.mulf %46, %50 : vector<16x16x128xf32>
    %52 = arith.addf %45, %51 : vector<16x16x128xf32>
    %53 = vector.extract_strided_slice %31 {offsets = [1, 0, 0], sizes = [16, 16, 128], strides = [1, 1, 1]} : vector<18x18x128xf32> to vector<16x16x128xf32>
    %54 = vector.extract_strided_slice %7 {offsets = [3, 0], sizes = [1, 128], strides = [1, 1]} : vector<9x128xf32> to vector<1x128xf32>
    %55 = vector.shape_cast %54 : vector<1x128xf32> to vector<128xf32>
    %56 = vector.shape_cast %55 : vector<128xf32> to vector<1x1x128xf32>
    %57 = vector.broadcast %56 : vector<1x1x128xf32> to vector<16x16x128xf32>
    %58 = arith.mulf %53, %57 : vector<16x16x128xf32>
    %59 = arith.addf %52, %58 : vector<16x16x128xf32>
    %60 = vector.extract_strided_slice %31 {offsets = [1, 1, 0], sizes = [16, 16, 128], strides = [1, 1, 1]} : vector<18x18x128xf32> to vector<16x16x128xf32>
    %61 = vector.extract_strided_slice %7 {offsets = [4, 0], sizes = [1, 128], strides = [1, 1]} : vector<9x128xf32> to vector<1x128xf32>
    %62 = vector.shape_cast %61 : vector<1x128xf32> to vector<128xf32>
    %63 = vector.shape_cast %62 : vector<128xf32> to vector<1x1x128xf32>
    %64 = vector.broadcast %63 : vector<1x1x128xf32> to vector<16x16x128xf32>
    %65 = arith.mulf %60, %64 : vector<16x16x128xf32>
    %66 = arith.addf %59, %65 : vector<16x16x128xf32>
    %67 = vector.extract_strided_slice %31 {offsets = [1, 2, 0], sizes = [16, 16, 128], strides = [1, 1, 1]} : vector<18x18x128xf32> to vector<16x16x128xf32>
    %68 = vector.extract_strided_slice %7 {offsets = [5, 0], sizes = [1, 128], strides = [1, 1]} : vector<9x128xf32> to vector<1x128xf32>
    %69 = vector.shape_cast %68 : vector<1x128xf32> to vector<128xf32>
    %70 = vector.shape_cast %69 : vector<128xf32> to vector<1x1x128xf32>
    %71 = vector.broadcast %70 : vector<1x1x128xf32> to vector<16x16x128xf32>
    %72 = arith.mulf %67, %71 : vector<16x16x128xf32>
    %73 = arith.addf %66, %72 : vector<16x16x128xf32>
    %74 = vector.extract_strided_slice %31 {offsets = [2, 0, 0], sizes = [16, 16, 128], strides = [1, 1, 1]} : vector<18x18x128xf32> to vector<16x16x128xf32>
    %75 = vector.extract_strided_slice %7 {offsets = [6, 0], sizes = [1, 128], strides = [1, 1]} : vector<9x128xf32> to vector<1x128xf32>
    %76 = vector.shape_cast %75 : vector<1x128xf32> to vector<128xf32>
    %77 = vector.shape_cast %76 : vector<128xf32> to vector<1x1x128xf32>
    %78 = vector.broadcast %77 : vector<1x1x128xf32> to vector<16x16x128xf32>
    %79 = arith.mulf %74, %78 : vector<16x16x128xf32>
    %80 = arith.addf %73, %79 : vector<16x16x128xf32>
    %81 = vector.extract_strided_slice %31 {offsets = [2, 1, 0], sizes = [16, 16, 128], strides = [1, 1, 1]} : vector<18x18x128xf32> to vector<16x16x128xf32>
    %82 = vector.extract_strided_slice %7 {offsets = [7, 0], sizes = [1, 128], strides = [1, 1]} : vector<9x128xf32> to vector<1x128xf32>
    %83 = vector.shape_cast %82 : vector<1x128xf32> to vector<128xf32>
    %84 = vector.shape_cast %83 : vector<128xf32> to vector<1x1x128xf32>
    %85 = vector.broadcast %84 : vector<1x1x128xf32> to vector<16x16x128xf32>
    %86 = arith.mulf %81, %85 : vector<16x16x128xf32>
    %87 = arith.addf %80, %86 : vector<16x16x128xf32>
    %88 = vector.extract_strided_slice %31 {offsets = [2, 2, 0], sizes = [16, 16, 128], strides = [1, 1, 1]} : vector<18x18x128xf32> to vector<16x16x128xf32>
    %89 = vector.extract_strided_slice %7 {offsets = [8, 0], sizes = [1, 128], strides = [1, 1]} : vector<9x128xf32> to vector<1x128xf32>
    %90 = vector.shape_cast %89 : vector<1x128xf32> to vector<128xf32>
    %91 = vector.shape_cast %90 : vector<128xf32> to vector<1x1x128xf32>
    %92 = vector.broadcast %91 : vector<1x1x128xf32> to vector<16x16x128xf32>
    %93 = arith.mulf %88, %92 : vector<16x16x128xf32>
    %94 = arith.addf %87, %93 : vector<16x16x128xf32>
    %95 = vector.shape_cast %94 : vector<16x16x128xf32> to vector<256x128xf32>
    %c0_14 = arith.constant 0 : index
    %c0_15 = arith.constant 0 : index
    %96 = vector.load %arg6[%c0_14, %c0_15] : memref<128x128xf32, #tpu.memory_space<vmem>>, vector<128x128xf32>
    %cst_16 = arith.constant dense<0.000000e+00> : vector<256x128xf32>
    %97 = tpu.matmul %95, %96, %cst_16 {dimension_numbers = #tpu.dot_dimension_numbers<[1], [0], [0], [1], [0, 0, 1, 1], [], []>} : vector<256x128xf32>, vector<128x128xf32>, vector<256x128xf32> -> vector<256x128xf32>
    %c0_17 = arith.constant 0 : index
    %c0_18 = arith.constant 0 : index
    %c0_19 = arith.constant 0 : index
    %98 = vector.load %arg7[%c0_17, %c0_18, %c0_19] : memref<1x256x128xf32, #tpu.memory_space<vmem>>, vector<1x256x128xf32>
    %99 = vector.shape_cast %98 : vector<1x256x128xf32> to vector<256x128xf32>
    %100 = vector.shape_cast %97 : vector<256x128xf32> to vector<1x256x128xf32>
    tpu.vector_store %arg7[%c0_17, %c0_18, %c0_19], %100 {strides = array<i32>} : memref<1x256x128xf32, #tpu.memory_space<vmem>>, vector<1x256x128xf32>,
    %c0_20 = arith.constant 0 : index
    %c0_21 = arith.constant 0 : index
    %c0_22 = arith.constant 0 : index
    %101 = vector.load %arg8[%c0_20, %c0_21, %c0_22] : memref<1x8x128xf32, #tpu.memory_space<vmem>>, vector<1x8x128xf32>
    %102 = vector.shape_cast %101 : vector<1x8x128xf32> to vector<8x128xf32>
    %cst_23 = arith.constant dense<0.000000e+00> : vector<128xf32>
    %103 = vector.multi_reduction <add>, %97, %cst_23 [0] : vector<256x128xf32> to vector<128xf32>
    %104 = vector.shape_cast %103 : vector<128xf32> to vector<1x128xf32>
    %105 = vector.broadcast %104 : vector<1x128xf32> to vector<8x128xf32>
    %106 = arith.addf %102, %105 : vector<8x128xf32>
    %c0_24 = arith.constant 0 : index
    %c0_25 = arith.constant 0 : index
    %c0_26 = arith.constant 0 : index
    %107 = vector.load %arg8[%c0_24, %c0_25, %c0_26] : memref<1x8x128xf32, #tpu.memory_space<vmem>>, vector<1x8x128xf32>
    %108 = vector.shape_cast %107 : vector<1x8x128xf32> to vector<8x128xf32>
    %109 = vector.shape_cast %106 : vector<8x128xf32> to vector<1x8x128xf32>
    tpu.vector_store %arg8[%c0_24, %c0_25, %c0_26], %109 {strides = array<i32>} : memref<1x8x128xf32, #tpu.memory_space<vmem>>, vector<1x8x128xf32>,
    %c0_27 = arith.constant 0 : index
    %c0_28 = arith.constant 0 : index
    %c0_29 = arith.constant 0 : index
    %110 = vector.load %arg9[%c0_27, %c0_28, %c0_29] : memref<1x8x128xf32, #tpu.memory_space<vmem>>, vector<1x8x128xf32>
    %111 = vector.shape_cast %110 : vector<1x8x128xf32> to vector<8x128xf32>
    %112 = arith.mulf %97, %97 : vector<256x128xf32>
    %cst_30 = arith.constant dense<0.000000e+00> : vector<128xf32>
    %113 = vector.multi_reduction <add>, %112, %cst_30 [0] : vector<256x128xf32> to vector<128xf32>
    %114 = vector.shape_cast %113 : vector<128xf32> to vector<1x128xf32>
    %115 = vector.broadcast %114 : vector<1x128xf32> to vector<8x128xf32>
    %116 = arith.addf %111, %115 : vector<8x128xf32>
    %c0_31 = arith.constant 0 : index
    %c0_32 = arith.constant 0 : index
    %c0_33 = arith.constant 0 : index
    %117 = vector.load %arg9[%c0_31, %c0_32, %c0_33] : memref<1x8x128xf32, #tpu.memory_space<vmem>>, vector<1x8x128xf32>
    %118 = vector.shape_cast %117 : vector<1x8x128xf32> to vector<8x128xf32>
    %119 = vector.shape_cast %116 : vector<8x128xf32> to vector<1x8x128xf32>
    tpu.vector_store %arg9[%c0_31, %c0_32, %c0_33], %119 {strides = array<i32>} : memref<1x8x128xf32, #tpu.memory_space<vmem>>, vector<1x8x128xf32>,
    return
  }
  func.func @transform_0(%arg0: i32, %arg1: i32) -> (i32, i32, i32, i32) {
    %c1_i32 = arith.constant 1 : i32
    %0 = arith.muli %arg0, %c1_i32 : i32
    %1 = arith.addi %0, %arg1 : i32
    %c0_i32 = arith.constant 0 : i32
    %c0_i32_0 = arith.constant 0 : i32
    %c0_i32_1 = arith.constant 0 : i32
    %c0_i32_2 = arith.constant 0 : i32
    return %1, %c0_i32, %c0_i32_0, %c0_i32_1 : i32, i32, i32, i32
  }
  func.func @transform_1(%arg0: i32, %arg1: i32) -> (i32, i32) {
    %c0_i32 = arith.constant 0 : i32
    %c0_i32_0 = arith.constant 0 : i32
    %c0_i32_1 = arith.constant 0 : i32
    return %c0_i32, %c0_i32_0 : i32, i32
  }
  func.func @transform_2(%arg0: i32, %arg1: i32) -> (i32, i32) {
    %c0_i32 = arith.constant 0 : i32
    %c0_i32_0 = arith.constant 0 : i32
    %c0_i32_1 = arith.constant 0 : i32
    return %c0_i32, %c0_i32_0 : i32, i32
  }
  func.func @transform_3(%arg0: i32, %arg1: i32) -> (i32, i32) {
    %c0_i32 = arith.constant 0 : i32
    %c0_i32_0 = arith.constant 0 : i32
    %c0_i32_1 = arith.constant 0 : i32
    return %c0_i32, %c0_i32_0 : i32, i32
  }
  func.func @transform_4(%arg0: i32, %arg1: i32) -> (i32, i32) {
    %c0_i32 = arith.constant 0 : i32
    %c0_i32_0 = arith.constant 0 : i32
    %c0_i32_1 = arith.constant 0 : i32
    return %c0_i32, %c0_i32_0 : i32, i32
  }
  func.func @transform_5(%arg0: i32, %arg1: i32) -> (i32, i32, i32) {
    %c1_i32 = arith.constant 1 : i32
    %0 = arith.muli %arg0, %c1_i32 : i32
    %1 = arith.addi %0, %arg1 : i32
    %c0_i32 = arith.constant 0 : i32
    %c0_i32_0 = arith.constant 0 : i32
    %c0_i32_1 = arith.constant 0 : i32
    return %1, %c0_i32, %c0_i32_0 : i32, i32, i32
  }
  func.func @transform_6(%arg0: i32, %arg1: i32) -> (i32, i32, i32) {
    %c0_i32 = arith.constant 0 : i32
    %c0_i32_0 = arith.constant 0 : i32
    %c0_i32_1 = arith.constant 0 : i32
    return %arg0, %c0_i32, %c0_i32_0 : i32, i32, i32
  }
  func.func @transform_7(%arg0: i32, %arg1: i32) -> (i32, i32, i32) {
    %c0_i32 = arith.constant 0 : i32
    %c0_i32_0 = arith.constant 0 : i32
    %c0_i32_1 = arith.constant 0 : i32
    return %arg0, %c0_i32, %c0_i32_0 : i32, i32, i32
  }
}

</mosaic_0001>

<bundles_post_ra>
// kernel: sep_conv_m.3
= control target key start
LH: loop header
LB: loop body
LE: loop exit
PB: predicated region body
PF: predicated region fallthrough
CT: control target
= control target key end

     0   :  { %s3110_s24 = smov 0   ;;  %s3112_s25 = smov 0   ;;  %s4714_s0 = inlined_call_operand.vmem [shape: f32[2,18,18,128], index: 0, kind: input, shape index: {}]   ;;  %s4715_s1 = inlined_call_operand.vmem [shape: f32[1,128], index: 1, kind: input, shape index: {}]   ;;  %s4716_s2 = inlined_call_operand.vmem [shape: f32[1,128], index: 2, kind: input, shape index: {}]   ;;  %s4717_s3 = inlined_call_operand.vmem [shape: f32[9,128], index: 3, kind: input, shape index: {}]   ;;  %s4718_s4 = inlined_call_operand.vmem [shape: f32[128,128], index: 4, kind: input, shape index: {}]   ;;  %s4719_s5 = inlined_call_operand.vmem [shape: f32[2,256,128], index: 5, kind: output, shape index: {0}]   ;;  %s4720_s6 = inlined_call_operand.vmem [shape: f32[2,8,128], index: 6, kind: output, shape index: {1}]   ;;  %s4721_s7 = inlined_call_operand.vmem [shape: f32[2,8,128], index: 7, kind: output, shape index: {2}]  }
   0x1   :  { %s3114_s26 = smov 0  }
   0x2 LB: > { %s30_s27 = sadd.s32 1, %s3064_s25  ;;  %p2826_p0 = scmp.ge.s32.totalorder %s3068_s26, 1  ;;  %s3068_s26 = sphi %s3114_s26, %s18_s26   ;;  %s3064_s25 = sphi %s3112_s25, %s4723_s25   ;;  %s3060_s24 = sphi %s3110_s24, %s4722_s24  }
   0x3   : > { %p32_p1 = scmp.ge.s32.totalorder %s30_s27, 2  ;;  %p260_p2 = scmp.lt.s32.totalorder %s3068_s26, 3 }
   0x5   : > { %s4725_s27 = smov (%p32_p1, %s30_s27), 0  ;;  %p261_p3 = pnand %p2826_p0, %p260_p2 }
   0x6   : > { %v2308_v0 = vld [vmem:[%s4718_s4] sm:$0xff] (!%p261_p3)  ;;  %v2309_v1 = vld [vmem:[%s4718_s4 + $0x8] sm:$0xff] (!%p261_p3)  ;;  %v2310_v2 = vld [vmem:[%s4718_s4 + $0x10] sm:$0xff] (!%p261_p3)  ;;  %p303_p4 = scmp.lt.s32.totalorder (!%p261_p3), %s3060_s24, 1  ;;  %v562_v3 = vlaneseq (!%p261_p3)  ;;  %vm806_vm1 = vcmask (!%p261_p3), 1046528   ;;  %vm1051_vm2 = vcmask (!%p261_p3), 1045504  }
   0x7   : > { %264 = sbr.rel (%p261_p3) target bundleno = 581 (0x245), region = 40  ;;  %v2966_v4 = vpack.c.bf16 (!%p261_p3), %v2309_v1, %v2308_v0  ;;  %v2311_v5 = vld [vmem:[%s4718_s4 + $0x18] sm:$0xff] (!%p261_p3)  ;;  %v2312_v6 = vld [vmem:[%s4718_s4 + $0x20] sm:$0xff] (!%p261_p3)  ;;  %v2313_v7 = vld [vmem:[%s4718_s4 + $0x28] sm:$0xff] (!%p261_p3) }
   0x8   : > { %v2970_v8 = vpack.c.bf16 (!%p261_p3), %v2311_v5, %v2310_v2  ;;  %v2314_v9 = vld [vmem:[%s4718_s4 + $0x30] sm:$0xff] (!%p261_p3)  ;;  %v2315_v10 = vld [vmem:[%s4718_s4 + $0x38] sm:$0xff] (!%p261_p3)  ;;  %v2316_v11 = vld [vmem:[%s4718_s4 + $0x40] sm:$0xff] (!%p261_p3)  ;;  %v3157_v12 = vshrl.u32 (!%p261_p3), %v562_v3, 7  ;;  %v2974_v16 = vpack.c.bf16 (!%p261_p3), %v2313_v7, %v2312_v6 }
   0x9   : > { %2967 = vmatprep.subr.bf16.mxu0 (!%p261_p3), %v2966_v4  ;;  %v2317_v13 = vld [vmem:[%s4718_s4 + $0x48] sm:$0xff] (!%p261_p3)  ;;  %v2318_v14 = vld [vmem:[%s4718_s4 + $0x50] sm:$0xff] (!%p261_p3)  ;;  %v2319_v15 = vld [vmem:[%s4718_s4 + $0x58] sm:$0xff] (!%p261_p3)  ;;  %2998 = vmatprep.subr.bf16.mxu1 (!%p261_p3), %v2966_v4  ;;  %v3168_v17 = vpack.c.bf16 (!%p261_p3), %v2315_v10, %v2314_v9 }
   0xa   : > { %2969 = vmatpush3.bf16.msra.mxu0 (!%p261_p3), %v2966_v4  ;;  %v2320_v18 = vld [vmem:[%s4718_s4 + $0x60] sm:$0xff] (!%p261_p3)  ;;  %v2321_v19 = vld [vmem:[%s4718_s4 + $0x68] sm:$0xff] (!%p261_p3)  ;;  %v640_v20 = vsub.s32 (!%p261_p3), 0, %v3157_v12  ;;  %3006 = vmatpush3.bf16.msra.mxu1 (!%p261_p3), %v2966_v4  ;;  %v3178_v21 = vpack.c.bf16 (!%p261_p3), %v2317_v13, %v2316_v11  ;;  %v3180_v22 = vpack.c.bf16 (!%p261_p3), %v2319_v15, %v2318_v14  ;;  %vm566_vm0 = vcmp.ge.s32.totalorder (!%p261_p3), %v3157_v12, 1 }
   0xb   : > { %2971 = vmatprep.subr.bf16.mxu0 (!%p261_p3), %v2970_v8  ;;  %v3185_v23 = vld [vmem:[%s4715_s1] ss:$0 sm:$0xff] (!%p261_p3)  ;;  %v708_v24 = vsub.s32 (!%p261_p3), 1, %v3157_v12  ;;  %2999 = vmatprep.subr.bf16.mxu1 (!%p261_p3), %v2970_v8  ;;  %v3189_v25 = vpack.c.bf16 (!%p261_p3), %v2321_v19, %v2320_v18  ;;  %v953_v28 = vsub.s32 (!%p261_p3), 2, %v3157_v12  ;;  %v1198_v29 = vsub.s32 (!%p261_p3), 3, %v3157_v12 }
   0xc   : > { %v3199_v26 = vld [vmem:[%s4716_s2] ss:$0 sm:$0xff] (!%p261_p3)  ;;  %v1266_v30 = vsub.s32 (!%p261_p3), 4, %v3157_v12  ;;  %v1510_v36 = vsub.s32 (!%p261_p3), 5, %v3157_v12  ;;  %v1754_v37 = vsub.s32 (!%p261_p3), 6, %v3157_v12  ;;  %v1822_v62 = vsub.s32 (!%p261_p3), 7, %v3157_v12 }
   0xd   : > { %v332_v27 = vld [vmem:[%s4717_s3] sm:$0xff] (!%p261_p3)  ;;  %v3247_v63 = vld [vmem:[%s4717_s3 + $0x8] ss:$0 sm:$0xff] (!%p261_p3) }
   0xe   : > { %s4727_s24 = smov (!%p303_p4, %s3060_s24), 1  ;;  %v3210_v34 = vrot.slane %v332_v27, %v640_v20  ;;  %v3212_v35 = vrot.slane %v332_v27, %v708_v24  ;;  %2973 = vmatpush3.bf16.msra.mxu0 %v2970_v8  ;;  %v3220_v42 = vrot.slane %v332_v27, %v953_v28  ;;  %v3225_v46 = vrot.slane %v332_v27, %v1198_v29  ;;  %v2322_v29 = vld [vmem:[%s4718_s4 + $0x70] sm:$0xff] }
   0xf   : > { %s3014_s14 = smul.u32 432, %s4727_s24  ;;  %2975 = vmatprep.subr.bf16.mxu0 %v2974_v16  ;;  %3007 = vmatpush3.bf16.msra.mxu1 %v2970_v8  ;;  %v3232_v53 = vrot.slane %v332_v27, %v1266_v30  ;;  %v3234_v54 = vrot.slane %v332_v27, %v1510_v36  ;;  %v3241_v61 = vrot.slane %v332_v27, %v1754_v37  ;;  %s2837_s22 = sshll.u32 %s4727_s24, 8 }
  0x10   : > { %v642_v44 = vmul.f32 0.0, %v3210_v34  ;;  %v710_v45 = vmul.f32 0.0, %v3212_v35  ;;  %v955_v50 = vmul.f32 0.0, %v3220_v42  ;;  %3000 = vmatprep.subr.bf16.mxu1 %v2974_v16  ;;  %v3278_v13 = vrot.slane %v332_v27, %v1822_v62  ;;  %s4308_s29 = scalar_lea.vmem %s4719_s5, %s2837_s22 }
  0x11   : > { %s3194_s19 = scalar_lea.vmem %s4714_s0, %s3014_s14 }
  0x12   : > { %v337_v31 = vld [vmem:[%s3194_s19 + $0x18] sm:$0xff]  ;;  %v338_v32 = vld [vmem:[%s3194_s19 + $0x20] sm:$0xff]  ;;  %v340_v33 = vld [vmem:[%s3194_s19 + $0x30] sm:$0xff]  ;;  %v807_v52 = vrot.slane %v710_v45, 1  ;;  %2977 = vmatpush3.bf16.msra.mxu0 %v2974_v16  ;;  %v1052_v58 = vrot.slane %v955_v50, 2 }
  0x13   : > { %v341_v38 = vld [vmem:[%s3194_s19 + $0x38] sm:$0xff]  ;;  %v397_v39 = vmul.f32 %v3185_v23, %v337_v31  ;;  %v398_v40 = vmul.f32 %v3185_v23, %v338_v32  ;;  %v400_v41 = vmul.f32 %v3185_v23, %v340_v33  ;;  %2979 = vmatprep.subr.bf16.mxu0 %v3168_v17  ;;  %3008 = vmatpush3.bf16.msra.mxu1 %v2974_v16  ;;  %v339_v8 = vld [vmem:[%s3194_s19 + $0x28] sm:$0x3]  ;;  %v342_v14 = vld [vmem:[%s3194_s19 + $0x40] sm:$0x3] }
  0x14   : > { %v401_v43 = vmul.f32 %v3185_v23, %v341_v38  ;;  %v919_v60 = vadd.f32 %v807_v52, %v642_v44  ;;  %3001 = vmatprep.subr.bf16.mxu1 %v3168_v17  ;;  %v399_v28 = vmul.f32 %v3185_v23, %v339_v8  ;;  %v402_v33 = vmul.f32 %v3185_v23, %v342_v14  ;;  %v343_v45 = vld [vmem:[%s3194_s19 + $0x48] sm:$0xff] }
  0x15   : > { %v457_v47 = vadd.f32 %v3199_v26, %v397_v39  ;;  %v458_v48 = vadd.f32 %v3199_v26, %v398_v40  ;;  %v460_v49 = vadd.f32 %v3199_v26, %v400_v41 }
  0x16   : > { %v461_v51 = vadd.f32 %v3199_v26, %v401_v43  ;;  %v1164_v4 = vadd.f32 %v1052_v58, %v919_v60  ;;  %2981 = vmatpush3.bf16.msra.mxu0 %v3168_v17  ;;  %v459_v40 = vadd.f32 %v3199_v26, %v399_v28  ;;  %v462_v41 = vadd.f32 %v3199_v26, %v402_v33 }
  0x17   : > { %v511_v55 = vmax.f32 %v457_v47, 0.0  ;;  %v3236_v56 = vmax.f32 %v458_v48, 0.0  ;;  %v514_v57 = vmax.f32 %v460_v49, 0.0  ;;  %2983 = vmatprep.subr.bf16.mxu0 %v3178_v21  ;;  %3009 = vmatpush3.bf16.msra.mxu1 %v3168_v17  ;;  %v2323_v17 = vld [vmem:[%s4718_s4 + $0x78] sm:$0xff]  ;;  %v3317_v43 = vadd.s32 16, %v3157_v12  ;;  %v344_v47 = vld [vmem:[%s3194_s19 + $0x50] sm:$0xff] }
  0x18   : > { %v3239_v59 = vmax.f32 %v461_v51, 0.0  ;;  %3002 = vmatprep.subr.bf16.mxu1 %v3178_v21  ;;  %v2994_v48 = vpack.c.bf16 %v2323_v17, %v2322_v29  ;;  %v513_v52 = vmax.f32 %v459_v40, 0.0  ;;  %v403_v60 = vmul.f32 %v3185_v23, %v343_v45 }
  0x19   : > { %v3251_v0 = vsel %vm566_vm0, %v511_v55, 0.0  ;;  %v3255_v1 = vsel %vm566_vm0, %v514_v57, 0.0  ;;  %v3259_v2 = vmul.f32 %v3232_v53, %v3236_v56  ;;  %v3263_v3 = vmul.f32 %v3234_v54, %v3236_v56 }
  0x1a   : > { %v1200_v5 = vmul.f32 %v3225_v46, %v3251_v0  ;;  %v1268_v6 = vmul.f32 %v3232_v53, %v3251_v0  ;;  %v1512_v7 = vmul.f32 %v3234_v54, %v3251_v0  ;;  %v1756_v11 = vmul.f32 %v3241_v61, %v3255_v1  ;;  %2985 = vmatpush3.bf16.msra.mxu0 %v3178_v21 }
  0x1b   : > { %v1365_v9 = vrot.slane %v3259_v2, 1  ;;  %v1609_v10 = vrot.slane %v3263_v3, 2  ;;  %v2068_v19 = vmul.f32 %v3247_v63, %v3255_v1  ;;  %v1824_v20 = vmul.f32 %v3278_v13, %v3255_v1  ;;  %2987 = vmatprep.subr.bf16.mxu0 %v3180_v22  ;;  %3010 = vmatpush3.bf16.msra.mxu1 %v3178_v21 }
  0x1c   : > { %v1232_v15 = vadd.f32 %v1200_v5, %v1164_v4  ;;  %v1364_v16 = vrot.slane %v1268_v6, 1  ;;  %v1608_v18 = vrot.slane %v1512_v7, 2  ;;  %v3289_v24 = vmul.f32 %v3278_v13, %v3239_v59  ;;  %3003 = vmatprep.subr.bf16.mxu1 %v3180_v22 }
  0x1d   : > { %v3293_v27 = vmul.f32 %v3247_v63, %v3239_v59  ;;  %v2164_v32 = vrot.slane %v2068_v19, 2  ;;  %v1920_v37 = vrot.slane %v1824_v20, 1  ;;  %v1201_v44 = vmul.f32 %v3225_v46, %v3236_v56 }
  0x1e   : > { %v1366_v30 = vsel %vm806_vm1, %v1364_v16, %v1365_v9  ;;  %v1610_v31 = vsel %vm1051_vm2, %v1608_v18, %v1609_v10  ;;  %v1921_v38 = vrot.slane %v3289_v24, 1  ;;  %v516_v55 = vmax.f32 %v462_v41, 0.0  ;;  %2989 = vmatpush3.bf16.msra.mxu0 %v3180_v22 }
  0x1f   : > { %v1476_v36 = vadd.f32 %v1366_v30, %v1232_v15  ;;  %v2165_v39 = vrot.slane %v3293_v27, 2  ;;  %vm577_vm3 = vcmp.lt.s32.totalorder %v3317_v43, 17  ;;  %v1233_v57 = vadd.f32 %v1201_v44, %v1164_v4  ;;  %2991 = vmatprep.subr.bf16.mxu0 %v3189_v25  ;;  %3011 = vmatpush3.bf16.msra.mxu1 %v3180_v22 }
  0x20   : > { %v1922_v50 = vsel %vm806_vm1, %v1920_v37, %v1921_v38  ;;  %v404_v21 = vmul.f32 %v3185_v23, %v344_v47  ;;  %v644_v62 = vmul.f32 %v3210_v34, %v3251_v0  ;;  %v3336_v5 = vsel %vm577_vm3, %v513_v52, 0.0  ;;  %3004 = vmatprep.subr.bf16.mxu1 %v3189_v25 }
  0x21   : > { %v1720_v49 = vadd.f32 %v1610_v31, %v1476_v36  ;;  %v2166_v51 = vsel %vm1051_vm2, %v2164_v32, %v2165_v39  ;;  %v3340_v6 = vsel %vm577_vm3, %v516_v55, 0.0  ;;  %v713_v4 = vmul.f32 %v3212_v35, %v3251_v0 }
  0x22   : > { %v3346_v7 = vmul.f32 %v3212_v35, %v3236_v56  ;;  %v1514_v14 = vmul.f32 %v3234_v54, %v3336_v5  ;;  %v1826_v15 = vmul.f32 %v3278_v13, %v3340_v6  ;;  %v2070_v16 = vmul.f32 %v3247_v63, %v3340_v6  ;;  %2993 = vmatpush3.bf16.msra.mxu0 %v3189_v25 }
  0x23   : > { %v1788_v58 = vadd.f32 %v1756_v11, %v1720_v49  ;;  %v1270_v11 = vmul.f32 %v3232_v53, %v3336_v5  ;;  %v463_v18 = vadd.f32 %v3199_v26, %v403_v60  ;;  %v464_v19 = vadd.f32 %v3199_v26, %v404_v21  ;;  %2995 = vmatprep.subr.bf16.mxu0 %v2994_v48  ;;  %v345_v60 = vld [vmem:[%s3194_s19 + $0x58] sm:$0x3] }
  0x24   : > { %v812_v22 = vrot.slane %v713_v4, 1  ;;  %v1611_v27 = vrot.slane %v1514_v14, 2  ;;  %v1923_v28 = vrot.slane %v1826_v15, 1  ;;  %v1757_v29 = vmul.f32 %v3241_v61, %v3239_v59  ;;  %3012 = vmatpush3.bf16.msra.mxu1 %v3189_v25 }
  0x25   : > { %v2032_v8 = vadd.f32 %v1922_v50, %v1788_v58  ;;  %v1367_v24 = vrot.slane %v1270_v11, 1  ;;  %v2167_v17 = vrot.slane %v2070_v16, 2  ;;  %v517_v30 = vmax.f32 %v463_v18, 0.0  ;;  %3005 = vmatprep.subr.bf16.mxu1 %v2994_v48 }
  0x26   : > { %v813_v31 = vrot.slane %v3346_v7, 1  ;;  %v1612_v33 = vsel %vm1051_vm2, %v1609_v10, %v1611_v27  ;;  %v3371_v36 = vmax.f32 %v464_v19, 0.0  ;;  %v958_v37 = vmul.f32 %v3220_v42, %v3251_v0  ;;  %2997 = vmatpush3.bf16.msra.mxu0 %v2994_v48 }
  0x27   : > { %v2276_v20 = vadd.f32 %v2166_v51, %v2032_v8  ;;  %v1368_v32 = vsel %vm806_vm1, %v1365_v9, %v1367_v24  ;;  %v1924_v41 = vsel %vm806_vm1, %v1921_v38, %v1923_v28  ;;  %v2168_v44 = vsel %vm1051_vm2, %v2165_v39, %v2167_v17 }
  0x28   : > { %v1477_v40 = vadd.f32 %v1368_v32, %v1233_v57  ;;  %v814_v25 = vsel %vm806_vm1, %v812_v22, %v813_v31  ;;  %v3382_v2 = vsel %vm566_vm0, %v517_v30, 0.0  ;;  %v959_v0 = vmul.f32 %v3220_v42, %v3236_v56  ;;  %3013 = vmatpush3.bf16.msra.mxu1 %v2994_v48 }
  0x29   : > { %2918 = vmatprep.mubr.f32.mxu0 %v2276_v20  ;;  %v921_v3 = vadd.f32 %v814_v25, %v644_v62  ;;  %v1057_v9 = vrot.slane %v958_v37, 2  ;;  %v1271_v38 = vmul.f32 %v3232_v53, %v3255_v1  ;;  %v1272_v39 = vmul.f32 %v3232_v53, %v3239_v59 }
  0x2a   : > { %v1721_v10 = vadd.f32 %v1612_v33, %v1477_v40  ;;  %v1515_v45 = vmul.f32 %v3234_v54, %v3255_v1  ;;  %v1058_v47 = vrot.slane %v959_v0, 2  ;;  %v1202_v49 = vmul.f32 %v3225_v46, %v3255_v1 }
  0x2b   : > { %v1516_v50 = vmul.f32 %v3234_v54, %v3239_v59  ;;  %v1827_v51 = vmul.f32 %v3278_v13, %v3382_v2  ;;  %v1369_v55 = vrot.slane %v1271_v38, 1  ;;  %v1370_v57 = vrot.slane %v1272_v39, 1 }
  0x2c   : > { %v1789_v52 = vadd.f32 %v1757_v29, %v1721_v10  ;;  %v1613_v58 = vrot.slane %v1515_v45, 2  ;;  %v1059_v21 = vsel %vm1051_vm2, %v1057_v9, %v1058_v47  ;;  %v1758_v48 = vmul.f32 %v3241_v61, %v3382_v2  ;;  %v347_v45 = vld [vmem:[%s3194_s19 + $0x68] sm:$0xff] }
  0x2d   : > { %v1614_v62 = vrot.slane %v1516_v50, 2  ;;  %v1828_v4 = vmul.f32 %v3278_v13, %v3371_v36  ;;  %v1166_v11 = vadd.f32 %v1059_v21, %v921_v3  ;;  %v1925_v14 = vrot.slane %v1827_v51, 1 }
  0x2e   : > { %v2033_v8 = vadd.f32 %v1924_v41, %v1789_v52  ;;  %v2071_v15 = vmul.f32 %v3247_v63, %v3382_v2  ;;  %v1371_v16 = vsel %vm806_vm1, %v1369_v55, %v1370_v57  ;;  %v2072_v19 = vmul.f32 %v3247_v63, %v3371_v36 }
  0x2f   : > { %v1926_v18 = vrot.slane %v1828_v4, 1  ;;  %v405_v22 = vmul.f32 %v3185_v23, %v345_v60  ;;  %v1234_v24 = vadd.f32 %v1202_v49, %v1166_v11  ;;  %v1615_v27 = vsel %vm1051_vm2, %v1613_v58, %v1614_v62 }
  0x30   : > { %v2277_v20 = vadd.f32 %v2168_v44, %v2033_v8  ;;  %v2169_v28 = vrot.slane %v2071_v15, 2  ;;  %v2170_v29 = vrot.slane %v2072_v19, 2  ;;  %v645_v30 = vmul.f32 %v3210_v34, %v3236_v56  ;;  %v346_v44 = vld [vmem:[%s3194_s19 + $0x60] sm:$0xff] }
  0x31   : > { %v465_v17 = vadd.f32 %v3199_v26, %v405_v22  ;;  %v715_v32 = vmul.f32 %v3212_v35, %v3336_v5  ;;  %v1478_v33 = vadd.f32 %v1371_v16, %v1234_v24  ;;  %v1927_v37 = vsel %vm806_vm1, %v1925_v14, %v1926_v18 }
  0x32   : > { %2919 = vmatmul.mubr.f32.vlgmr.msra.gmra.mrb[0].mxu0 %v2277_v20  ;;  %v960_v40 = vmul.f32 %v3220_v42, %v3336_v5  ;;  %v1273_v41 = vmul.f32 %v3232_v53, %v3340_v6  ;;  %v1203_v56 = vmul.f32 %v3225_v46, %v3239_v59  ;;  %v1517_v0 = vmul.f32 %v3234_v54, %v3340_v6 }
  0x33   : > { %v519_v25 = vmax.f32 %v465_v17, 0.0  ;;  %v815_v3 = vrot.slane %v715_v32, 1  ;;  %v1722_v9 = vadd.f32 %v1615_v27, %v1478_v33  ;;  %v2171_v10 = vsel %vm1051_vm2, %v2169_v28, %v2170_v29 }
  0x34   : > { %v1060_v38 = vrot.slane %v960_v40, 2  ;;  %v1372_v39 = vrot.slane %v1273_v41, 1  ;;  %v1616_v49 = vrot.slane %v1517_v0, 2  ;;  %v1759_v50 = vmul.f32 %v3241_v61, %v3371_v36 }
  0x35   : > { %v816_v5 = vsel %vm806_vm1, %v813_v31, %v815_v3  ;;  %v406_v51 = vmul.f32 %v3185_v23, %v346_v44  ;;  %v1790_v52 = vadd.f32 %v1758_v48, %v1722_v9  ;;  %v3436_v55 = vsel %vm577_vm3, %v519_v25, 0.0 }
  0x36   : > { %v922_v58 = vadd.f32 %v816_v5, %v645_v30  ;;  %v1061_v60 = vsel %vm1051_vm2, %v1058_v47, %v1060_v38  ;;  %v1373_v21 = vsel %vm806_vm1, %v1370_v57, %v1372_v39  ;;  %v1829_v7 = vmul.f32 %v3278_v13, %v3436_v55 }
  0x37   : > { %v2073_v31 = vmul.f32 %v3247_v63, %v3436_v55  ;;  %v407_v4 = vmul.f32 %v3185_v23, %v347_v45  ;;  %v2034_v8 = vadd.f32 %v1927_v37, %v1790_v52  ;;  %v1617_v48 = vsel %vm1051_vm2, %v1614_v62, %v1616_v49  ;;  %v348_v49 = vld [vmem:[%s3194_s19 + $0x70] sm:$0x3] }
  0x38   : > { %v1167_v11 = vadd.f32 %v1061_v60, %v922_v58  ;;  %v466_v14 = vadd.f32 %v3199_v26, %v406_v51  ;;  %v1928_v15 = vrot.slane %v1829_v7, 1  ;;  %v716_v57 = vmul.f32 %v3212_v35, %v3255_v1 }
  0x39   : > { %v2172_v16 = vrot.slane %v2073_v31, 2  ;;  %v467_v47 = vadd.f32 %v3199_v26, %v407_v4  ;;  %v2278_v19 = vadd.f32 %v2171_v10, %v2034_v8  ;;  %v3452_v24 = vmul.f32 %v3212_v35, %v3239_v59 }
  0x3a   : > { %v1235_v22 = vadd.f32 %v1203_v56, %v1167_v11  ;;  %v520_v20 = vmax.f32 %v466_v14, 0.0  ;;  %v1929_v27 = vsel %vm806_vm1, %v1926_v18, %v1928_v15  ;;  %v646_v28 = vmul.f32 %v3210_v34, %v3255_v1 }
  0x3b   : > { %v2173_v62 = vsel %vm1051_vm2, %v2170_v29, %v2172_v16  ;;  %v817_v17 = vrot.slane %v716_v57, 1  ;;  %2921 = vmatprep.mubr.f32.mxu0 %v2278_v19  ;;  %v3458_v32 = vmax.f32 %v467_v47, 0.0  ;;  %v818_v33 = vrot.slane %v3452_v24, 1 }
  0x3c   : > { %v1479_v30 = vadd.f32 %v1373_v21, %v1235_v22  ;;  %v961_v37 = vmul.f32 %v3220_v42, %v3255_v1  ;;  %v3465_v40 = vsel %vm566_vm0, %v520_v20, 0.0  ;;  %v962_v18 = vmul.f32 %v3220_v42, %v3239_v59 }
  0x3d   : > { %v1274_v29 = vmul.f32 %v3232_v53, %v3382_v2  ;;  %v1275_v41 = vmul.f32 %v3232_v53, %v3371_v36  ;;  %v819_v25 = vsel %vm806_vm1, %v817_v17, %v818_v33  ;;  %v1518_v1 = vmul.f32 %v3234_v54, %v3382_v2  ;;  %v349_v17 = vld [vmem:[%s3194_s19 + $0x78] sm:$0xff] }
  0x3e   : > { %v1723_v44 = vadd.f32 %v1617_v48, %v1479_v30  ;;  %v1062_v3 = vrot.slane %v961_v37, 2  ;;  %v923_v56 = vadd.f32 %v819_v25, %v646_v28  ;;  %v1063_v0 = vrot.slane %v962_v18, 2 }
  0x3f   : > { %v1374_v9 = vrot.slane %v1274_v29, 1  ;;  %v1375_v10 = vrot.slane %v1275_v41, 1  ;;  %v1204_v39 = vmul.f32 %v3225_v46, %v3382_v2  ;;  %v1519_v45 = vmul.f32 %v3234_v54, %v3371_v36 }
  0x40   : > { %v1791_v38 = vadd.f32 %v1759_v50, %v1723_v44  ;;  %v1618_v5 = vrot.slane %v1518_v1, 2  ;;  %v1064_v51 = vsel %vm1051_vm2, %v1062_v3, %v1063_v0  ;;  %v1830_v58 = vmul.f32 %v3278_v13, %v3465_v40 }
  0x41   : > { %v1376_v52 = vsel %vm806_vm1, %v1374_v9, %v1375_v10  ;;  %v1831_v60 = vmul.f32 %v3278_v13, %v3458_v32  ;;  %v1168_v50 = vadd.f32 %v1064_v51, %v923_v56  ;;  %v1619_v7 = vrot.slane %v1519_v45, 2  ;;  %v350_v56 = vld [vmem:[%s3194_s19 + $0x80] sm:$0xff] }
  0x42   : > { %v2035_v21 = vadd.f32 %v1929_v27, %v1791_v38  ;;  %v2074_v31 = vmul.f32 %v3247_v63, %v3465_v40  ;;  %v1930_v4 = vrot.slane %v1830_v58, 1  ;;  %v2075_v11 = vmul.f32 %v3247_v63, %v3458_v32 }
  0x43   : > { %v1931_v8 = vrot.slane %v1831_v60, 1  ;;  %v408_v48 = vmul.f32 %v3185_v23, %v348_v49  ;;  %v1236_v15 = vadd.f32 %v1204_v39, %v1168_v50  ;;  %v1760_v16 = vmul.f32 %v3241_v61, %v3465_v40 }
  0x44   : > { %v2279_v14 = vadd.f32 %v2173_v62, %v2035_v21  ;;  %v2174_v47 = vrot.slane %v2074_v31, 2  ;;  %v1620_v57 = vsel %vm1051_vm2, %v1618_v5, %v1619_v7  ;;  %v2175_v22 = vrot.slane %v2075_v11, 2 }
  0x45   : > { %v1932_v19 = vsel %vm806_vm1, %v1930_v4, %v1931_v8  ;;  %v468_v20 = vadd.f32 %v3199_v26, %v408_v48  ;;  %v1480_v24 = vadd.f32 %v1376_v52, %v1236_v15  ;;  %v647_v27 = vmul.f32 %v3210_v34, %v3239_v59 }
  0x46   : > { %2922 = vmatmul.mubr.f32.gmra.mrb[2].mxu0 %v2279_v14  ;;  %v718_v62 = vmul.f32 %v3212_v35, %v3340_v6  ;;  %v963_v28 = vmul.f32 %v3220_v42, %v3340_v6  ;;  %v1205_v37 = vmul.f32 %v3225_v46, %v3371_v36  ;;  %v1276_v18 = vmul.f32 %v3232_v53, %v3436_v55 }
  0x47   : > { %v522_v30 = vmax.f32 %v468_v20, 0.0  ;;  %v1520_v29 = vmul.f32 %v3234_v54, %v3436_v55  ;;  %v1724_v41 = vadd.f32 %v1620_v57, %v1480_v24  ;;  %v2176_v59 = vsel %vm1051_vm2, %v2174_v47, %v2175_v22 }
  0x48   : > { %v820_v44 = vrot.slane %v718_v62, 1  ;;  %v1065_v25 = vrot.slane %v963_v28, 2  ;;  %v1377_v6 = vrot.slane %v1276_v18, 1  ;;  %v409_v9 = vmul.f32 %v3185_v23, %v349_v17 }
  0x49   : > { %v3513_v3 = vsel %vm577_vm3, %v522_v30, 0.0  ;;  %v1621_v1 = vrot.slane %v1520_v29, 2  ;;  %v1792_v38 = vadd.f32 %v1760_v16, %v1724_v41  ;;  %v1761_v52 = vmul.f32 %v3241_v61, %v3458_v32 }
  0x4a   : > { %v821_v39 = vsel %vm806_vm1, %v818_v33, %v820_v44  ;;  %v1066_v45 = vsel %vm1051_vm2, %v1063_v0, %v1065_v25  ;;  %v1832_v5 = vmul.f32 %v3278_v13, %v3513_v3  ;;  %v1378_v51 = vsel %vm806_vm1, %v1375_v10, %v1377_v6 }
  0x4b   : > { %v924_v49 = vadd.f32 %v821_v39, %v647_v27  ;;  %v2076_v58 = vmul.f32 %v3247_v63, %v3513_v3  ;;  %v2036_v60 = vadd.f32 %v1932_v19, %v1792_v38  ;;  %v410_v50 = vmul.f32 %v3185_v23, %v350_v56 }
  0x4c   : > { %v1933_v21 = vrot.slane %v1832_v5, 1  ;;  %v469_v33 = vadd.f32 %v3199_v26, %v409_v9  ;;  %v1622_v0 = vsel %vm1051_vm2, %v1619_v7, %v1621_v1  ;;  %v719_v11 = vmul.f32 %v3212_v35, %v3382_v2 }
  0x4d   : > { %v1169_v31 = vadd.f32 %v1066_v45, %v924_v49  ;;  %v2177_v4 = vrot.slane %v2076_v58, 2  ;;  %v2280_v10 = vadd.f32 %v2176_v59, %v2036_v60  ;;  %v470_v48 = vadd.f32 %v3199_v26, %v410_v50  ;;  %v351_v45 = vld [vmem:[%s3194_s19 + $0x88] sm:$0x3] }
  0x4e   : > { %v523_v14 = vmax.f32 %v469_v33, 0.0  ;;  %v648_v15 = vmul.f32 %v3210_v34, %v3382_v2  ;;  %v1934_v47 = vsel %vm806_vm1, %v1931_v8, %v1933_v21  ;;  %v720_v57 = vmul.f32 %v3212_v35, %v3371_v36 }
  0x4f   : > { %v1237_v16 = vadd.f32 %v1205_v37, %v1169_v31  ;;  %v822_v19 = vrot.slane %v719_v11, 1  ;;  %2924 = vmatprep.mubr.f32.mxu0 %v2280_v10  ;;  %v2178_v7 = vsel %vm1051_vm2, %v2175_v22, %v2177_v4  ;;  %v3538_v20 = vmax.f32 %v470_v48, 0.0 }
  0x50   : > { %v964_v24 = vmul.f32 %v3220_v42, %v3382_v2  ;;  %v965_v27 = vmul.f32 %v3220_v42, %v3371_v36  ;;  %v3546_v28 = vsel %vm566_vm0, %v523_v14, 0.0  ;;  %v823_v8 = vrot.slane %v720_v57, 1 }
  0x51   : > { %v1481_v62 = vadd.f32 %v1378_v51, %v1237_v16  ;;  %v1277_v17 = vmul.f32 %v3232_v53, %v3465_v40  ;;  %v3552_v37 = vmul.f32 %v3232_v53, %v3458_v32  ;;  %v1521_v2 = vmul.f32 %v3234_v54, %v3465_v40 }
  0x52   : > { %v1067_v30 = vrot.slane %v964_v24, 2  ;;  %v1068_v22 = vrot.slane %v965_v27, 2  ;;  %v824_v29 = vsel %vm806_vm1, %v822_v19, %v823_v8  ;;  %v1522_v59 = vmul.f32 %v3234_v54, %v3458_v32  ;;  %v352_v19 = vld [vmem:[%s3194_s19 + $0x90] sm:$0xff] }
  0x53   : > { %v1725_v18 = vadd.f32 %v1622_v0, %v1481_v62  ;;  %v1379_v41 = vrot.slane %v1277_v17, 1  ;;  %v925_v44 = vadd.f32 %v824_v29, %v648_v15  ;;  %v1206_v6 = vmul.f32 %v3225_v46, %v3465_v40  ;;  %v353_v29 = vld [vmem:[%s3194_s19 + $0x98] sm:$0xff] }
  0x54   : > { %v1069_v25 = vsel %vm1051_vm2, %v1067_v30, %v1068_v22  ;;  %v1380_v1 = vrot.slane %v3552_v37, 1  ;;  %v1623_v9 = vrot.slane %v1521_v2, 2  ;;  %v1624_v38 = vrot.slane %v1522_v59, 2 }
  0x55   : > { %v1793_v56 = vadd.f32 %v1761_v52, %v1725_v18  ;;  %v1833_v39 = vmul.f32 %v3278_v13, %v3546_v28  ;;  %v1170_v5 = vadd.f32 %v1069_v25, %v925_v44  ;;  %v1762_v49 = vmul.f32 %v3241_v61, %v3546_v28 }
  0x56   : > { %v1834_v51 = vmul.f32 %v3278_v13, %v3538_v20  ;;  %v2077_v58 = vmul.f32 %v3247_v63, %v3546_v28  ;;  %v1381_v52 = vsel %vm806_vm1, %v1379_v41, %v1380_v1  ;;  %v2078_v50 = vmul.f32 %v3247_v63, %v3538_v20 }
  0x57   : > { %v2037_v60 = vadd.f32 %v1934_v47, %v1793_v56  ;;  %v1935_v21 = vrot.slane %v1833_v39, 1  ;;  %v1238_v33 = vadd.f32 %v1206_v6, %v1170_v5  ;;  %v411_v4 = vmul.f32 %v3185_v23, %v351_v45 }
  0x58   : > { %v1936_v31 = vrot.slane %v1834_v51, 1  ;;  %v2179_v0 = vrot.slane %v2077_v58, 2  ;;  %v1625_v10 = vsel %vm1051_vm2, %v1623_v9, %v1624_v38  ;;  %v2180_v48 = vrot.slane %v2078_v50, 2 }
  0x59   : > { %v2281_v11 = vadd.f32 %v2178_v7, %v2037_v60  ;;  %v721_v14 = vmul.f32 %v3212_v35, %v3436_v55  ;;  %v1482_v15 = vadd.f32 %v1381_v52, %v1238_v33  ;;  %v471_v16 = vadd.f32 %v3199_v26, %v411_v4 }
  0x5a   : > { %v649_v47 = vmul.f32 %v3210_v34, %v3371_v36  ;;  %v966_v57 = vmul.f32 %v3220_v42, %v3436_v55  ;;  %v1937_v7 = vsel %vm806_vm1, %v1935_v21, %v1936_v31  ;;  %v2181_v24 = vsel %vm1051_vm2, %v2179_v0, %v2180_v48 }
  0x5b   : > { %2925 = vmatmul.mubr.f32.gmra.mrb[4].mxu0 %v2281_v11  ;;  %v825_v27 = vrot.slane %v721_v14, 1  ;;  %v1279_v62 = vmul.f32 %v3232_v53, %v3513_v3  ;;  %v1726_v17 = vadd.f32 %v1625_v10, %v1482_v15  ;;  %v525_v30 = vmax.f32 %v471_v16, 0.0 }
  0x5c   : > { %v1070_v37 = vrot.slane %v966_v57, 2  ;;  %v1523_v2 = vmul.f32 %v3234_v54, %v3513_v3  ;;  %v1207_v55 = vmul.f32 %v3225_v46, %v3458_v32  ;;  %v412_v41 = vmul.f32 %v3185_v23, %v352_v19 }
  0x5d   : > { %v826_v36 = vsel %vm806_vm1, %v823_v8, %v825_v27  ;;  %v1382_v18 = vrot.slane %v1279_v62, 1  ;;  %v1794_v59 = vadd.f32 %v1762_v49, %v1726_v17  ;;  %v3598_v44 = vsel %vm577_vm3, %v525_v30, 0.0 }
  0x5e   : > { %v926_v25 = vadd.f32 %v826_v36, %v649_v47  ;;  %v1071_v6 = vsel %vm1051_vm2, %v1068_v22, %v1070_v37  ;;  %v1626_v56 = vrot.slane %v1523_v2, 2  ;;  %v1763_v9 = vmul.f32 %v3241_v61, %v3538_v20 }
  0x5f   : > { %v1835_v8 = vmul.f32 %v3278_v13, %v3598_v44  ;;  %v2079_v39 = vmul.f32 %v3247_v63, %v3598_v44  ;;  %v2038_v45 = vadd.f32 %v1937_v7, %v1794_v59  ;;  %v413_v49 = vmul.f32 %v3185_v23, %v353_v29 }
  0x60   : > { %v1171_v5 = vadd.f32 %v1071_v6, %v926_v25  ;;  %v472_v51 = vadd.f32 %v3199_v26, %v412_v41  ;;  %v1383_v58 = vsel %vm806_vm1, %v1380_v1, %v1382_v18  ;;  %v1627_v22 = vsel %vm1051_vm2, %v1624_v38, %v1626_v56  ;;  %v354_v25 = vld [vmem:[%s3194_s19 + $0xa0] sm:$0x3] }
  0x61   : > { %v1938_v60 = vrot.slane %v1835_v8, 1  ;;  %v2182_v52 = vrot.slane %v2079_v39, 2  ;;  %v2282_v21 = vadd.f32 %v2181_v24, %v2038_v45  ;;  %v473_v33 = vadd.f32 %v3199_v26, %v413_v49 }
  0x62   : > { %v1239_v50 = vadd.f32 %v1207_v55, %v1171_v5  ;;  %v650_v0 = vmul.f32 %v3210_v34, %v3465_v40  ;;  %v526_v11 = vmax.f32 %v472_v51, 0.0  ;;  %v722_v10 = vmul.f32 %v3212_v35, %v3465_v40 }
  0x63   : > { %v1939_v4 = vsel %vm806_vm1, %v1936_v31, %v1938_v60  ;;  %v3619_v1 = vmul.f32 %v3212_v35, %v3458_v32  ;;  %2927 = vmatprep.mubr.f32.mxu0 %v2282_v21  ;;  %v2183_v14 = vsel %vm1051_vm2, %v2180_v48, %v2182_v52  ;;  %v3622_v15 = vmax.f32 %v473_v33, 0.0 }
  0x64   : > { %v1483_v38 = vadd.f32 %v1383_v58, %v1239_v50  ;;  %v967_v16 = vmul.f32 %v3220_v42, %v3465_v40  ;;  %v827_v47 = vrot.slane %v722_v10, 1  ;;  %v968_v57 = vmul.f32 %v3220_v42, %v3458_v32 }
  0x65   : > { %v828_v31 = vrot.slane %v3619_v1, 1  ;;  %v1208_v19 = vmul.f32 %v3225_v46, %v3546_v28  ;;  %v1280_v48 = vmul.f32 %v3232_v53, %v3546_v28  ;;  %v3635_v27 = vmul.f32 %v3232_v53, %v3538_v20  ;;  %v355_v1 = vld [vmem:[%s3194_s19 + $0xa8] sm:$0xff] }
  0x66   : > { %v1727_v7 = vadd.f32 %v1627_v22, %v1483_v38  ;;  %v1072_v24 = vrot.slane %v967_v16, 2  ;;  %v1073_v62 = vrot.slane %v968_v57, 2  ;;  %v1524_v17 = vmul.f32 %v3234_v54, %v3546_v28 }
  0x67   : > { %v829_v40 = vsel %vm806_vm1, %v827_v47, %v828_v31  ;;  %v1525_v30 = vmul.f32 %v3234_v54, %v3538_v20  ;;  %v1384_v36 = vrot.slane %v1280_v48, 1  ;;  %v1385_v55 = vrot.slane %v3635_v27, 1 }
  0x68   : > { %v1795_v37 = vadd.f32 %v1763_v9, %v1727_v7  ;;  %v927_v2 = vadd.f32 %v829_v40, %v650_v0  ;;  %v3645_v18 = vsel %vm566_vm0, %v526_v11, 0.0  ;;  %v1074_v29 = vsel %vm1051_vm2, %v1072_v24, %v1073_v62  ;;  %v356_v40 = vld [vmem:[%s3194_s19 + $0xb0] sm:$0xff] }
  0x69   : > { %v1628_v41 = vrot.slane %v1524_v17, 2  ;;  %v1629_v59 = vrot.slane %v1525_v30, 2  ;;  %v1764_v8 = vmul.f32 %v3241_v61, %v3645_v18  ;;  %v1836_v9 = vmul.f32 %v3278_v13, %v3645_v18 }
  0x6a   : > { %v2039_v6 = vadd.f32 %v1939_v4, %v1795_v37  ;;  %v1172_v56 = vadd.f32 %v1074_v29, %v927_v2  ;;  %v1386_v39 = vsel %vm806_vm1, %v1384_v36, %v1385_v55  ;;  %v1837_v45 = vmul.f32 %v3278_v13, %v3622_v15 }
  0x6b   : > { %v2080_v5 = vmul.f32 %v3247_v63, %v3645_v18  ;;  %v2081_v49 = vmul.f32 %v3247_v63, %v3622_v15  ;;  %v1940_v22 = vrot.slane %v1836_v9, 1  ;;  %v414_v60 = vmul.f32 %v3185_v23, %v354_v25 }
  0x6c   : > { %v2283_v51 = vadd.f32 %v2183_v14, %v2039_v6  ;;  %v1240_v58 = vadd.f32 %v1208_v19, %v1172_v56  ;;  %v1630_v52 = vsel %vm1051_vm2, %v1628_v41, %v1629_v59  ;;  %v1941_v21 = vrot.slane %v1837_v45, 1 }
  0x6d   : > { %v2184_v50 = vrot.slane %v2080_v5, 2  ;;  %v2185_v33 = vrot.slane %v2081_v49, 2  ;;  %v474_v4 = vadd.f32 %v3199_v26, %v414_v60  ;;  %v724_v11 = vmul.f32 %v3212_v35, %v3513_v3 }
  0x6e   : > { %2928 = vmatmul.mubr.f32.gmra.mrb[6].mxu0 %v2283_v51  ;;  %v1484_v0 = vadd.f32 %v1386_v39, %v1240_v58  ;;  %v969_v10 = vmul.f32 %v3220_v42, %v3513_v3  ;;  %v1942_v38 = vsel %vm806_vm1, %v1940_v22, %v1941_v21  ;;  %v651_v16 = vmul.f32 %v3210_v34, %v3458_v32 }
  0x6f   : > { %v2186_v14 = vsel %vm1051_vm2, %v2184_v50, %v2185_v33  ;;  %v1282_v47 = vmul.f32 %v3232_v53, %v3598_v44  ;;  %v528_v19 = vmax.f32 %v474_v4, 0.0  ;;  %v830_v7 = vrot.slane %v724_v11, 1 }
  0x70   : > { %v1728_v57 = vadd.f32 %v1630_v52, %v1484_v0  ;;  %v1075_v24 = vrot.slane %v969_v10, 2  ;;  %v1209_v48 = vmul.f32 %v3225_v46, %v3538_v20  ;;  %v1526_v3 = vmul.f32 %v3234_v54, %v3598_v44 }
  0x71   : > { %v1387_v27 = vrot.slane %v1282_v47, 1  ;;  %v415_v17 = vmul.f32 %v3185_v23, %v355_v1  ;;  %v3682_v32 = vsel %vm577_vm3, %v528_v19, 0.0  ;;  %v831_v37 = vsel %vm806_vm1, %v828_v31, %v830_v7 }
  0x72   : > { %v1796_v30 = vadd.f32 %v1764_v8, %v1728_v57  ;;  %v1076_v2 = vsel %vm1051_vm2, %v1073_v62, %v1075_v24  ;;  %v928_v36 = vadd.f32 %v831_v37, %v651_v16  ;;  %v1631_v29 = vrot.slane %v1526_v3, 2 }
  0x73   : > { %v1765_v41 = vmul.f32 %v3241_v61, %v3622_v15  ;;  %v1838_v25 = vmul.f32 %v3278_v13, %v3682_v32  ;;  %v2082_v56 = vmul.f32 %v3247_v63, %v3682_v32  ;;  %v416_v8 = vmul.f32 %v3185_v23, %v356_v40 }
  0x74   : > { %v2040_v6 = vadd.f32 %v1942_v38, %v1796_v30  ;;  %v475_v9 = vadd.f32 %v3199_v26, %v415_v17  ;;  %v1173_v39 = vadd.f32 %v1076_v2, %v928_v36  ;;  %v1388_v31 = vsel %vm806_vm1, %v1385_v55, %v1387_v27  ;;  %v357_v17 = vld [vmem:[%s3194_s19 + $0xb8] sm:$0x3] }
  0x75   : > { %v1632_v62 = vsel %vm1051_vm2, %v1629_v59, %v1631_v29  ;;  %v1943_v45 = vrot.slane %v1838_v25, 1  ;;  %v2187_v49 = vrot.slane %v2082_v56, 2  ;;  %v476_v51 = vadd.f32 %v3199_v26, %v416_v8 }
  0x76   : > { %v2284_v5 = vadd.f32 %v2186_v14, %v2040_v6  ;;  %v652_v58 = vmul.f32 %v3210_v34, %v3546_v28  ;;  %v1241_v22 = vadd.f32 %v1209_v48, %v1173_v39  ;;  %v529_v60 = vmax.f32 %v475_v9, 0.0  ;;  %v3747_v39 = vld [vmem:[%s4715_s1] ss:$0 sm:$0xff] }
  0x77   : > { %v725_v23 = vmul.f32 %v3212_v35, %v3546_v28  ;;  %v3703_v52 = vmul.f32 %v3212_v35, %v3538_v20  ;;  %v1944_v55 = vsel %vm806_vm1, %v1941_v21, %v1943_v45  ;;  %v2188_v59 = vsel %vm1051_vm2, %v2185_v33, %v2187_v49 }
  0x78   : > { %2930 = vmatprep.mubr.f32.mxu0 %v2284_v5  ;;  %v3707_v50 = vmax.f32 %v476_v51, 0.0  ;;  %v970_v26 = vmul.f32 %v3220_v42, %v3546_v28  ;;  %v1485_v0 = vadd.f32 %v1388_v31, %v1241_v22  ;;  %v971_v10 = vmul.f32 %v3220_v42, %v3538_v20  ;;  %v3755_v22 = vld [vmem:[%s4716_s2] ss:$0 sm:$0xff] }
  0x79   : > { %v832_v4 = vrot.slane %v725_v23, 1  ;;  %v833_v11 = vrot.slane %v3703_v52, 1  ;;  %v1210_v38 = vmul.f32 %v3225_v46, %v3645_v18  ;;  %v1283_v21 = vmul.f32 %v3232_v53, %v3645_v18  ;;  %v358_v52 = vld [vmem:[%s3194_s19 + $0xc0] sm:$0xff] }
  0x7a   : > { %v1077_v1 = vrot.slane %v970_v26, 2  ;;  %v3720_v33 = vmul.f32 %v3232_v53, %v3622_v15  ;;  %v1729_v28 = vadd.f32 %v1632_v62, %v1485_v0  ;;  %v1078_v16 = vrot.slane %v971_v10, 2 }
  0x7b   : > { %v834_v14 = vsel %vm806_vm1, %v832_v4, %v833_v11  ;;  %v1527_v47 = vmul.f32 %v3234_v54, %v3645_v18  ;;  %v1389_v19 = vrot.slane %v1283_v21, 1  ;;  %v1528_v24 = vmul.f32 %v3234_v54, %v3622_v15 }
  0x7c   : > { %v929_v57 = vadd.f32 %v834_v14, %v652_v58  ;;  %v1390_v7 = vrot.slane %v3720_v33, 1  ;;  %v1797_v48 = vadd.f32 %v1765_v41, %v1729_v28  ;;  %v3730_v27 = vsel %vm566_vm0, %v529_v60, 0.0  ;;  %v359_v14 = vld [vmem:[%s3194_s19 + $0xc8] sm:$0xff] }
  0x7d   : > { %v1079_v3 = vsel %vm1051_vm2, %v1077_v1, %v1078_v16  ;;  %v1633_v40 = vrot.slane %v1527_v47, 2  ;;  %v1634_v2 = vrot.slane %v1528_v24, 2  ;;  %v1839_v36 = vmul.f32 %v3278_v13, %v3730_v27 }
  0x7e   : > { %v1174_v30 = vadd.f32 %v1079_v3, %v929_v57  ;;  %v1391_v37 = vsel %vm806_vm1, %v1389_v19, %v1390_v7  ;;  %v2041_v29 = vadd.f32 %v1944_v55, %v1797_v48  ;;  %v1840_v25 = vmul.f32 %v3278_v13, %v3707_v50 }
  0x7f   : > { %v2083_v41 = vmul.f32 %v3247_v63, %v3730_v27  ;;  %v2084_v6 = vmul.f32 %v3247_v63, %v3707_v50  ;;  %v1635_v8 = vsel %vm1051_vm2, %v1633_v40, %v1634_v2  ;;  %v1945_v9 = vrot.slane %v1839_v36, 1 }
  0x80   : > { %v1242_v56 = vadd.f32 %v1210_v38, %v1174_v30  ;;  %v417_v31 = vmul.f32 %v3747_v39, %v357_v17  ;;  %v2285_v62 = vadd.f32 %v2188_v59, %v2041_v29  ;;  %v1946_v45 = vrot.slane %v1840_v25, 1 }
  0x81   : > { %v2189_v5 = vrot.slane %v2083_v41, 2  ;;  %v2190_v49 = vrot.slane %v2084_v6, 2  ;;  %v1766_v58 = vmul.f32 %v3241_v61, %v3730_v27  ;;  %v727_v23 = vmul.f32 %v3212_v35, %v3598_v44 }
  0x82   : > { %v1486_v51 = vadd.f32 %v1391_v37, %v1242_v56  ;;  %v477_v60 = vadd.f32 %v3755_v22, %v417_v31  ;;  %2931 = vmatmul.mubr.f32.gmra.mrb[8].mxu0 %v2285_v62  ;;  %v1947_v55 = vsel %vm806_vm1, %v1945_v9, %v1946_v45  ;;  %v653_v26 = vmul.f32 %v3210_v34, %v3538_v20 }
  0x83   : > { %v2191_v59 = vsel %vm1051_vm2, %v2189_v5, %v2190_v49  ;;  %v972_v0 = vmul.f32 %v3220_v42, %v3598_v44  ;;  %v835_v1 = vrot.slane %v727_v23, 1  ;;  %v1285_v38 = vmul.f32 %v3232_v53, %v3682_v32 }
  0x84   : > { %v1730_v4 = vadd.f32 %v1635_v8, %v1486_v51  ;;  %v531_v10 = vmax.f32 %v477_v60, 0.0  ;;  %v1211_v33 = vmul.f32 %v3225_v46, %v3622_v15  ;;  %v1529_v28 = vmul.f32 %v3234_v54, %v3682_v32 }
  0x85   : > { %v1080_v21 = vrot.slane %v972_v0, 2  ;;  %v418_v47 = vmul.f32 %v3747_v39, %v358_v52  ;;  %v836_v57 = vsel %vm806_vm1, %v833_v11, %v835_v1  ;;  %v1392_v19 = vrot.slane %v1285_v38, 1 }
  0x86   : > { %v1798_v20 = vadd.f32 %v1766_v58, %v1730_v4  ;;  %v3777_v44 = vsel %vm577_vm3, %v531_v10, 0.0  ;;  %v930_v24 = vadd.f32 %v836_v57, %v653_v26  ;;  %v1636_v3 = vrot.slane %v1529_v28, 2 }
  0x87   : > { %v1081_v48 = vsel %vm1051_vm2, %v1078_v16, %v1080_v21  ;;  %v1841_v40 = vmul.f32 %v3278_v13, %v3777_v44  ;;  %v1767_v30 = vmul.f32 %v3241_v61, %v3707_v50  ;;  %v2085_v37 = vmul.f32 %v3247_v63, %v3777_v44 }
  0x88   : > { %v2042_v17 = vadd.f32 %v1947_v55, %v1798_v20  ;;  %v419_v36 = vmul.f32 %v3747_v39, %v359_v14  ;;  %v1175_v29 = vadd.f32 %v1081_v48, %v930_v24  ;;  %v1393_v11 = vsel %vm806_vm1, %v1390_v7, %v1392_v19  ;;  %v360_v48 = vld [vmem:[%s3194_s19 + $0xd0] sm:$0x3] }
  0x89   : > { %v1948_v25 = vrot.slane %v1841_v40, 1  ;;  %v478_v41 = vadd.f32 %v3755_v22, %v418_v47  ;;  %v1637_v6 = vsel %vm1051_vm2, %v1634_v2, %v1636_v3  ;;  %v2192_v56 = vrot.slane %v2085_v37, 2 }
  0x8a   : > { %v2286_v16 = vadd.f32 %v2191_v59, %v2042_v17  ;;  %v479_v8 = vadd.f32 %v3755_v22, %v419_v36  ;;  %v1243_v9 = vadd.f32 %v1211_v33, %v1175_v29  ;;  %v654_v62 = vmul.f32 %v3210_v34, %v3645_v18 }
  0x8b   : > { %v532_v31 = vmax.f32 %v478_v41, 0.0  ;;  %v728_v63 = vmul.f32 %v3212_v35, %v3645_v18  ;;  %v1949_v7 = vsel %vm806_vm1, %v1946_v45, %v1948_v25  ;;  %v2193_v5 = vsel %vm1051_vm2, %v2190_v49, %v2192_v56 }
  0x8c   : > { %2933 = vmatprep.mubr.f32.mxu0 %v2286_v16  ;;  %v729_v51 = vmul.f32 %v3212_v35, %v3622_v15  ;;  %v973_v2 = vmul.f32 %v3220_v42, %v3645_v18  ;;  %v1487_v58 = vadd.f32 %v1393_v11, %v1243_v9  ;;  %v3802_v60 = vmax.f32 %v479_v8, 0.0 }
  0x8d   : > { %v837_v23 = vrot.slane %v728_v63, 1  ;;  %v3806_v52 = vmul.f32 %v3220_v42, %v3622_v15  ;;  %v3810_v55 = vsel %vm566_vm0, %v532_v31, 0.0  ;;  %v1286_v59 = vmul.f32 %v3232_v53, %v3730_v27 }
  0x8e   : > { %v838_v45 = vrot.slane %v729_v51, 1  ;;  %v1082_v49 = vrot.slane %v973_v2, 2  ;;  %v1731_v26 = vadd.f32 %v1637_v6, %v1487_v58  ;;  %v1287_v0 = vmul.f32 %v3232_v53, %v3707_v50  ;;  %v361_v2 = vld [vmem:[%s3194_s19 + $0xd8] sm:$0xff] }
  0x8f   : > { %v1083_v18 = vrot.slane %v3806_v52, 2  ;;  %v1530_v4 = vmul.f32 %v3234_v54, %v3730_v27  ;;  %v1212_v1 = vmul.f32 %v3225_v46, %v3730_v27  ;;  %v1394_v38 = vrot.slane %v1286_v59, 1 }
  0x90   : > { %v839_v10 = vsel %vm806_vm1, %v837_v23, %v838_v45  ;;  %v1531_v21 = vmul.f32 %v3234_v54, %v3707_v50  ;;  %v1799_v33 = vadd.f32 %v1767_v30, %v1731_v26  ;;  %v1395_v47 = vrot.slane %v1287_v0, 1  ;;  %v3835_v30 = vld [vmem:[%s4717_s3 + $0x8] ss:$0 sm:$0xff] }
  0x91   : > { %v931_v28 = vadd.f32 %v839_v10, %v654_v62  ;;  %v1084_v14 = vsel %vm1051_vm2, %v1082_v49, %v1083_v18  ;;  %v1638_v20 = vrot.slane %v1530_v4, 2  ;;  %v1842_v19 = vmul.f32 %v3278_v13, %v3810_v55 }
  0x92   : > { %v1639_v57 = vrot.slane %v1531_v21, 2  ;;  %v1843_v24 = vmul.f32 %v3278_v13, %v3802_v60  ;;  %v2043_v3 = vadd.f32 %v1949_v7, %v1799_v33  ;;  %v1768_v17 = vmul.f32 %v3241_v61, %v3810_v55 }
  0x93   : > { %v1176_v40 = vadd.f32 %v1084_v14, %v931_v28  ;;  %v2086_v37 = vmul.f32 %v3835_v30, %v3810_v55  ;;  %v1396_v36 = vsel %vm806_vm1, %v1394_v38, %v1395_v47  ;;  %v1950_v29 = vrot.slane %v1842_v19, 1 }
  0x94   : > { %v1951_v11 = vrot.slane %v1843_v24, 1  ;;  %v2087_v25 = vmul.f32 %v3835_v30, %v3802_v60  ;;  %v2287_v41 = vadd.f32 %v2193_v5, %v2043_v3  ;;  %v420_v56 = vmul.f32 %v3747_v39, %v360_v48 }
  0x95   : > { %v1244_v16 = vadd.f32 %v1212_v1, %v1176_v40  ;;  %v2194_v6 = vrot.slane %v2086_v37, 2  ;;  %v1640_v8 = vsel %vm1051_vm2, %v1638_v20, %v1639_v57  ;;  %v730_v62 = vmul.f32 %v3212_v35, %v3682_v32  ;;  %v362_v1 = vld [vmem:[%s3194_s19 + $0xe0] sm:$0xff] }
  0x96   : > { %v1952_v9 = vsel %vm806_vm1, %v1950_v29, %v1951_v11  ;;  %v2195_v31 = vrot.slane %v2087_v25, 2  ;;  %2934 = vmatmul.mubr.f32.gmra.mrb[10].mxu0 %v2287_v41  ;;  %v480_v7 = vadd.f32 %v3755_v22, %v420_v56  ;;  %v655_v5 = vmul.f32 %v3210_v34, %v3622_v15 }
  0x97   : > { %v1488_v63 = vadd.f32 %v1396_v36, %v1244_v16  ;;  %v975_v51 = vmul.f32 %v3220_v42, %v3682_v32  ;;  %v840_v58 = vrot.slane %v730_v62, 1  ;;  %v1213_v23 = vmul.f32 %v3225_v46, %v3707_v50 }
  0x98   : > { %v1288_v52 = vmul.f32 %v3232_v53, %v3777_v44  ;;  %v1532_v49 = vmul.f32 %v3234_v54, %v3777_v44  ;;  %v2196_v26 = vsel %vm1051_vm2, %v2194_v6, %v2195_v31  ;;  %v534_v0 = vmax.f32 %v480_v7, 0.0 }
  0x99   : > { %v1732_v59 = vadd.f32 %v1640_v8, %v1488_v63  ;;  %v1085_v4 = vrot.slane %v975_v51, 2  ;;  %v841_v15 = vsel %vm806_vm1, %v838_v45, %v840_v58  ;;  %v421_v38 = vmul.f32 %v3747_v39, %v361_v2 }
  0x9a   : > { %v1397_v10 = vrot.slane %v1288_v52, 1  ;;  %v1641_v32 = vrot.slane %v1532_v49, 2  ;;  %v3865_v33 = vsel %vm577_vm3, %v534_v0, 0.0  ;;  %v932_v28 = vadd.f32 %v841_v15, %v655_v5 }
  0x9b   : > { %v1800_v21 = vadd.f32 %v1768_v17, %v1732_v59  ;;  %v1086_v14 = vsel %vm1051_vm2, %v1083_v18, %v1085_v4  ;;  %v1769_v19 = vmul.f32 %v3241_v61, %v3802_v60  ;;  %v1844_v45 = vmul.f32 %v3278_v13, %v3865_v33 }
  0x9c   : > { %v1398_v20 = vsel %vm806_vm1, %v1395_v47, %v1397_v10  ;;  %v2088_v24 = vmul.f32 %v3835_v30, %v3865_v33  ;;  %v1177_v3 = vadd.f32 %v1086_v14, %v932_v28  ;;  %v422_v40 = vmul.f32 %v3747_v39, %v362_v1  ;;  %v363_v28 = vld [vmem:[%s3194_s19 + $0xe8] sm:$0x3] }
  0x9d   : > { %v2044_v48 = vadd.f32 %v1952_v9, %v1800_v21  ;;  %v481_v17 = vadd.f32 %v3755_v22, %v421_v38  ;;  %v1642_v37 = vsel %vm1051_vm2, %v1639_v57, %v1641_v32  ;;  %v1953_v18 = vrot.slane %v1844_v45, 1 }
  0x9e   : > { %v2197_v36 = vrot.slane %v2088_v24, 2  ;;  %v731_v47 = vmul.f32 %v3212_v35, %v3730_v27  ;;  %v1245_v25 = vadd.f32 %v1213_v23, %v1177_v3  ;;  %v482_v41 = vadd.f32 %v3755_v22, %v422_v40 }
  0x9f   : > { %v2288_v29 = vadd.f32 %v2196_v26, %v2044_v48  ;;  %v535_v16 = vmax.f32 %v481_v17, 0.0  ;;  %v1954_v6 = vsel %vm806_vm1, %v1951_v11, %v1953_v18  ;;  %v656_v56 = vmul.f32 %v3210_v34, %v3730_v27 }
  0xa0   : > { %v732_v8 = vmul.f32 %v3212_v35, %v3707_v50  ;;  %v842_v9 = vrot.slane %v731_v47, 1  ;;  %v1489_v57 = vadd.f32 %v1398_v20, %v1245_v25  ;;  %v2198_v62 = vsel %vm1051_vm2, %v2195_v31, %v2197_v36 }
  0xa1   : > { %2936 = vmatprep.mubr.f32.mxu0 %v2288_v29  ;;  %v3887_v63 = vmax.f32 %v482_v41, 0.0  ;;  %v976_v7 = vmul.f32 %v3220_v42, %v3730_v27  ;;  %v3893_v5 = vsel %vm566_vm0, %v535_v16, 0.0  ;;  %v977_v51 = vmul.f32 %v3220_v42, %v3707_v50 }
  0xa2   : > { %v843_v11 = vrot.slane %v732_v8, 1  ;;  %v1289_v2 = vmul.f32 %v3232_v53, %v3810_v55  ;;  %v1733_v58 = vadd.f32 %v1642_v37, %v1489_v57  ;;  %v3901_v31 = vmul.f32 %v3232_v53, %v3802_v60 }
  0xa3   : > { %v1087_v23 = vrot.slane %v976_v7, 2  ;;  %v1533_v27 = vmul.f32 %v3234_v54, %v3810_v55  ;;  %v1088_v49 = vrot.slane %v977_v51, 2  ;;  %v1534_v26 = vmul.f32 %v3234_v54, %v3802_v60 }
  0xa4   : > { %v844_v52 = vsel %vm806_vm1, %v842_v9, %v843_v11  ;;  %v1399_v59 = vrot.slane %v1289_v2, 1  ;;  %v1801_v0 = vadd.f32 %v1769_v19, %v1733_v58  ;;  %v1214_v15 = vmul.f32 %v3225_v46, %v3810_v55  ;;  %v364_v9 = vld [vmem:[%s3194_s19 + $0xf0] sm:$0xff] }
  0xa5   : > { %v933_v4 = vadd.f32 %v844_v52, %v656_v56  ;;  %v1400_v10 = vrot.slane %v3901_v31, 1  ;;  %v1089_v32 = vsel %vm1051_vm2, %v1087_v23, %v1088_v49  ;;  %v1643_v1 = vrot.slane %v1533_v27, 2  ;;  %v365_v52 = vld [vmem:[%s3194_s19 + $0xf8] sm:$0xff] }
  0xa6   : > { %v1644_v38 = vrot.slane %v1534_v26, 2  ;;  %v1845_v21 = vmul.f32 %v3278_v13, %v3893_v5  ;;  %v2045_v14 = vadd.f32 %v1954_v6, %v1801_v0  ;;  %v1770_v45 = vmul.f32 %v3241_v61, %v3893_v5 }
  0xa7   : > { %v1178_v20 = vadd.f32 %v1089_v32, %v933_v4  ;;  %v1846_v19 = vmul.f32 %v3278_v13, %v3887_v63  ;;  %v1401_v24 = vsel %vm806_vm1, %v1399_v59, %v1400_v10  ;;  %v2089_v3 = vmul.f32 %v3835_v30, %v3893_v5 }
  0xa8   : > { %v1955_v48 = vrot.slane %v1845_v21, 1  ;;  %v2090_v40 = vmul.f32 %v3835_v30, %v3887_v63  ;;  %v2289_v17 = vadd.f32 %v2198_v62, %v2045_v14  ;;  %v423_v36 = vmul.f32 %v3747_v39, %v363_v28 }
  0xa9   : > { %v1246_v37 = vadd.f32 %v1214_v15, %v1178_v20  ;;  %v1956_v18 = vrot.slane %v1846_v19, 1  ;;  %v1645_v47 = vsel %vm1051_vm2, %v1643_v1, %v1644_v38  ;;  %v2199_v29 = vrot.slane %v2089_v3, 2 }
  0xaa   : > { %v2200_v25 = vrot.slane %v2090_v40, 2  ;;  %v733_v41 = vmul.f32 %v3212_v35, %v3777_v44  ;;  %2937 = vmatmul.mubr.f32.gmra.mrb[12].mxu0 %v2289_v17  ;;  %v483_v6 = vadd.f32 %v3755_v22, %v423_v36  ;;  %v657_v56 = vmul.f32 %v3210_v34, %v3707_v50 }
  0xab   : > { %v1490_v16 = vadd.f32 %v1401_v24, %v1246_v37  ;;  %v978_v8 = vmul.f32 %v3220_v42, %v3777_v44  ;;  %v1957_v57 = vsel %vm806_vm1, %v1955_v48, %v1956_v18  ;;  %v1291_v51 = vmul.f32 %v3232_v53, %v3865_v33 }
  0xac   : > { %v2201_v62 = vsel %vm1051_vm2, %v2199_v29, %v2200_v25  ;;  %v845_v7 = vrot.slane %v733_v41, 1  ;;  %v537_v58 = vmax.f32 %v483_v6, 0.0  ;;  %v1535_v31 = vmul.f32 %v3234_v54, %v3865_v33 }
  0xad   : > { %v1734_v2 = vadd.f32 %v1645_v47, %v1490_v16  ;;  %v1090_v23 = vrot.slane %v978_v8, 2  ;;  %v1215_v44 = vmul.f32 %v3225_v46, %v3802_v60  ;;  %v1402_v27 = vrot.slane %v1291_v51, 1 }
  0xae   : > { %v846_v50 = vsel %vm806_vm1, %v843_v11, %v845_v7  ;;  %v424_v59 = vmul.f32 %v3747_v39, %v364_v9  ;;  %v3947_v0 = vsel %vm577_vm3, %v537_v58, 0.0  ;;  %v1646_v32 = vrot.slane %v1535_v31, 2 }
  0xaf   : > { %v1802_v26 = vadd.f32 %v1770_v45, %v1734_v2  ;;  %v934_v4 = vadd.f32 %v846_v50, %v657_v56  ;;  %v1091_v15 = vsel %vm1051_vm2, %v1088_v49, %v1090_v23  ;;  %v1771_v1 = vmul.f32 %v3241_v61, %v3887_v63 }
  0xb0   : > { %v1847_v11 = vmul.f32 %v3278_v13, %v3947_v0  ;;  %v2091_v21 = vmul.f32 %v3835_v30, %v3947_v0  ;;  %v425_v20 = vmul.f32 %v3747_v39, %v365_v52  ;;  %v484_v45 = vadd.f32 %v3755_v22, %v424_v59 }
  0xb1   : > { %v2046_v28 = vadd.f32 %v1957_v57, %v1802_v26  ;;  %v1179_v14 = vadd.f32 %v1091_v15, %v934_v4  ;;  %v1403_v19 = vsel %vm806_vm1, %v1400_v10, %v1402_v27  ;;  %v1647_v49 = vsel %vm1051_vm2, %v1644_v38, %v1646_v32  ;;  %v366_v4 = vld [vmem:[%s3194_s19 + $0x100] sm:$0x3] }
  0xb2   : > { %v1958_v24 = vrot.slane %v1847_v11, 1  ;;  %v2202_v48 = vrot.slane %v2091_v21, 2  ;;  %v485_v17 = vadd.f32 %v3755_v22, %v425_v20  ;;  %v658_v37 = vmul.f32 %v3210_v34, %v3810_v55 }
  0xb3   : > { %v2290_v3 = vadd.f32 %v2201_v62, %v2046_v28  ;;  %v1247_v40 = vadd.f32 %v1215_v44, %v1179_v14  ;;  %v538_v47 = vmax.f32 %v484_v45, 0.0  ;;  %v734_v29 = vmul.f32 %v3212_v35, %v3810_v55 }
  0xb4   : > { %v1959_v36 = vsel %vm806_vm1, %v1956_v18, %v1958_v24  ;;  %v3968_v10 = vmul.f32 %v3212_v35, %v3802_v60  ;;  %v2203_v41 = vsel %vm1051_vm2, %v2200_v25, %v2202_v48  ;;  %v3971_v16 = vmax.f32 %v485_v17, 0.0 }
  0xb5   : > { %2939 = vmatprep.mubr.f32.mxu0 %v2290_v3  ;;  %v1491_v38 = vadd.f32 %v1403_v19, %v1247_v40  ;;  %v979_v6 = vmul.f32 %v3220_v42, %v3810_v55  ;;  %v847_v56 = vrot.slane %v734_v29, 1  ;;  %v980_v8 = vmul.f32 %v3220_v42, %v3802_v60 }
  0xb6   : > { %v848_v18 = vrot.slane %v3968_v10, 1  ;;  %v1216_v9 = vmul.f32 %v3225_v46, %v3893_v5  ;;  %v1292_v25 = vmul.f32 %v3232_v53, %v3893_v5  ;;  %v3984_v7 = vmul.f32 %v3232_v53, %v3887_v63  ;;  %v367_v10 = vld [vmem:[%s3194_s19 + $0x108] sm:$0xff] }
  0xb7   : > { %v1735_v57 = vadd.f32 %v1647_v49, %v1491_v38  ;;  %v1092_v62 = vrot.slane %v979_v6, 2  ;;  %v1093_v51 = vrot.slane %v980_v8, 2  ;;  %v1536_v2 = vmul.f32 %v3234_v54, %v3893_v5 }
  0xb8   : > { %v849_v55 = vsel %vm806_vm1, %v847_v56, %v848_v18  ;;  %v1537_v58 = vmul.f32 %v3234_v54, %v3887_v63  ;;  %v1404_v50 = vrot.slane %v1292_v25, 1  ;;  %v1405_v44 = vrot.slane %v3984_v7, 1 }
  0xb9   : > { %v1803_v23 = vadd.f32 %v1771_v1, %v1735_v57  ;;  %v935_v31 = vadd.f32 %v849_v55, %v658_v37  ;;  %v3994_v27 = vsel %vm566_vm0, %v538_v47, 0.0  ;;  %v1094_v52 = vsel %vm1051_vm2, %v1092_v62, %v1093_v51  ;;  %v368_v55 = vld [vmem:[%s3194_s19 + $0x110] sm:$0xff] }
  0xba   : > { %v1648_v59 = vrot.slane %v1536_v2, 2  ;;  %v1649_v26 = vrot.slane %v1537_v58, 2  ;;  %v1772_v11 = vmul.f32 %v3241_v61, %v3994_v27  ;;  %v1848_v1 = vmul.f32 %v3278_v13, %v3994_v27 }
  0xbb   : > { %v2047_v15 = vadd.f32 %v1959_v36, %v1803_v23  ;;  %v1180_v32 = vadd.f32 %v1094_v52, %v935_v31  ;;  %v1406_v21 = vsel %vm806_vm1, %v1404_v50, %v1405_v44  ;;  %v1849_v28 = vmul.f32 %v3278_v13, %v3971_v16 }
  0xbc   : > { %v2092_v14 = vmul.f32 %v3835_v30, %v3994_v27  ;;  %v2093_v20 = vmul.f32 %v3835_v30, %v3971_v16  ;;  %v1960_v49 = vrot.slane %v1848_v1, 1  ;;  %v426_v24 = vmul.f32 %v3747_v39, %v366_v4 }
  0xbd   : > { %v2291_v45 = vadd.f32 %v2203_v41, %v2047_v15  ;;  %v1248_v19 = vadd.f32 %v1216_v9, %v1180_v32  ;;  %v1650_v48 = vsel %vm1051_vm2, %v1648_v59, %v1649_v26  ;;  %v1961_v3 = vrot.slane %v1849_v28, 1 }
  0xbe   : > { %v2204_v40 = vrot.slane %v2092_v14, 2  ;;  %v2205_v17 = vrot.slane %v2093_v20, 2  ;;  %v486_v36 = vadd.f32 %v3755_v22, %v426_v24  ;;  %v736_v47 = vmul.f32 %v3212_v35, %v3865_v33 }
  0xbf   : > { %2940 = vmatmul.mubr.f32.gmra.mrb[14].mxu0 %v2291_v45  ;;  %v1492_v37 = vadd.f32 %v1406_v21, %v1248_v19  ;;  %v981_v29 = vmul.f32 %v3220_v42, %v3865_v33  ;;  %v1962_v38 = vsel %vm806_vm1, %v1960_v49, %v1961_v3  ;;  %v659_v6 = vmul.f32 %v3210_v34, %v3802_v60 }
  0xc0   : > { %v2206_v41 = vsel %vm1051_vm2, %v2204_v40, %v2205_v17  ;;  %v1294_v56 = vmul.f32 %v3232_v53, %v3947_v0  ;;  %v540_v9 = vmax.f32 %v486_v36, 0.0  ;;  %v850_v57 = vrot.slane %v736_v47, 1 }
  0xc1   : > { %v1736_v8 = vadd.f32 %v1650_v48, %v1492_v37  ;;  %v1095_v62 = vrot.slane %v981_v29, 2  ;;  %v1217_v25 = vmul.f32 %v3225_v46, %v3887_v63  ;;  %v1538_v33 = vmul.f32 %v3234_v54, %v3947_v0 }
  0xc2   : > { %v1407_v7 = vrot.slane %v1294_v56, 1  ;;  %v427_v2 = vmul.f32 %v3747_v39, %v367_v10  ;;  %v4031_v60 = vsel %vm577_vm3, %v540_v9, 0.0  ;;  %v851_v23 = vsel %vm806_vm1, %v848_v18, %v850_v57 }
  0xc3   : > { %v1804_v58 = vadd.f32 %v1772_v11, %v1736_v8  ;;  %v1096_v31 = vsel %vm1051_vm2, %v1093_v51, %v1095_v62  ;;  %v936_v50 = vadd.f32 %v851_v23, %v659_v6  ;;  %v1651_v52 = vrot.slane %v1538_v33, 2  ;;  %v369_v23 = vld [vmem:[%s3194_s19 + $0x118] sm:$0x3] }
  0xc4   : > { %v1773_v59 = vmul.f32 %v3241_v61, %v3971_v16  ;;  %v1850_v4 = vmul.f32 %v3278_v13, %v4031_v60  ;;  %v2094_v32 = vmul.f32 %v3835_v30, %v4031_v60  ;;  %v428_v11 = vmul.f32 %v3747_v39, %v368_v55 }
  0xc5   : > { %v2048_v15 = vadd.f32 %v1962_v38, %v1804_v58  ;;  %v487_v1 = vadd.f32 %v3755_v22, %v427_v2  ;;  %v1181_v21 = vadd.f32 %v1096_v31, %v936_v50  ;;  %v1408_v18 = vsel %vm806_vm1, %v1405_v44, %v1407_v7 }
  0xc6   : > { %v1652_v51 = vsel %vm1051_vm2, %v1649_v26, %v1651_v52  ;;  %v1963_v28 = vrot.slane %v1850_v4, 1  ;;  %v2207_v20 = vrot.slane %v2094_v32, 2  ;;  %v488_v45 = vadd.f32 %v3755_v22, %v428_v11 }
  0xc7   : > { %v2292_v14 = vadd.f32 %v2206_v41, %v2048_v15  ;;  %v660_v19 = vmul.f32 %v3210_v34, %v3893_v5  ;;  %v1249_v49 = vadd.f32 %v1217_v25, %v1181_v21  ;;  %v541_v24 = vmax.f32 %v487_v1, 0.0 }
  0xc8   : > { %v737_v48 = vmul.f32 %v3212_v35, %v3893_v5  ;;  %v4052_v40 = vmul.f32 %v3212_v35, %v3887_v63  ;;  %v1964_v44 = vsel %vm806_vm1, %v1961_v3, %v1963_v28  ;;  %v2208_v26 = vsel %vm1051_vm2, %v2205_v17, %v2207_v20 }
  0xc9   : > { %2942 = vmatprep.mubr.f32.mxu1 %v2292_v14  ;;  %v4056_v37 = vmax.f32 %v488_v45, 0.0  ;;  %v982_v36 = vmul.f32 %v3220_v42, %v3893_v5  ;;  %v1493_v47 = vadd.f32 %v1408_v18, %v1249_v49  ;;  %v983_v38 = vmul.f32 %v3220_v42, %v3887_v63 }
  0xca   : > { %v852_v29 = vrot.slane %v737_v48, 1  ;;  %v853_v10 = vrot.slane %v4052_v40, 1  ;;  %v1218_v6 = vmul.f32 %v3225_v46, %v3994_v27  ;;  %v1295_v3 = vmul.f32 %v3232_v53, %v3994_v27  ;;  %v370_v40 = vld [vmem:[%s3194_s19 + $0x120] sm:$0xff] }
  0xcb   : > { %v1097_v41 = vrot.slane %v982_v36, 2  ;;  %v4069_v17 = vmul.f32 %v3232_v53, %v3971_v16  ;;  %v1737_v5 = vadd.f32 %v1652_v51, %v1493_v47  ;;  %v1098_v8 = vrot.slane %v983_v38, 2 }
  0xcc   : > { %v854_v56 = vsel %vm806_vm1, %v852_v29, %v853_v10  ;;  %v1539_v9 = vmul.f32 %v3234_v54, %v3994_v27  ;;  %v1409_v62 = vrot.slane %v1295_v3, 1  ;;  %v1540_v7 = vmul.f32 %v3234_v54, %v3971_v16 }
  0xcd   : > { %v937_v57 = vadd.f32 %v854_v56, %v660_v19  ;;  %v1410_v25 = vrot.slane %v4069_v17, 1  ;;  %v1805_v33 = vadd.f32 %v1773_v59, %v1737_v5  ;;  %v4079_v55 = vsel %vm566_vm0, %v541_v24, 0.0  ;;  %v371_v56 = vld [vmem:[%s3194_s19 + $0x128] sm:$0xff] }
  0xce   : > { %v1099_v2 = vsel %vm1051_vm2, %v1097_v41, %v1098_v8  ;;  %v1653_v58 = vrot.slane %v1539_v9, 2  ;;  %v1654_v52 = vrot.slane %v1540_v7, 2  ;;  %v1851_v4 = vmul.f32 %v3278_v13, %v4079_v55 }
  0xcf   : > { %v1182_v31 = vadd.f32 %v1099_v2, %v937_v57  ;;  %v1411_v50 = vsel %vm806_vm1, %v1409_v62, %v1410_v25  ;;  %v2049_v15 = vadd.f32 %v1964_v44, %v1805_v33  ;;  %v1852_v59 = vmul.f32 %v3278_v13, %v4056_v37 }
  0xd0   : > { %v2095_v32 = vmul.f32 %v3835_v30, %v4079_v55  ;;  %v2096_v11 = vmul.f32 %v3835_v30, %v4056_v37  ;;  %v1655_v21 = vsel %vm1051_vm2, %v1653_v58, %v1654_v52  ;;  %v1965_v18 = vrot.slane %v1851_v4, 1 }
  0xd1   : > { %v1250_v1 = vadd.f32 %v1218_v6, %v1182_v31  ;;  %v429_v51 = vmul.f32 %v3747_v39, %v369_v23  ;;  %v2293_v28 = vadd.f32 %v2208_v26, %v2049_v15  ;;  %v1966_v14 = vrot.slane %v1852_v59, 1 }
  0xd2   : > { %v2209_v20 = vrot.slane %v2095_v32, 2  ;;  %v2210_v45 = vrot.slane %v2096_v11, 2  ;;  %v1774_v49 = vmul.f32 %v3241_v61, %v4079_v55  ;;  %v739_v48 = vmul.f32 %v3212_v35, %v3947_v0 }
  0xd3   : > { %v1494_v19 = vadd.f32 %v1411_v50, %v1250_v1  ;;  %v489_v24 = vadd.f32 %v3755_v22, %v429_v51  ;;  %2943 = vmatmul.mubr.f32.vlgmr.msra.gmra.mrb[0].mxu1 %v2293_v28  ;;  %v1967_v44 = vsel %vm806_vm1, %v1965_v18, %v1966_v14  ;;  %v661_v26 = vmul.f32 %v3210_v34, %v3887_v63 }
  0xd4   : > { %v2211_v36 = vsel %vm1051_vm2, %v2209_v20, %v2210_v45  ;;  %v984_v47 = vmul.f32 %v3220_v42, %v3947_v0  ;;  %v855_v41 = vrot.slane %v739_v48, 1  ;;  %v1297_v6 = vmul.f32 %v3232_v53, %v4031_v60 }
  0xd5   : > { %v1738_v29 = vadd.f32 %v1655_v21, %v1494_v19  ;;  %v543_v38 = vmax.f32 %v489_v24, 0.0  ;;  %v1219_v17 = vmul.f32 %v3225_v46, %v3971_v16  ;;  %v1541_v5 = vmul.f32 %v3234_v54, %v4031_v60 }
  0xd6   : > { %v1100_v3 = vrot.slane %v984_v47, 2  ;;  %v430_v9 = vmul.f32 %v3747_v39, %v370_v40  ;;  %v856_v57 = vsel %vm806_vm1, %v853_v10, %v855_v41  ;;  %v1412_v62 = vrot.slane %v1297_v6, 1 }
  0xd7   : > { %v1806_v63 = vadd.f32 %v1774_v49, %v1738_v29  ;;  %v4116_v0 = vsel %vm577_vm3, %v543_v38, 0.0  ;;  %v938_v7 = vadd.f32 %v856_v57, %v661_v26  ;;  %v1656_v2 = vrot.slane %v1541_v5, 2 }
  0xd8   : > { %v1101_v33 = vsel %vm1051_vm2, %v1098_v8, %v1100_v3  ;;  %v1853_v58 = vmul.f32 %v3278_v13, %v4116_v0  ;;  %v1775_v31 = vmul.f32 %v3241_v61, %v4056_v37  ;;  %v2097_v50 = vmul.f32 %v3835_v30, %v4116_v0 }
  0xd9   : > { %v2050_v23 = vadd.f32 %v1967_v44, %v1806_v63  ;;  %v431_v4 = vmul.f32 %v3747_v39, %v371_v56  ;;  %v1183_v15 = vadd.f32 %v1101_v33, %v938_v7  ;;  %v1413_v10 = vsel %vm806_vm1, %v1410_v25, %v1412_v62 }
  0xda   : > { %v1968_v59 = vrot.slane %v1853_v58, 1  ;;  %v490_v32 = vadd.f32 %v3755_v22, %v430_v9  ;;  %v1657_v11 = vsel %vm1051_vm2, %v1654_v52, %v1656_v2  ;;  %v2212_v1 = vrot.slane %v2097_v50, 2  ;;  %v372_v2 = vld [vmem:[%s3194_s19 + $0x130] sm:$0x3] }
  0xdb   : > { %v2294_v8 = vadd.f32 %v2211_v36, %v2050_v23  ;;  %v491_v21 = vadd.f32 %v3755_v22, %v431_v4  ;;  %v1251_v18 = vadd.f32 %v1219_v17, %v1183_v15  ;;  %v662_v28 = vmul.f32 %v3210_v34, %v3994_v27 }
  0xdc   : > { %v544_v51 = vmax.f32 %v490_v32, 0.0  ;;  %v740_v20 = vmul.f32 %v3212_v35, %v3994_v27  ;;  %v1969_v25 = vsel %vm806_vm1, %v1966_v14, %v1968_v59  ;;  %v2213_v19 = vsel %vm1051_vm2, %v2210_v45, %v2212_v1 }
  0xdd   : > { %2945 = vmatprep.mubr.f32.mxu1 %v2294_v8  ;;  %v741_v49 = vmul.f32 %v3212_v35, %v3971_v16  ;;  %v985_v52 = vmul.f32 %v3220_v42, %v3994_v27  ;;  %v1495_v24 = vadd.f32 %v1413_v10, %v1251_v18  ;;  %v4141_v48 = vmax.f32 %v491_v21, 0.0 }
  0xde   : > { %v857_v40 = vrot.slane %v740_v20, 1  ;;  %v986_v44 = vmul.f32 %v3220_v42, %v3971_v16  ;;  %v4147_v36 = vsel %vm566_vm0, %v544_v51, 0.0  ;;  %v1298_v45 = vmul.f32 %v3232_v53, %v4079_v55 }
  0xdf   : > { %v858_v14 = vrot.slane %v741_v49, 1  ;;  %v1102_v26 = vrot.slane %v985_v52, 2  ;;  %v1739_v47 = vadd.f32 %v1657_v11, %v1495_v24  ;;  %v1299_v27 = vmul.f32 %v3232_v53, %v4056_v37  ;;  %v373_v52 = vld [vmem:[%s3194_s19 + $0x138] sm:$0xff] }
  0xe0   : > { %v1103_v29 = vrot.slane %v986_v44, 2  ;;  %v1542_v38 = vmul.f32 %v3234_v54, %v4079_v55  ;;  %v1220_v6 = vmul.f32 %v3225_v46, %v4079_v55  ;;  %v1414_v3 = vrot.slane %v1298_v45, 1 }
  0xe1   : > { %v859_v41 = vsel %vm806_vm1, %v857_v40, %v858_v14  ;;  %v1543_v17 = vmul.f32 %v3234_v54, %v4056_v37  ;;  %v1807_v5 = vadd.f32 %v1775_v31, %v1739_v47  ;;  %v1415_v63 = vrot.slane %v1299_v27, 1 }
  0xe2   : > { %v939_v56 = vadd.f32 %v859_v41, %v662_v28  ;;  %v1104_v9 = vsel %vm1051_vm2, %v1102_v26, %v1103_v29  ;;  %v1658_v57 = vrot.slane %v1542_v38, 2  ;;  %v1854_v7 = vmul.f32 %v3278_v13, %v4147_v36 }
  0xe3   : > { %v1659_v62 = vrot.slane %v1543_v17, 2  ;;  %v1855_v33 = vmul.f32 %v3278_v13, %v4141_v48  ;;  %v2051_v58 = vadd.f32 %v1969_v25, %v1807_v5  ;;  %v1776_v50 = vmul.f32 %v3241_v61, %v4147_v36 }
  0xe4   : > { %v1184_v23 = vadd.f32 %v1104_v9, %v939_v56  ;;  %v2098_v31 = vmul.f32 %v3835_v30, %v4147_v36  ;;  %v1416_v4 = vsel %vm806_vm1, %v1414_v3, %v1415_v63  ;;  %v1970_v15 = vrot.slane %v1854_v7, 1 }
  0xe5   : > { %v1971_v10 = vrot.slane %v1855_v33, 1  ;;  %v2099_v59 = vmul.f32 %v3835_v30, %v4141_v48  ;;  %v2295_v32 = vadd.f32 %v2213_v19, %v2051_v58  ;;  %v432_v1 = vmul.f32 %v3747_v39, %v372_v2 }
  0xe6   : > { %v1252_v8 = vadd.f32 %v1220_v6, %v1184_v23  ;;  %v2214_v11 = vrot.slane %v2098_v31, 2  ;;  %v1660_v21 = vsel %vm1051_vm2, %v1658_v57, %v1659_v62  ;;  %v742_v28 = vmul.f32 %v3212_v35, %v4031_v60  ;;  %v374_v6 = vld [vmem:[%s3194_s19 + $0x140] sm:$0xff] }
  0xe7   : > { %v1972_v18 = vsel %vm806_vm1, %v1970_v15, %v1971_v10  ;;  %v2215_v51 = vrot.slane %v2099_v59, 2  ;;  %2946 = vmatmul.mubr.f32.gmra.mrb[2].mxu1 %v2295_v32  ;;  %v492_v25 = vadd.f32 %v3755_v22, %v432_v1  ;;  %v663_v19 = vmul.f32 %v3210_v34, %v3971_v16 }
  0xe8   : > { %v1496_v20 = vadd.f32 %v1416_v4, %v1252_v8  ;;  %v987_v49 = vmul.f32 %v3220_v42, %v4031_v60  ;;  %v860_v24 = vrot.slane %v742_v28, 1  ;;  %v1221_v40 = vmul.f32 %v3225_v46, %v4056_v37 }
  0xe9   : > { %v1300_v44 = vmul.f32 %v3232_v53, %v4116_v0  ;;  %v1544_v26 = vmul.f32 %v3234_v54, %v4116_v0  ;;  %v2216_v47 = vsel %vm1051_vm2, %v2214_v11, %v2215_v51  ;;  %v546_v27 = vmax.f32 %v492_v25, 0.0 }
  0xea   : > { %v1740_v45 = vadd.f32 %v1660_v21, %v1496_v20  ;;  %v1105_v38 = vrot.slane %v987_v49, 2  ;;  %v861_v16 = vsel %vm806_vm1, %v858_v14, %v860_v24  ;;  %v433_v3 = vmul.f32 %v3747_v39, %v373_v52 }
  0xeb   : > { %v1417_v41 = vrot.slane %v1300_v44, 1  ;;  %v1661_v60 = vrot.slane %v1544_v26, 2  ;;  %v4196_v5 = vsel %vm577_vm3, %v546_v27, 0.0  ;;  %v940_v56 = vadd.f32 %v861_v16, %v663_v19 }
  0xec   : > { %v1808_v17 = vadd.f32 %v1776_v50, %v1740_v45  ;;  %v1106_v9 = vsel %vm1051_vm2, %v1103_v29, %v1105_v38  ;;  %v1777_v7 = vmul.f32 %v3241_v61, %v4141_v48  ;;  %v1856_v14 = vmul.f32 %v3278_v13, %v4196_v5 }
  0xed   : > { %v1418_v57 = vsel %vm806_vm1, %v1415_v63, %v1417_v41  ;;  %v2100_v33 = vmul.f32 %v3835_v30, %v4196_v5  ;;  %v1185_v58 = vadd.f32 %v1106_v9, %v940_v56  ;;  %v434_v23 = vmul.f32 %v3747_v39, %v374_v6 }
  0xee   : > { %v2052_v2 = vadd.f32 %v1972_v18, %v1808_v17  ;;  %v493_v50 = vadd.f32 %v3755_v22, %v433_v3  ;;  %v1662_v31 = vsel %vm1051_vm2, %v1659_v62, %v1661_v60  ;;  %v1973_v29 = vrot.slane %v1856_v14, 1  ;;  %v375_v3 = vld [vmem:[%s3194_s19 + $0x148] sm:$0x3] }
  0xef   : > { %v2217_v4 = vrot.slane %v2100_v33, 2  ;;  %v743_v63 = vmul.f32 %v3212_v35, %v4079_v55  ;;  %v1253_v59 = vadd.f32 %v1221_v40, %v1185_v58  ;;  %v494_v32 = vadd.f32 %v3755_v22, %v434_v23 }
  0xf0   : > { %v2296_v15 = vadd.f32 %v2216_v47, %v2052_v2  ;;  %v547_v8 = vmax.f32 %v493_v50, 0.0  ;;  %v1974_v11 = vsel %vm806_vm1, %v1971_v10, %v1973_v29  ;;  %v664_v1 = vmul.f32 %v3210_v34, %v4079_v55 }
  0xf1   : > { %v744_v39 = vmul.f32 %v3212_v35, %v4056_v37  ;;  %v862_v21 = vrot.slane %v743_v63, 1  ;;  %v1497_v62 = vadd.f32 %v1418_v57, %v1253_v59  ;;  %v2218_v18 = vsel %vm1051_vm2, %v2215_v51, %v2217_v4 }
  0xf2   : > { %2948 = vmatprep.mubr.f32.mxu1 %v2296_v15  ;;  %v4218_v28 = vmax.f32 %v494_v32, 0.0  ;;  %v988_v20 = vmul.f32 %v3220_v42, %v4079_v55  ;;  %v4224_v22 = vsel %vm566_vm0, %v547_v8, 0.0  ;;  %v989_v25 = vmul.f32 %v3220_v42, %v4056_v37  ;;  %v4270_v8 = vld [vmem:[%s4716_s2] ss:$0 sm:$0xff] }
  0xf3   : > { %v863_v10 = vrot.slane %v744_v39, 1  ;;  %v1301_v19 = vmul.f32 %v3232_v53, %v4147_v36  ;;  %v1741_v49 = vadd.f32 %v1662_v31, %v1497_v62  ;;  %v4232_v51 = vmul.f32 %v3232_v53, %v4141_v48  ;;  %v4261_v31 = vld [vmem:[%s4715_s1] ss:$0 sm:$0xff] }
  0xf4   : > { %v1107_v52 = vrot.slane %v988_v20, 2  ;;  %v1545_v55 = vmul.f32 %v3234_v54, %v4147_v36  ;;  %v1108_v40 = vrot.slane %v989_v25, 2  ;;  %v4239_v26 = vmul.f32 %v3234_v54, %v4141_v48 }
  0xf5   : > { %v864_v24 = vsel %vm806_vm1, %v862_v21, %v863_v10  ;;  %v1419_v44 = vrot.slane %v1301_v19, 1  ;;  %v1809_v45 = vadd.f32 %v1777_v7, %v1741_v49  ;;  %v1222_v27 = vmul.f32 %v3225_v46, %v4147_v36  ;;  %v376_v21 = vld [vmem:[%s3194_s19 + $0x150] sm:$0xff] }
  0xf6   : > { %v941_v47 = vadd.f32 %v864_v24, %v664_v1  ;;  %v1420_v38 = vrot.slane %v4232_v51, 1  ;;  %v1109_v16 = vsel %vm1051_vm2, %v1107_v52, %v1108_v40  ;;  %v1663_v41 = vrot.slane %v1545_v55, 2  ;;  %v377_v24 = vld [vmem:[%s3194_s19 + $0x158] sm:$0xff] }
  0xf7   : > { %v1664_v60 = vrot.slane %v4239_v26, 2  ;;  %v1857_v6 = vmul.f32 %v3278_v13, %v4224_v22  ;;  %v2053_v17 = vadd.f32 %v1974_v11, %v1809_v45  ;;  %v1778_v9 = vmul.f32 %v3241_v61, %v4224_v22 }
  0xf8   : > { %v1186_v56 = vadd.f32 %v1109_v16, %v941_v47  ;;  %v1858_v57 = vmul.f32 %v3278_v13, %v4218_v28  ;;  %v1421_v7 = vsel %vm806_vm1, %v1419_v44, %v1420_v38  ;;  %v2101_v33 = vmul.f32 %v3835_v30, %v4224_v22 }
  0xf9   : > { %v1975_v14 = vrot.slane %v1857_v6, 1  ;;  %v2102_v2 = vmul.f32 %v3835_v30, %v4218_v28  ;;  %v2297_v58 = vadd.f32 %v2218_v18, %v2053_v17  ;;  %v435_v29 = vmul.f32 %v4261_v31, %v375_v3 }
  0xfa   : > { %v1254_v23 = vadd.f32 %v1222_v27, %v1186_v56  ;;  %v1976_v50 = vrot.slane %v1858_v57, 1  ;;  %v1665_v4 = vsel %vm1051_vm2, %v1663_v41, %v1664_v60  ;;  %v2219_v63 = vrot.slane %v2101_v33, 2 }
  0xfb   : > { %v2220_v15 = vrot.slane %v2102_v2, 2  ;;  %v745_v59 = vmul.f32 %v3212_v35, %v4116_v0  ;;  %2949 = vmatmul.mubr.f32.gmra.mrb[4].mxu1 %v2297_v58  ;;  %v495_v11 = vadd.f32 %v4270_v8, %v435_v29  ;;  %v665_v1 = vmul.f32 %v3210_v34, %v4056_v37 }
  0xfc   : > { %v1498_v32 = vadd.f32 %v1421_v7, %v1254_v23  ;;  %v990_v39 = vmul.f32 %v3220_v42, %v4116_v0  ;;  %v1977_v62 = vsel %vm806_vm1, %v1975_v14, %v1976_v50  ;;  %v1303_v25 = vmul.f32 %v3232_v53, %v4196_v5 }
  0xfd   : > { %v2221_v18 = vsel %vm1051_vm2, %v2219_v63, %v2220_v15  ;;  %v865_v20 = vrot.slane %v745_v59, 1  ;;  %v549_v49 = vmax.f32 %v495_v11, 0.0  ;;  %v1547_v51 = vmul.f32 %v3234_v54, %v4196_v5 }
  0xfe   : > { %v1742_v19 = vadd.f32 %v1665_v4, %v1498_v32  ;;  %v1110_v52 = vrot.slane %v990_v39, 2  ;;  %v1223_v0 = vmul.f32 %v3225_v46, %v4141_v48  ;;  %v1422_v55 = vrot.slane %v1303_v25, 1 }
  0xff   : > { %v866_v37 = vsel %vm806_vm1, %v863_v10, %v865_v20  ;;  %v436_v44 = vmul.f32 %v4261_v31, %v376_v21  ;;  %v4291_v45 = vsel %vm577_vm3, %v549_v49, 0.0  ;;  %v1666_v16 = vrot.slane %v1547_v51, 2 }
 0x100   : > { %v1810_v26 = vadd.f32 %v1778_v9, %v1742_v19  ;;  %v942_v47 = vadd.f32 %v866_v37, %v665_v1  ;;  %v1111_v27 = vsel %vm1051_vm2, %v1108_v40, %v1110_v52  ;;  %v1779_v10 = vmul.f32 %v3241_v61, %v4218_v28 }
 0x101   : > { %v1859_v41 = vmul.f32 %v3278_v13, %v4291_v45  ;;  %v2103_v6 = vmul.f32 %v3835_v30, %v4291_v45  ;;  %v437_v56 = vmul.f32 %v4261_v31, %v377_v24  ;;  %v496_v9 = vadd.f32 %v4270_v8, %v436_v44 }
 0x102   : > { %v2054_v3 = vadd.f32 %v1977_v62, %v1810_v26  ;;  %v1187_v17 = vadd.f32 %v1111_v27, %v942_v47  ;;  %v1423_v57 = vsel %vm806_vm1, %v1420_v38, %v1422_v55  ;;  %v1667_v40 = vsel %vm1051_vm2, %v1664_v60, %v1666_v16  ;;  %v378_v27 = vld [vmem:[%s3194_s19 + $0x160] sm:$0x3] }
 0x103   : > { %v1978_v7 = vrot.slane %v1859_v41, 1  ;;  %v2222_v14 = vrot.slane %v2103_v6, 2  ;;  %v497_v2 = vadd.f32 %v4270_v8, %v437_v56  ;;  %v666_v58 = vmul.f32 %v3210_v34, %v4147_v36  ;;  %v4366_v56 = vld [vmem:[%s4717_s3 + $0x8] ss:$0 sm:$0xff] }
 0x104   : > { %v2298_v33 = vadd.f32 %v2221_v18, %v2054_v3  ;;  %v1255_v30 = vadd.f32 %v1223_v0, %v1187_v17  ;;  %v550_v38 = vmax.f32 %v496_v9, 0.0  ;;  %v746_v60 = vmul.f32 %v3212_v35, %v4147_v36 }
 0x105   : > { %v1979_v23 = vsel %vm806_vm1, %v1976_v50, %v1978_v7  ;;  %v4318_v29 = vmul.f32 %v3212_v35, %v4141_v48  ;;  %v4320_v4 = vpop.f32.mrb[0].mxu0  ;;  %v2223_v59 = vsel %vm1051_vm2, %v2220_v15, %v2222_v14  ;;  %v4323_v32 = vmax.f32 %v497_v2, 0.0 }
 0x106   : > { %2951 = vmatprep.mubr.f32.mxu1 %v2298_v33  ;;  %v1499_v63 = vadd.f32 %v1423_v57, %v1255_v30  ;;  %v991_v50 = vmul.f32 %v3220_v42, %v4147_v36  ;;  %2550 = vst [vmem:[%s4308_s29 + $0x8] sm:$0xff] %v4320_v4  ;;  %v4329_v11 = vpop.f32.mrb[1].mxu0  ;;  %v867_v1 = vrot.slane %v746_v60, 1  ;;  %v992_v21 = vmul.f32 %v3220_v42, %v4141_v48 }
 0x107   : > { %v868_v39 = vrot.slane %v4318_v29, 1  ;;  %v1224_v62 = vmul.f32 %v3225_v46, %v4224_v22  ;;  %2549 = vst [vmem:[%s4308_s29] sm:$0xff] %v4329_v11  ;;  %v1304_v36 = vmul.f32 %v3232_v53, %v4224_v22  ;;  %v4342_v20 = vmul.f32 %v3232_v53, %v4218_v28 }
 0x108   : > { %v1743_v15 = vadd.f32 %v1667_v40, %v1499_v63  ;;  %v1112_v18 = vrot.slane %v991_v50, 2  ;;  %v1113_v19 = vrot.slane %v992_v21, 2  ;;  %v1548_v49 = vmul.f32 %v3234_v54, %v4224_v22 }
 0x109   : > { %v869_v25 = vsel %vm806_vm1, %v867_v1, %v868_v39  ;;  %v1549_v52 = vmul.f32 %v3234_v54, %v4218_v28  ;;  %v1424_v0 = vrot.slane %v1304_v36, 1  ;;  %v1425_v55 = vrot.slane %v4342_v20, 1 }
 0x10a   : > { %v1811_v51 = vadd.f32 %v1779_v10, %v1743_v15  ;;  %v943_v37 = vadd.f32 %v869_v25, %v666_v58  ;;  %v4352_v24 = vsel %vm566_vm0, %v550_v38, 0.0  ;;  %v1114_v44 = vsel %vm1051_vm2, %v1112_v18, %v1113_v19 }
 0x10b   : > { %v1668_v26 = vrot.slane %v1548_v49, 2  ;;  %v1669_v47 = vrot.slane %v1549_v52, 2  ;;  %v1780_v6 = vmul.f32 %v3241_v61, %v4352_v24  ;;  %v1860_v10 = vmul.f32 %v3278_v13, %v4352_v24  ;;  %v380_v52 = vld [vmem:[%s3194_s19 + $0x170] sm:$0xff] }
 0x10c   : > { %v2055_v16 = vadd.f32 %v1979_v23, %v1811_v51  ;;  %v1188_v41 = vadd.f32 %v1114_v44, %v943_v37  ;;  %v1426_v3 = vsel %vm806_vm1, %v1424_v0, %v1425_v55  ;;  %v1861_v17 = vmul.f32 %v3278_v13, %v4323_v32 }
 0x10d   : > { %v2104_v9 = vmul.f32 %v4366_v56, %v4352_v24  ;;  %v2105_v57 = vmul.f32 %v4366_v56, %v4323_v32  ;;  %v1980_v14 = vrot.slane %v1860_v10, 1  ;;  %v438_v33 = vmul.f32 %v4261_v31, %v378_v27 }
 0x10e   : > { %v2299_v40 = vadd.f32 %v2223_v59, %v2055_v16  ;;  %v1256_v7 = vadd.f32 %v1224_v62, %v1188_v41  ;;  %v1670_v30 = vsel %vm1051_vm2, %v1668_v26, %v1669_v47  ;;  %v1981_v2 = vrot.slane %v1861_v17, 1  ;;  %v379_v59 = vld [vmem:[%s3194_s19 + $0x168] sm:$0xff] }
 0x10f   : > { %v2224_v58 = vrot.slane %v2104_v9, 2  ;;  %v2225_v23 = vrot.slane %v2105_v57, 2  ;;  %v498_v60 = vadd.f32 %v4270_v8, %v438_v33  ;;  %v748_v29 = vmul.f32 %v3212_v35, %v4196_v5 }
 0x110   : > { %2952 = vmatmul.mubr.f32.gmra.mrb[6].mxu1 %v2299_v40  ;;  %v1500_v38 = vadd.f32 %v1426_v3, %v1256_v7  ;;  %v993_v63 = vmul.f32 %v3220_v42, %v4196_v5  ;;  %v1982_v50 = vsel %vm806_vm1, %v1980_v14, %v1981_v2  ;;  %v667_v21 = vmul.f32 %v3210_v34, %v4141_v48 }
 0x111   : > { %v2226_v1 = vsel %vm1051_vm2, %v2224_v58, %v2225_v23  ;;  %v1306_v62 = vmul.f32 %v3232_v53, %v4291_v45  ;;  %v552_v18 = vmax.f32 %v498_v60, 0.0  ;;  %v870_v36 = vrot.slane %v748_v29, 1 }
 0x112   : > { %v1744_v15 = vadd.f32 %v1670_v30, %v1500_v38  ;;  %v1115_v20 = vrot.slane %v993_v63, 2  ;;  %v1225_v25 = vmul.f32 %v3225_v46, %v4218_v28  ;;  %v1550_v5 = vmul.f32 %v3234_v54, %v4291_v45 }
 0x113   : > { %v1427_v49 = vrot.slane %v1306_v62, 1  ;;  %v439_v51 = vmul.f32 %v4261_v31, %v379_v59  ;;  %v4394_v48 = vsel %vm577_vm3, %v552_v18, 0.0  ;;  %v871_v0 = vsel %vm806_vm1, %v868_v39, %v870_v36 }
 0x114   : > { %v1812_v37 = vadd.f32 %v1780_v6, %v1744_v15  ;;  %v1116_v44 = vsel %vm1051_vm2, %v1113_v19, %v1115_v20  ;;  %v944_v26 = vadd.f32 %v871_v0, %v667_v21  ;;  %v1671_v27 = vrot.slane %v1550_v5, 2 }
 0x115   : > { %v1781_v16 = vmul.f32 %v3241_v61, %v4323_v32  ;;  %v1862_v41 = vmul.f32 %v3278_v13, %v4394_v48  ;;  %v2106_v6 = vmul.f32 %v4366_v56, %v4394_v48  ;;  %v440_v3 = vmul.f32 %v4261_v31, %v380_v52 }
 0x116   : > { %v2056_v10 = vadd.f32 %v1982_v50, %v1812_v37  ;;  %v499_v17 = vadd.f32 %v4270_v8, %v439_v51  ;;  %v1189_v9 = vadd.f32 %v1116_v44, %v944_v26  ;;  %v1428_v39 = vsel %vm806_vm1, %v1425_v55, %v1427_v49 }
 0x117   : > { %v1672_v19 = vsel %vm1051_vm2, %v1669_v47, %v1671_v27  ;;  %v1983_v57 = vrot.slane %v1862_v41, 1  ;;  %v2227_v7 = vrot.slane %v2106_v6, 2  ;;  %v500_v14 = vadd.f32 %v4270_v8, %v440_v3  ;;  %v381_v41 = vld [vmem:[%s3194_s19 + $0x178] sm:$0x3] }
 0x118   : > { %v2300_v40 = vadd.f32 %v2226_v1, %v2056_v10  ;;  %v668_v33 = vmul.f32 %v3210_v34, %v4224_v22  ;;  %v1257_v30 = vadd.f32 %v1225_v25, %v1189_v9  ;;  %v553_v58 = vmax.f32 %v499_v17, 0.0 }
 0x119   : > { %v749_v38 = vmul.f32 %v3212_v35, %v4224_v22  ;;  %v4415_v55 = vmul.f32 %v3212_v35, %v4218_v28  ;;  %v4417_v47 = vpop.f32.mrb[2].mxu0  ;;  %v1984_v60 = vsel %vm806_vm1, %v1981_v2, %v1983_v57  ;;  %v2228_v29 = vsel %vm1051_vm2, %v2225_v23, %v2227_v7 }
 0x11a   : > { %2954 = vmatprep.mubr.f32.mxu1 %v2300_v40  ;;  %v4421_v63 = vmax.f32 %v500_v14, 0.0  ;;  %v994_v59 = vmul.f32 %v3220_v42, %v4224_v22  ;;  %2552 = vst [vmem:[%s4308_s29 + $0x18] sm:$0xff] %v4417_v47  ;;  %v4427_v50 = vpop.f32.mrb[3].mxu0  ;;  %v1501_v1 = vadd.f32 %v1428_v39, %v1257_v30  ;;  %v995_v15 = vmul.f32 %v3220_v42, %v4218_v28 }
 0x11b   : > { %v872_v21 = vrot.slane %v749_v38, 1  ;;  %v873_v62 = vrot.slane %v4415_v55, 1  ;;  %2551 = vst [vmem:[%s4308_s29 + $0x10] sm:$0xff] %v4427_v50  ;;  %v1226_v23 = vmul.f32 %v3225_v46, %v4352_v24  ;;  %v1307_v22 = vmul.f32 %v3232_v53, %v4352_v24 }
 0x11c   : > { %v1117_v2 = vrot.slane %v994_v59, 2  ;;  %v4440_v18 = vmul.f32 %v3232_v53, %v4323_v32  ;;  %v1745_v36 = vadd.f32 %v1672_v19, %v1501_v1  ;;  %v1118_v25 = vrot.slane %v995_v15, 2 }
 0x11d   : > { %v874_v20 = vsel %vm806_vm1, %v872_v21, %v873_v62  ;;  %v1551_v49 = vmul.f32 %v3234_v54, %v4352_v24  ;;  %v1429_v52 = vrot.slane %v1307_v22, 1  ;;  %v1552_v37 = vmul.f32 %v3234_v54, %v4323_v32  ;;  %v382_v21 = vld [vmem:[%s3194_s19 + $0x180] sm:$0xff] }
 0x11e   : > { %v945_v5 = vadd.f32 %v874_v20, %v668_v33  ;;  %v1430_v51 = vrot.slane %v4440_v18, 1  ;;  %v1813_v0 = vadd.f32 %v1781_v16, %v1745_v36  ;;  %v4450_v44 = vsel %vm566_vm0, %v553_v58, 0.0 }
 0x11f   : > { %v1119_v26 = vsel %vm1051_vm2, %v1117_v2, %v1118_v25  ;;  %v1673_v27 = vrot.slane %v1551_v49, 2  ;;  %v1674_v3 = vrot.slane %v1552_v37, 2  ;;  %v1863_v17 = vmul.f32 %v3278_v13, %v4450_v44  ;;  %v383_v37 = vld [vmem:[%s3194_s19 + $0x188] sm:$0xff] }
 0x120   : > { %v1190_v10 = vadd.f32 %v1119_v26, %v945_v5  ;;  %v1431_v6 = vsel %vm806_vm1, %v1429_v52, %v1430_v51  ;;  %v2057_v9 = vadd.f32 %v1984_v60, %v1813_v0  ;;  %v1864_v16 = vmul.f32 %v3278_v13, %v4421_v63 }
 0x121   : > { %v2107_v39 = vmul.f32 %v4366_v56, %v4450_v44  ;;  %v2108_v19 = vmul.f32 %v4366_v56, %v4421_v63  ;;  %v1675_v40 = vsel %vm1051_vm2, %v1673_v27, %v1674_v3  ;;  %v1985_v7 = vrot.slane %v1863_v17, 1 }
 0x122   : > { %v1258_v57 = vadd.f32 %v1226_v23, %v1190_v10  ;;  %v441_v14 = vmul.f32 %v4261_v31, %v381_v41  ;;  %v2301_v33 = vadd.f32 %v2228_v29, %v2057_v9  ;;  %v1986_v30 = vrot.slane %v1864_v16, 1 }
 0x123   : > { %v2229_v58 = vrot.slane %v2107_v39, 2  ;;  %v2230_v38 = vrot.slane %v2108_v19, 2  ;;  %v1782_v60 = vmul.f32 %v3241_v61, %v4450_v44  ;;  %v751_v1 = vmul.f32 %v3212_v35, %v4291_v45 }
 0x124   : > { %v1502_v55 = vadd.f32 %v1431_v6, %v1258_v57  ;;  %v501_v59 = vadd.f32 %v4270_v8, %v441_v14  ;;  %2955 = vmatmul.mubr.f32.gmra.mrb[8].mxu1 %v2301_v33  ;;  %v1987_v15 = vsel %vm806_vm1, %v1985_v7, %v1986_v30  ;;  %v669_v29 = vmul.f32 %v3210_v34, %v4218_v28 }
 0x125   : > { %v2231_v2 = vsel %vm1051_vm2, %v2229_v58, %v2230_v38  ;;  %v996_v23 = vmul.f32 %v3220_v42, %v4291_v45  ;;  %v875_v36 = vrot.slane %v751_v1, 1  ;;  %v1309_v20 = vmul.f32 %v3232_v53, %v4394_v48 }
 0x126   : > { %v1746_v22 = vadd.f32 %v1675_v40, %v1502_v55  ;;  %v555_v18 = vmax.f32 %v501_v59, 0.0  ;;  %v1227_v5 = vmul.f32 %v3225_v46, %v4323_v32  ;;  %v1553_v52 = vmul.f32 %v3234_v54, %v4394_v48 }
 0x127   : > { %v1120_v49 = vrot.slane %v996_v23, 2  ;;  %v442_v0 = vmul.f32 %v4261_v31, %v382_v21  ;;  %v876_v26 = vsel %vm806_vm1, %v873_v62, %v875_v36  ;;  %v1432_v27 = vrot.slane %v1309_v20, 1 }
 0x128   : > { %v1814_v28 = vadd.f32 %v1782_v60, %v1746_v22  ;;  %v4487_v45 = vsel %vm577_vm3, %v555_v18, 0.0  ;;  %v946_v41 = vadd.f32 %v876_v26, %v669_v29  ;;  %v1676_v6 = vrot.slane %v1553_v52, 2 }
 0x129   : > { %v1121_v10 = vsel %vm1051_vm2, %v1118_v25, %v1120_v49  ;;  %v1865_v17 = vmul.f32 %v3278_v13, %v4487_v45  ;;  %v1783_v16 = vmul.f32 %v3241_v61, %v4421_v63  ;;  %v2109_v39 = vmul.f32 %v4366_v56, %v4487_v45 }
 0x12a   : > { %v2058_v9 = vadd.f32 %v1987_v15, %v1814_v28  ;;  %v443_v19 = vmul.f32 %v4261_v31, %v383_v37  ;;  %v1191_v57 = vadd.f32 %v1121_v10, %v946_v41  ;;  %v1433_v62 = vsel %vm806_vm1, %v1430_v51, %v1432_v27 }
 0x12b   : > { %v1988_v40 = vrot.slane %v1865_v17, 1  ;;  %v502_v7 = vadd.f32 %v4270_v8, %v442_v0  ;;  %v1677_v14 = vsel %vm1051_vm2, %v1674_v3, %v1676_v6  ;;  %v2232_v33 = vrot.slane %v2109_v39, 2 }
 0x12c   : > { %v2302_v25 = vadd.f32 %v2231_v2, %v2058_v9  ;;  %v503_v58 = vadd.f32 %v4270_v8, %v443_v19  ;;  %v1259_v55 = vadd.f32 %v1227_v5, %v1191_v57  ;;  %v670_v59 = vmul.f32 %v3210_v34, %v4352_v24  ;;  %v384_v57 = vld [vmem:[%s3194_s19 + $0x190] sm:$0x3]  ;;  %s2830_s19 = sshll.u32 %s4727_s24, 3 }
 0x12d   : > { %v556_v60 = vmax.f32 %v502_v7, 0.0  ;;  %v752_v1 = vmul.f32 %v3212_v35, %v4352_v24  ;;  %v1989_v51 = vsel %vm806_vm1, %v1986_v30, %v1988_v40  ;;  %v2233_v21 = vsel %vm1051_vm2, %v2230_v38, %v2232_v33  ;;  %s319_s11 = scalar_lea.vmem %s4720_s6, %s2830_s19  ;;  %s323_s14 = scalar_lea.vmem %s4721_s7, %s2830_s19 }
 0x12e   : > { %2957 = vmatprep.mubr.f32.mxu1 %v2302_v25  ;;  %v753_v3 = vmul.f32 %v3212_v35, %v4323_v32  ;;  %v997_v15 = vmul.f32 %v3220_v42, %v4352_v24  ;;  %v4512_v2 = vpop.f32.mrb[4].mxu0  ;;  %v1503_v29 = vadd.f32 %v1433_v62, %v1259_v55  ;;  %v4514_v23 = vmax.f32 %v503_v58, 0.0 }
 0x12f   : > { %v877_v22 = vrot.slane %v752_v1, 1  ;;  %v998_v18 = vmul.f32 %v3220_v42, %v4323_v32  ;;  %2554 = vst [vmem:[%s4308_s29 + $0x28] sm:$0xff] %v4512_v2  ;;  %v4520_v30 = vpop.f32.mrb[5].mxu0  ;;  %v4524_v38 = vsel %vm566_vm0, %v556_v60, 0.0  ;;  %v1310_v24 = vmul.f32 %v3232_v53, %v4450_v44 }
 0x130   : > { %v878_v36 = vrot.slane %v753_v3, 1  ;;  %v1122_v20 = vrot.slane %v997_v15, 2  ;;  %2553 = vst [vmem:[%s4308_s29 + $0x20] sm:$0xff] %v4520_v30  ;;  %v1747_v49 = vadd.f32 %v1677_v14, %v1503_v29  ;;  %v1311_v52 = vmul.f32 %v3232_v53, %v4421_v63 }
 0x131   : > { %v1123_v5 = vrot.slane %v998_v18, 2  ;;  %v1554_v37 = vmul.f32 %v3234_v54, %v4450_v44  ;;  %v1228_v0 = vmul.f32 %v3225_v46, %v4450_v44  ;;  %v1434_v28 = vrot.slane %v1310_v24, 1 }
 0x132   : > { %v879_v12 = vsel %vm806_vm1, %v877_v22, %v878_v36  ;;  %v4539_v26 = vmul.f32 %v3234_v54, %v4421_v63  ;;  %v1815_v27 = vadd.f32 %v1783_v16, %v1747_v49  ;;  %v1435_v6 = vrot.slane %v1311_v52, 1 }
 0x133   : > { %v947_v41 = vadd.f32 %v879_v12, %v670_v59  ;;  %v1124_v10 = vsel %vm1051_vm2, %v1122_v20, %v1123_v5  ;;  %v1678_v17 = vrot.slane %v1554_v37, 2  ;;  %v1866_v39 = vmul.f32 %v3278_v13, %v4524_v38 }
 0x134   : > { %v1679_v9 = vrot.slane %v4539_v26, 2  ;;  %v4547_v19 = vmul.f32 %v3278_v13, %v4514_v23  ;;  %v2059_v62 = vadd.f32 %v1989_v51, %v1815_v27  ;;  %v2110_v16 = vmul.f32 %v4366_v56, %v4524_v38 }
 0x135   : > { %v1192_v40 = vadd.f32 %v1124_v10, %v947_v41  ;;  %v1436_v7 = vsel %vm806_vm1, %v1434_v28, %v1435_v6  ;;  %v1990_v25 = vrot.slane %v1866_v39, 1  ;;  %v4556_v33 = vmul.f32 %v4366_v56, %v4514_v23 }
 0x136   : > { %v1991_v14 = vrot.slane %v4547_v19, 1  ;;  %v2303_v58 = vadd.f32 %v2233_v21, %v2059_v62  ;;  %v1784_v60 = vmul.f32 %v3241_v61, %v4524_v38  ;;  %v444_v59 = vmul.f32 %v4261_v31, %v384_v57 }
 0x137   : > { %v1260_v55 = vadd.f32 %v1228_v0, %v1192_v40  ;;  %v1680_v1 = vsel %vm1051_vm2, %v1678_v17, %v1679_v9  ;;  %v2234_v51 = vrot.slane %v2110_v16, 2  ;;  %v2235_v3 = vrot.slane %v4556_v33, 2 }
 0x138   : > { %v754_v15 = vmul.f32 %v3212_v35, %v4394_v48  ;;  %2958 = vmatmul.mubr.f32.gmra.mrb[10].mxu1 %v2303_v58  ;;  %v504_v22 = vadd.f32 %v4270_v8, %v444_v59  ;;  %v671_v21 = vmul.f32 %v3210_v34, %v4323_v32  ;;  %v999_v18 = vmul.f32 %v3220_v42, %v4394_v48 }
 0x139   : > { %v1504_v29 = vadd.f32 %v1436_v7, %v1260_v55  ;;  %v1992_v31 = vsel %vm806_vm1, %v1990_v25, %v1991_v14  ;;  %v1312_v24 = vmul.f32 %v3232_v53, %v4487_v45  ;;  %v1556_v49 = vmul.f32 %v3234_v54, %v4487_v45 }
 0x13a   : > { %v880_v20 = vrot.slane %v754_v15, 1  ;;  %v558_v37 = vmax.f32 %v504_v22, 0.0  ;;  %v1125_v8 = vrot.slane %v999_v18, 2  ;;  %v1229_v32 = vmul.f32 %v3225_v46, %v4421_v63 }
 0x13b   : > { %v1748_v52 = vadd.f32 %v1680_v1, %v1504_v29  ;;  %v2236_v48 = vsel %vm1051_vm2, %v2234_v51, %v2235_v3  ;;  %v1437_v0 = vrot.slane %v1312_v24, 1  ;;  %v1785_v28 = vmul.f32 %v3241_v61, %v4514_v23 }
 0x13c   : > { %v881_v12 = vsel %vm806_vm1, %v878_v36, %v880_v20  ;;  %v634_v27 = vsel %vm577_vm3, %v558_v37, 0.0  ;;  %v1126_v10 = vsel %vm1051_vm2, %v1123_v5, %v1125_v8  ;;  %v1681_v17 = vrot.slane %v1556_v49, 2 }
 0x13d   : > { %v1816_v26 = vadd.f32 %v1784_v60, %v1748_v52  ;;  %v948_v41 = vadd.f32 %v881_v12, %v671_v21  ;;  %v1868_v39 = vmul.f32 %v3278_v13, %v634_v27  ;;  %v2112_v57 = vmul.f32 %v4366_v56, %v634_v27 }
 0x13e   : > { %v672_v62 = vmul.f32 %v3210_v34, %v4450_v44  ;;  %v755_v16 = vmul.f32 %v3212_v35, %v4450_v44  ;;  %v756_v43 = vmul.f32 %v3212_v35, %v4421_v63  ;;  %v1438_v7 = vsel %vm806_vm1, %v1435_v6, %v1437_v0 }
 0x13f   : > { %v2060_v36 = vadd.f32 %v1992_v31, %v1816_v26  ;;  %v1193_v40 = vadd.f32 %v1126_v10, %v948_v41  ;;  %v1993_v5 = vrot.slane %v1868_v39, 1  ;;  %v1000_v25 = vmul.f32 %v3220_v42, %v4450_v44 }
 0x140   : > { %v1001_v58 = vmul.f32 %v3220_v42, %v4421_v63  ;;  %v882_v59 = vrot.slane %v755_v16, 1  ;;  %v883_v1 = vrot.slane %v756_v43, 1  ;;  %v1682_v15 = vsel %vm1051_vm2, %v1679_v9, %v1681_v17 }
 0x141   : > { %v2304_v55 = vadd.f32 %v2236_v48, %v2060_v36  ;;  %v1261_v60 = vadd.f32 %v1229_v32, %v1193_v40  ;;  %v4601_v51 = vpop.f32.mrb[6].mxu0  ;;  %v2237_v29 = vrot.slane %v2112_v57, 2  ;;  %v1127_v22 = vrot.slane %v1000_v25, 2 }
 0x142   : > { %v1128_v21 = vrot.slane %v1001_v58, 2  ;;  %2556 = vst [vmem:[%s4308_s29 + $0x38] sm:$0xff] %v4601_v51  ;;  %v4606_v6 = vpop.f32.mrb[7].mxu0  ;;  %v884_v18 = vsel %vm806_vm1, %v882_v59, %v883_v1  ;;  %v1230_v31 = vmul.f32 %v3225_v46, %v4524_v38  ;;  %v1313_v20 = vmul.f32 %v3232_v53, %v4524_v38 }
 0x143   : > { %2960 = vmatprep.mubr.f32.mxu1 %v2304_v55  ;;  %v1505_v44 = vadd.f32 %v1438_v7, %v1261_v60  ;;  %2555 = vst [vmem:[%s4308_s29 + $0x30] sm:$0xff] %v4606_v6  ;;  %v949_v9 = vadd.f32 %v884_v18, %v672_v62  ;;  %v1314_v49 = vmul.f32 %v3232_v53, %v4514_v23  ;;  %v4626_v41 = vmul.f32 0.0, %v3278_v13 }
 0x144   : > { %v1129_v24 = vsel %vm1051_vm2, %v1127_v22, %v1128_v21  ;;  %v1557_v52 = vmul.f32 %v3234_v54, %v4524_v38  ;;  %v1994_v8 = vsel %vm806_vm1, %v1991_v14, %v1993_v5  ;;  %v1439_v32 = vrot.slane %v1313_v20, 1 }
 0x145   : > { %v1749_v37 = vadd.f32 %v1682_v15, %v1505_v44  ;;  %v1558_v48 = vmul.f32 %v3234_v54, %v4514_v23  ;;  %v1194_v12 = vadd.f32 %v1129_v24, %v949_v9  ;;  %v1440_v0 = vrot.slane %v1314_v49, 1 }
 0x146   : > { %v1683_v26 = vrot.slane %v1557_v52, 2  ;;  %v2238_v38 = vsel %vm1051_vm2, %v2235_v3, %v2237_v29  ;;  %v1786_v19 = vmul.f32 0.0, %v3241_v61  ;;  %v2113_v57 = vmul.f32 0.0, %v4366_v56 }
 0x147   : > { %v1817_v10 = vadd.f32 %v1785_v28, %v1749_v37  ;;  %v1684_v17 = vrot.slane %v1558_v48, 2  ;;  %v1262_v39 = vadd.f32 %v1230_v31, %v1194_v12  ;;  %v1441_v14 = vsel %vm806_vm1, %v1439_v32, %v1440_v0 }
 0x148   : > { %v757_v62 = vmul.f32 %v3212_v35, %v4487_v45  ;;  %v673_v28 = vmul.f32 %v3210_v34, %v4421_v63  ;;  %v1002_v33 = vmul.f32 %v3220_v42, %v4487_v45  ;;  %v1995_v61 = vrot.slane %v4626_v41, 1 }
 0x149   : > { %v2061_v36 = vadd.f32 %v1994_v8, %v1817_v10  ;;  %v1685_v13 = vsel %vm1051_vm2, %v1683_v26, %v1684_v17  ;;  %v1506_v3 = vadd.f32 %v1441_v14, %v1262_v39  ;;  %v1315_v16 = vmul.f32 %v3232_v53, %v634_v27 }
 0x14a   : > { %v885_v40 = vrot.slane %v757_v62, 1  ;;  %v1130_v56 = vrot.slane %v1002_v33, 2  ;;  %v1559_v7 = vmul.f32 %v3234_v54, %v634_v27  ;;  %v2623_v35 = vmul.f32 %v4320_v4, %v4320_v4 }
 0x14b   : > { %v2305_v43 = vadd.f32 %v2238_v38, %v2061_v36  ;;  %v1750_v5 = vadd.f32 %v1685_v13, %v1506_v3  ;;  %v1442_v34 = vrot.slane %v1315_v16, 1  ;;  %v2582_v42 = vadd.f32 %v4320_v4, %v4329_v11 }
 0x14c   : > { %v886_v25 = vsel %vm806_vm1, %v883_v1, %v885_v40  ;;  %v1131_v45 = vsel %vm1051_vm2, %v1128_v21, %v1130_v56  ;;  %v1231_v53 = vmul.f32 %v3225_v46, %v4514_v23  ;;  %v2622_v54 = vmul.f32 %v4329_v11, %v4329_v11 }
 0x14d   : > { %2961 = vmatmul.mubr.f32.gmra.mrb[12].mxu1 %v2305_v43  ;;  %v950_v63 = vadd.f32 %v886_v25, %v673_v28  ;;  %v1818_v27 = vadd.f32 %v1786_v19, %v1750_v5  ;;  %v2239_v58 = vrot.slane %v2113_v57, 2  ;;  %v1686_v55 = vrot.slane %v1559_v7, 2 }
 0x14e   : > { %v2583_v60 = vadd.f32 %v2582_v42, %v4427_v50  ;;  %v2654_v1 = vadd.f32 %v2623_v35, %v2622_v54  ;;  %v2624_v4 = vmul.f32 %v4427_v50, %v4427_v50  ;;  %v1443_v29 = vsel %vm806_vm1, %v1440_v0, %v1442_v34 }
 0x14f   : > { %v1195_v59 = vadd.f32 %v1131_v45, %v950_v63  ;;  %v2062_v15 = vadd.f32 %v1995_v61, %v1818_v27  ;;  %v2625_v46 = vmul.f32 %v4417_v47, %v4417_v47  ;;  %v2626_v23 = vmul.f32 %v4520_v30, %v4520_v30 }
 0x150   : > { %v2584_v22 = vadd.f32 %v4417_v47, %v2583_v60  ;;  %v2655_v11 = vadd.f32 %v2654_v1, %v2624_v4  ;;  %v1687_v18 = vsel %vm1051_vm2, %v1684_v17, %v1686_v55  ;;  %v2627_v47 = vmul.f32 %v4512_v2, %v4512_v2 }
 0x151   : > { %v1263_v21 = vadd.f32 %v1231_v53, %v1195_v59  ;;  %v2306_v44 = vadd.f32 %v2239_v58, %v2062_v15  ;;  %v2628_v52 = vmul.f32 %v4606_v6, %v4606_v6 }
 0x152   : > { %v2585_v50 = vadd.f32 %v2584_v22, %v4520_v30  ;;  %v2656_v20 = vadd.f32 %v2655_v11, %v2625_v46 }
 0x153   : > { %v1507_v31 = vadd.f32 %v1443_v29, %v1263_v21  ;;  %2963 = vmatprep.mubr.f32.mxu1 %v2306_v44 }
 0x154   : > { %v2586_v9 = vadd.f32 %v4512_v2, %v2585_v50  ;;  %v2657_v49 = vadd.f32 %v2656_v20, %v2626_v23  ;;  %v2629_v2 = vmul.f32 %v4601_v51, %v4601_v51 }
 0x155   : > { %v1751_v24 = vadd.f32 %v1687_v18, %v1507_v31  ;;  %v2932_v8 = vpop.f32.mrb[8].mxu0 }
 0x156   : > { %v2587_v37 = vadd.f32 %v2586_v9, %v4606_v6  ;;  %v2658_v48 = vadd.f32 %v2657_v49, %v2627_v47  ;;  %2558 = vst [vmem:[%s4308_s29 + $0x48] sm:$0xff] %v2932_v8  ;;  %v2430_v30 = vpop.f32.mrb[9].mxu0 }
 0x157   : > { %v1819_v32 = vadd.f32 %v1786_v19, %v1751_v24  ;;  %2557 = vst [vmem:[%s4308_s29 + $0x40] sm:$0xff] %v2430_v30  ;;  %v2630_v41 = vmul.f32 %v2430_v30, %v2430_v30  ;;  %v2631_v19 = vmul.f32 %v2932_v8, %v2932_v8 }
 0x158   : > { %v2588_v12 = vadd.f32 %v4601_v51, %v2587_v37  ;;  %v2659_v26 = vadd.f32 %v2658_v48, %v2628_v52 }
 0x159   : > { %v2063_v0 = vadd.f32 %v1995_v61, %v1819_v32 }
 0x15a   : > { %v2589_v10 = vadd.f32 %v2588_v12, %v2430_v30  ;;  %v2660_v17 = vadd.f32 %v2659_v26, %v2629_v2 }
 0x15b   : > { %v2307_v38 = vadd.f32 %v2239_v58, %v2063_v0 }
 0x15c   : > { %v2590_v6 = vadd.f32 %v2932_v8, %v2589_v10  ;;  %v2661_v39 = vadd.f32 %v2660_v17, %v2630_v41 }
 0x15d   : > { %2964 = vmatmul.mubr.f32.gmra.mrb[14].mxu1 %v2307_v38 }
 0x15e   : > { %v2662_v14 = vadd.f32 %v2661_v39, %v2631_v19 }
 0x169   : > { %v2935_v57 = vpop.f32.mrb[10].mxu0 }
 0x16a   : > { %2560 = vst [vmem:[%s4308_s29 + $0x58] sm:$0xff] %v2935_v57  ;;  %v2440_v62 = vpop.f32.mrb[11].mxu0  ;;  %v2633_v51 = vmul.f32 %v2935_v57, %v2935_v57 }
 0x16b   : > { %2559 = vst [vmem:[%s4308_s29 + $0x50] sm:$0xff] %v2440_v62  ;;  %v2591_v36 = vadd.f32 %v2590_v6, %v2440_v62  ;;  %v2632_v13 = vmul.f32 %v2440_v62, %v2440_v62 }
 0x16d   : > { %v2663_v28 = vadd.f32 %v2662_v14, %v2632_v13  ;;  %v2592_v33 = vadd.f32 %v2935_v57, %v2591_v36 }
 0x16f   : > { %v2664_v3 = vadd.f32 %v2663_v28, %v2633_v51 }
 0x17d   : > { %v2938_v61 = vpop.f32.mrb[12].mxu0 }
 0x17e   : > { %2562 = vst [vmem:[%s4308_s29 + $0x68] sm:$0xff] %v2938_v61  ;;  %v2450_v40 = vpop.f32.mrb[13].mxu0  ;;  %v2635_v56 = vmul.f32 %v2938_v61, %v2938_v61 }
 0x17f   : > { %2561 = vst [vmem:[%s4308_s29 + $0x60] sm:$0xff] %v2450_v40  ;;  %v2593_v16 = vadd.f32 %v2592_v33, %v2450_v40  ;;  %v2634_v43 = vmul.f32 %v2450_v40, %v2450_v40 }
 0x181   : > { %v2665_v7 = vadd.f32 %v2664_v3, %v2634_v43  ;;  %v2594_v35 = vadd.f32 %v2938_v61, %v2593_v16 }
 0x183   : > { %v2666_v5 = vadd.f32 %v2665_v7, %v2635_v56 }
 0x192   : > { %v2941_v25 = vpop.f32.mrb[14].mxu0 }
 0x193   : > { %2564 = vst [vmem:[%s4308_s29 + $0x78] sm:$0xff] %v2941_v25  ;;  %v2460_v34 = vpop.f32.mrb[15].mxu0  ;;  %v2637_v45 = vmul.f32 %v2941_v25, %v2941_v25 }
 0x194   : > { %2563 = vst [vmem:[%s4308_s29 + $0x70] sm:$0xff] %v2460_v34  ;;  %v2595_v42 = vadd.f32 %v2594_v35, %v2460_v34  ;;  %v2636_v63 = vmul.f32 %v2460_v34, %v2460_v34 }
 0x196   : > { %v2596_v53 = vadd.f32 %v2941_v25, %v2595_v42  ;;  %v2667_v54 = vadd.f32 %v2666_v5, %v2636_v63 }
 0x198   : > { %v2668_v27 = vadd.f32 %v2667_v54, %v2637_v45 }
 0x1a6   : > { %v2944_v58 = vpop.f32.mrb[0].mxu1 }
 0x1a7   : > { %2566 = vst [vmem:[%s4308_s29 + $0x88] sm:$0xff] %v2944_v58  ;;  %v2470_v55 = vpop.f32.mrb[1].mxu1  ;;  %v2639_v1 = vmul.f32 %v2944_v58, %v2944_v58 }
 0x1a8   : > { %2565 = vst [vmem:[%s4308_s29 + $0x80] sm:$0xff] %v2470_v55  ;;  %v2597_v60 = vadd.f32 %v2596_v53, %v2470_v55  ;;  %v2638_v59 = vmul.f32 %v2470_v55, %v2470_v55 }
 0x1aa   : > { %v2669_v4 = vadd.f32 %v2668_v27, %v2638_v59  ;;  %v2598_v15 = vadd.f32 %v2944_v58, %v2597_v60 }
 0x1ac   : > { %v2670_v29 = vadd.f32 %v2669_v4, %v2639_v1 }
 0x1ba   : > { %v2947_v22 = vpop.f32.mrb[2].mxu1 }
 0x1bb   : > { %2568 = vst [vmem:[%s4308_s29 + $0x98] sm:$0xff] %v2947_v22  ;;  %v2480_v21 = vpop.f32.mrb[3].mxu1  ;;  %v2641_v23 = vmul.f32 %v2947_v22, %v2947_v22 }
 0x1bc   : > { %2567 = vst [vmem:[%s4308_s29 + $0x90] sm:$0xff] %v2480_v21  ;;  %v2599_v46 = vadd.f32 %v2598_v15, %v2480_v21  ;;  %v2640_v11 = vmul.f32 %v2480_v21, %v2480_v21 }
 0x1be   : > { %v2671_v44 = vadd.f32 %v2670_v29, %v2640_v11  ;;  %v2600_v18 = vadd.f32 %v2947_v22, %v2599_v46 }
 0x1c0   : > { %v2672_v50 = vadd.f32 %v2671_v44, %v2641_v23 }
 0x1ce   : > { %v2950_v31 = vpop.f32.mrb[4].mxu1 }
 0x1cf   : > { %2570 = vst [vmem:[%s4308_s29 + $0xa8] sm:$0xff] %v2950_v31  ;;  %v2490_v20 = vpop.f32.mrb[5].mxu1  ;;  %v2643_v47 = vmul.f32 %v2950_v31, %v2950_v31 }
 0x1d0   : > { %2569 = vst [vmem:[%s4308_s29 + $0xa0] sm:$0xff] %v2490_v20  ;;  %v2601_v9 = vadd.f32 %v2600_v18, %v2490_v20  ;;  %v2642_v24 = vmul.f32 %v2490_v20, %v2490_v20 }
 0x1d2   : > { %v2673_v49 = vadd.f32 %v2672_v50, %v2642_v24  ;;  %v2602_v52 = vadd.f32 %v2950_v31, %v2601_v9 }
 0x1d4   : > { %v2674_v37 = vadd.f32 %v2673_v49, %v2643_v47 }
 0x1e3   : > { %v2953_v8 = vpop.f32.mrb[6].mxu1 }
 0x1e4   : > { %2572 = vst [vmem:[%s4308_s29 + $0xb8] sm:$0xff] %v2953_v8  ;;  %v2500_v32 = vpop.f32.mrb[7].mxu1  ;;  %v2645_v12 = vmul.f32 %v2953_v8, %v2953_v8 }
 0x1e5   : > { %2571 = vst [vmem:[%s4308_s29 + $0xb0] sm:$0xff] %v2500_v32  ;;  %v2603_v48 = vadd.f32 %v2602_v52, %v2500_v32  ;;  %v2644_v30 = vmul.f32 %v2500_v32, %v2500_v32 }
 0x1e7   : > { %v2675_v0 = vadd.f32 %v2674_v37, %v2644_v30  ;;  %v2604_v2 = vadd.f32 %v2953_v8, %v2603_v48 }
 0x1e9   : > { %v2676_v26 = vadd.f32 %v2675_v0, %v2645_v12 }
 0x1f7   : > { %v2956_v41 = vpop.f32.mrb[8].mxu1 }
 0x1f8   : > { %2574 = vst [vmem:[%s4308_s29 + $0xc8] sm:$0xff] %v2956_v41  ;;  %v2510_v10 = vpop.f32.mrb[9].mxu1  ;;  %v2647_v6 = vmul.f32 %v2956_v41, %v2956_v41 }
 0x1f9   : > { %2573 = vst [vmem:[%s4308_s29 + $0xc0] sm:$0xff] %v2510_v10  ;;  %v2605_v38 = vadd.f32 %v2604_v2, %v2510_v10  ;;  %v2646_v17 = vmul.f32 %v2510_v10, %v2510_v10 }
 0x1fb   : > { %v2677_v19 = vadd.f32 %v2676_v26, %v2646_v17  ;;  %v2606_v39 = vadd.f32 %v2956_v41, %v2605_v38 }
 0x1fd   : > { %v2678_v14 = vadd.f32 %v2677_v19, %v2647_v6 }
 0x20b   : > { %v2959_v57 = vpop.f32.mrb[10].mxu1 }
 0x20c   : > { %2576 = vst [vmem:[%s4308_s29 + $0xd8] sm:$0xff] %v2959_v57  ;;  %v2520_v62 = vpop.f32.mrb[11].mxu1  ;;  %v2649_v51 = vmul.f32 %v2959_v57, %v2959_v57 }
 0x20d   : > { %2575 = vst [vmem:[%s4308_s29 + $0xd0] sm:$0xff] %v2520_v62  ;;  %v2607_v36 = vadd.f32 %v2606_v39, %v2520_v62  ;;  %v2648_v13 = vmul.f32 %v2520_v62, %v2520_v62 }
 0x20f   : > { %v2679_v28 = vadd.f32 %v2678_v14, %v2648_v13  ;;  %v2608_v33 = vadd.f32 %v2959_v57, %v2607_v36 }
 0x211   : > { %v2680_v3 = vadd.f32 %v2679_v28, %v2649_v51 }
 0x220   : > { %v2962_v61 = vpop.f32.mrb[12].mxu1 }
 0x221   : > { %2578 = vst [vmem:[%s4308_s29 + $0xe8] sm:$0xff] %v2962_v61  ;;  %v2530_v40 = vpop.f32.mrb[13].mxu1  ;;  %v2651_v56 = vmul.f32 %v2962_v61, %v2962_v61 }
 0x222   : > { %2577 = vst [vmem:[%s4308_s29 + $0xe0] sm:$0xff] %v2530_v40  ;;  %v2609_v16 = vadd.f32 %v2608_v33, %v2530_v40  ;;  %v2650_v43 = vmul.f32 %v2530_v40, %v2530_v40 }
 0x224   : > { %v2681_v7 = vadd.f32 %v2680_v3, %v2650_v43  ;;  %v2610_v35 = vadd.f32 %v2962_v61, %v2609_v16 }
 0x226   : > { %v2682_v5 = vadd.f32 %v2681_v7, %v2651_v56 }
 0x230   : > { %v2965_v25 = vpop.f32.mrb[14].mxu1 }
 0x231   : > { %2580 = vst [vmem:[%s4308_s29 + $0xf8] sm:$0xff] %v2965_v25  ;;  %v2540_v34 = vpop.f32.mrb[15].mxu1  ;;  %v2653_v45 = vmul.f32 %v2965_v25, %v2965_v25 }
 0x232   : > { %2579 = vst [vmem:[%s4308_s29 + $0xf0] sm:$0xff] %v2540_v34  ;;  %v2611_v42 = vadd.f32 %v2610_v35, %v2540_v34  ;;  %v2652_v63 = vmul.f32 %v2540_v34, %v2540_v34 }
 0x234   : > { %v2612_v53 = vadd.f32 %v2965_v25, %v2611_v42  ;;  %v2683_v54 = vadd.f32 %v2682_v5, %v2652_v63 }
 0x236   : > { %v2613_v27 = vrot.slane %v2612_v53, 4  ;;  %v2684_v58 = vadd.f32 %v2683_v54, %v2653_v45 }
 0x238   : > { %v2614_v55 = vadd.f32 %v2613_v27, %v2612_v53  ;;  %v2685_v60 = vrot.slane %v2684_v58, 4 }
 0x23a   : > { %v2615_v59 = vrot.slane %v2614_v55, 2  ;;  %v2686_v1 = vadd.f32 %v2685_v60, %v2684_v58 }
 0x23c   : > { %v2616_v4 = vadd.f32 %v2615_v59, %v2614_v55  ;;  %v2687_v15 = vrot.slane %v2686_v1, 2 }
 0x23e   : > { %v2617_v29 = vrot.slane %v2616_v4, 1  ;;  %v2688_v22 = vadd.f32 %v2687_v15, %v2686_v1 }
 0x240   : > { %v2618_v21 = vadd.f32 %v2617_v29, %v2616_v4  ;;  %v2689_v46 = vrot.slane %v2688_v22, 1 }
 0x242   : > { %v2690_v11 = vadd.f32 %v2689_v46, %v2688_v22  ;;  %2620 = vst [vmem:[%s319_s11] sm:$0xff] %v2618_v21 }
 0x244   : > { %2692 = vst [vmem:[%s323_s14] sm:$0xff] %v2690_v11 }
 0x245 PF: > { %s18_s26 = sadd.s32 1, %s3068_s26   ;;  %s4722_s24 = smov %s3064_s25 }
 0x246   : > { %p15_p5 = scmp.ge.s32.totalorder %s18_s26, 4   ;;  %s4723_s25 = smov %s4725_s27 }
 0x248   :  { %17 = sbr.rel (!%p15_p5) target bundleno = 2 (0x2), region = 98 }

// kernel: sep_conv_m.2
= control target key start
LH: loop header
LB: loop body
LE: loop exit
PB: predicated region body
PF: predicated region fallthrough
CT: control target
= control target key end

     0   :  { %s3034_s24 = smov 0   ;;  %s3036_s25 = smov 0   ;;  %s4678_s0 = inlined_call_operand.vmem [shape: f32[2,18,18,128], index: 0, kind: input, shape index: {}]   ;;  %s4679_s1 = inlined_call_operand.vmem [shape: f32[1,128], index: 1, kind: input, shape index: {}]   ;;  %s4680_s2 = inlined_call_operand.vmem [shape: f32[1,128], index: 2, kind: input, shape index: {}]   ;;  %s4681_s3 = inlined_call_operand.vmem [shape: f32[9,128], index: 3, kind: input, shape index: {}]   ;;  %s4682_s4 = inlined_call_operand.vmem [shape: f32[128,128], index: 4, kind: input, shape index: {}]   ;;  %s4683_s5 = inlined_call_operand.vmem [shape: f32[2,256,128], index: 5, kind: output, shape index: {0}]   ;;  %s4684_s6 = inlined_call_operand.vmem [shape: f32[2,8,128], index: 6, kind: output, shape index: {1}]   ;;  %s4685_s7 = inlined_call_operand.vmem [shape: f32[2,8,128], index: 7, kind: output, shape index: {2}]  }
   0x1   :  { %s3038_s26 = smov 0  }
   0x2 LB: > { %s30_s27 = sadd.s32 1, %s2988_s25  ;;  %p2750_p0 = scmp.ge.s32.totalorder %s2992_s26, 1  ;;  %s2992_s26 = sphi %s3038_s26, %s18_s26   ;;  %s2988_s25 = sphi %s3036_s25, %s4687_s25   ;;  %s2984_s24 = sphi %s3034_s24, %s4686_s24  }
   0x3   : > { %p32_p1 = scmp.ge.s32.totalorder %s30_s27, 2  ;;  %p260_p2 = scmp.lt.s32.totalorder %s2992_s26, 3 }
   0x5   : > { %s4689_s27 = smov (%p32_p1, %s30_s27), 0  ;;  %p261_p3 = pnand %p2750_p0, %p260_p2 }
   0x6   : > { %v2232_v0 = vld [vmem:[%s4682_s4] sm:$0xff] (!%p261_p3)  ;;  %v2233_v1 = vld [vmem:[%s4682_s4 + $0x8] sm:$0xff] (!%p261_p3)  ;;  %v2234_v2 = vld [vmem:[%s4682_s4 + $0x10] sm:$0xff] (!%p261_p3)  ;;  %p303_p4 = scmp.lt.s32.totalorder (!%p261_p3), %s2984_s24, 1  ;;  %v562_v3 = vlaneseq (!%p261_p3)  ;;  %vm730_vm0 = vcmask (!%p261_p3), 1046528   ;;  %vm975_vm1 = vcmask (!%p261_p3), 1045504  }
   0x7   : > { %264 = sbr.rel (%p261_p3) target bundleno = 582 (0x246), region = 40  ;;  %v2890_v4 = vpack.c.bf16 (!%p261_p3), %v2233_v1, %v2232_v0  ;;  %v2235_v5 = vld [vmem:[%s4682_s4 + $0x18] sm:$0xff] (!%p261_p3)  ;;  %v2236_v6 = vld [vmem:[%s4682_s4 + $0x20] sm:$0xff] (!%p261_p3)  ;;  %v2237_v7 = vld [vmem:[%s4682_s4 + $0x28] sm:$0xff] (!%p261_p3) }
   0x8   : > { %v2894_v8 = vpack.c.bf16 (!%p261_p3), %v2235_v5, %v2234_v2  ;;  %v2238_v9 = vld [vmem:[%s4682_s4 + $0x30] sm:$0xff] (!%p261_p3)  ;;  %v2239_v10 = vld [vmem:[%s4682_s4 + $0x38] sm:$0xff] (!%p261_p3)  ;;  %v2240_v11 = vld [vmem:[%s4682_s4 + $0x40] sm:$0xff] (!%p261_p3)  ;;  %v3081_v12 = vshrl.u32 (!%p261_p3), %v562_v3, 7  ;;  %v3092_v16 = vpack.c.bf16 (!%p261_p3), %v2237_v7, %v2236_v6 }
   0x9   : > { %2891 = vmatprep.subr.bf16.mxu0 (!%p261_p3), %v2890_v4  ;;  %v2241_v13 = vld [vmem:[%s4682_s4 + $0x48] sm:$0xff] (!%p261_p3)  ;;  %v2242_v14 = vld [vmem:[%s4682_s4 + $0x50] sm:$0xff] (!%p261_p3)  ;;  %v2243_v15 = vld [vmem:[%s4682_s4 + $0x58] sm:$0xff] (!%p261_p3)  ;;  %2922 = vmatprep.subr.bf16.mxu1 (!%p261_p3), %v2890_v4  ;;  %v3106_v22 = vpack.c.bf16 (!%p261_p3), %v2239_v10, %v2238_v9 }
   0xa   : > { %2893 = vmatpush3.bf16.msra.mxu0 (!%p261_p3), %v2890_v4  ;;  %v2244_v17 = vld [vmem:[%s4682_s4 + $0x60] sm:$0xff] (!%p261_p3)  ;;  %v2245_v18 = vld [vmem:[%s4682_s4 + $0x68] sm:$0xff] (!%p261_p3)  ;;  %v2246_v19 = vld [vmem:[%s4682_s4 + $0x70] sm:$0xff] (!%p261_p3)  ;;  %v564_v20 = vsub.s32 (!%p261_p3), 0, %v3081_v12  ;;  %v632_v21 = vsub.s32 (!%p261_p3), 1, %v3081_v12  ;;  %2930 = vmatpush3.bf16.msra.mxu1 (!%p261_p3), %v2890_v4  ;;  %v3108_v23 = vpack.c.bf16 (!%p261_p3), %v2241_v13, %v2240_v11  ;;  %v3110_v24 = vpack.c.bf16 (!%p261_p3), %v2243_v15, %v2242_v14 }
   0xb   : > { %2895 = vmatprep.subr.bf16.mxu0 (!%p261_p3), %v2894_v8  ;;  %v2247_v25 = vld [vmem:[%s4682_s4 + $0x78] sm:$0xff] (!%p261_p3)  ;;  %v3118_v26 = vld [vmem:[%s4679_s1] ss:$0 sm:$0xff] (!%p261_p3)  ;;  %v877_v27 = vsub.s32 (!%p261_p3), 2, %v3081_v12  ;;  %2923 = vmatprep.subr.bf16.mxu1 (!%p261_p3), %v2894_v8  ;;  %v3121_v28 = vpack.c.bf16 (!%p261_p3), %v2245_v18, %v2244_v17  ;;  %v1122_v32 = vsub.s32 (!%p261_p3), 3, %v3081_v12  ;;  %v1190_v33 = vsub.s32 (!%p261_p3), 4, %v3081_v12 }
   0xc   : > { %v3123_v29 = vpack.c.bf16 (!%p261_p3), %v2247_v25, %v2246_v19  ;;  %v3133_v30 = vld [vmem:[%s4680_s2] ss:$0 sm:$0xff] (!%p261_p3)  ;;  %v1434_v40 = vsub.s32 (!%p261_p3), 5, %v3081_v12  ;;  %v1678_v47 = vsub.s32 (!%p261_p3), 6, %v3081_v12  ;;  %v1746_v4 = vsub.s32 (!%p261_p3), 7, %v3081_v12 }
   0xd   : > { %v3138_v31 = vld [vmem:[%s4681_s3] sm:$0xff] (!%p261_p3)  ;;  %v3227_v17 = vld [vmem:[%s4681_s3 + $0x8] ss:$0 sm:$0xff] (!%p261_p3) }
   0xe   : > { %s4691_s24 = smov (!%p303_p4, %s2984_s24), 1  ;;  %v3146_v37 = vrot.slane %v3138_v31, %v564_v20  ;;  %v3149_v38 = vrot.slane %v3138_v31, %v632_v21  ;;  %v3152_v39 = vrot.slane %v3138_v31, %v877_v27  ;;  %2897 = vmatpush3.bf16.msra.mxu0 %v2894_v8  ;;  %v3167_v51 = vrot.slane %v3138_v31, %v1122_v32 }
   0xf   : > { %s2938_s16 = smul.u32 432, %s4691_s24  ;;  %2899 = vmatprep.subr.bf16.mxu0 %v3092_v16  ;;  %v3173_v55 = vrot.slane %v3138_v31, %v1190_v33  ;;  %2931 = vmatpush3.bf16.msra.mxu1 %v2894_v8  ;;  %v3179_v59 = vrot.slane %v3138_v31, %v1434_v40  ;;  %v3189_v0 = vrot.slane %v3138_v31, %v1678_v47  ;;  %s2761_s21 = sshll.u32 %s4691_s24, 8 }
  0x10   : > { %2924 = vmatprep.subr.bf16.mxu1 %v3092_v16  ;;  %v3241_v33 = vrot.slane %v3138_v31, %v1746_v4  ;;  %s4281_s29 = scalar_lea.vmem %s4683_s5, %s2761_s21 }
  0x11   : > { %s3128_s23 = scalar_lea.vmem %s4678_s0, %s2938_s16 }
  0x12   : > { %v334_v34 = vld [vmem:[%s3128_s23] sm:$0xff]  ;;  %v335_v35 = vld [vmem:[%s3128_s23 + $0x8] sm:$0xff]  ;;  %v337_v36 = vld [vmem:[%s3128_s23 + $0x18] sm:$0xff]  ;;  %2901 = vmatpush3.bf16.msra.mxu0 %v3092_v16 }
  0x13   : > { %v338_v41 = vld [vmem:[%s3128_s23 + $0x20] sm:$0xff]  ;;  %v340_v42 = vld [vmem:[%s3128_s23 + $0x30] sm:$0xff]  ;;  %v341_v43 = vld [vmem:[%s3128_s23 + $0x38] sm:$0xff]  ;;  %v394_v44 = vmul.f32 %v3118_v26, %v334_v34  ;;  %v395_v45 = vmul.f32 %v3118_v26, %v335_v35  ;;  %v397_v46 = vmul.f32 %v3118_v26, %v337_v36  ;;  %2903 = vmatprep.subr.bf16.mxu0 %v3106_v22  ;;  %2932 = vmatpush3.bf16.msra.mxu1 %v3092_v16 }
  0x14   : > { %v398_v48 = vmul.f32 %v3118_v26, %v338_v41  ;;  %v400_v49 = vmul.f32 %v3118_v26, %v340_v42  ;;  %v401_v50 = vmul.f32 %v3118_v26, %v341_v43  ;;  %v336_v60 = vld [vmem:[%s3128_s23 + $0x10] sm:$0x3]  ;;  %2925 = vmatprep.subr.bf16.mxu1 %v3106_v22  ;;  %v339_v34 = vld [vmem:[%s3128_s23 + $0x28] sm:$0x3]  ;;  %v342_v35 = vld [vmem:[%s3128_s23 + $0x40] sm:$0x3] }
  0x15   : > { %v454_v52 = vadd.f32 %v3133_v30, %v394_v44  ;;  %v455_v53 = vadd.f32 %v3133_v30, %v395_v45  ;;  %v457_v54 = vadd.f32 %v3133_v30, %v397_v46  ;;  %v396_v8 = vmul.f32 %v3118_v26, %v336_v60  ;;  %v343_v60 = vld [vmem:[%s3128_s23 + $0x48] sm:$0xff] }
  0x16   : > { %v458_v56 = vadd.f32 %v3133_v30, %v398_v48  ;;  %v460_v57 = vadd.f32 %v3133_v30, %v400_v49  ;;  %v461_v58 = vadd.f32 %v3133_v30, %v401_v50  ;;  %2905 = vmatpush3.bf16.msra.mxu0 %v3106_v22  ;;  %v399_v47 = vmul.f32 %v3118_v26, %v339_v34 }
  0x17   : > { %v508_v61 = vmax.f32 %v454_v52, 0.0  ;;  %v3184_v62 = vmax.f32 %v455_v53, 0.0  ;;  %v3186_v63 = vmax.f32 %v457_v54, 0.0  ;;  %2907 = vmatprep.subr.bf16.mxu0 %v3108_v23  ;;  %2933 = vmatpush3.bf16.msra.mxu1 %v3106_v22  ;;  %v402_v48 = vmul.f32 %v3118_v26, %v342_v35 }
  0x18   : > { %v3192_v1 = vmax.f32 %v458_v56, 0.0  ;;  %v3194_v2 = vmax.f32 %v460_v57, 0.0  ;;  %v3196_v3 = vmax.f32 %v461_v58, 0.0  ;;  %2926 = vmatprep.subr.bf16.mxu1 %v3108_v23  ;;  %v456_v56 = vadd.f32 %v3133_v30, %v396_v8 }
  0x19   : > { %v634_v5 = vmul.f32 %v3149_v38, %v508_v61  ;;  %v3202_v6 = vmul.f32 %v3149_v38, %v3184_v62  ;;  %v879_v7 = vmul.f32 %v3152_v39, %v508_v61  ;;  %v566_v9 = vmul.f32 %v3146_v37, %v508_v61  ;;  %v344_v61 = vld [vmem:[%s3128_s23 + $0x50] sm:$0xff] }
  0x1a   : > { %v3210_v10 = vmul.f32 %v3152_v39, %v3184_v62  ;;  %v1192_v11 = vmul.f32 %v3173_v55, %v3186_v63  ;;  %v3216_v12 = vmul.f32 %v3173_v55, %v3192_v1  ;;  %v1436_v16 = vmul.f32 %v3179_v59, %v3186_v63  ;;  %2909 = vmatpush3.bf16.msra.mxu0 %v3108_v23 }
  0x1b   : > { %v731_v13 = vrot.slane %v634_v5, 1  ;;  %v732_v14 = vrot.slane %v3202_v6, 1  ;;  %v976_v15 = vrot.slane %v879_v7, 2  ;;  %v3233_v21 = vmul.f32 %v3179_v59, %v3192_v1  ;;  %2911 = vmatprep.subr.bf16.mxu0 %v3110_v24  ;;  %2934 = vmatpush3.bf16.msra.mxu1 %v3108_v23 }
  0x1c   : > { %v977_v18 = vrot.slane %v3210_v10, 2  ;;  %v1288_v19 = vrot.slane %v1192_v11, 1  ;;  %v1289_v20 = vrot.slane %v3216_v12, 1  ;;  %v1124_v27 = vmul.f32 %v3167_v51, %v3186_v63  ;;  %2927 = vmatprep.subr.bf16.mxu1 %v3110_v24 }
  0x1d   : > { %v733_v25 = vsel %vm730_vm0, %v731_v13, %v732_v14  ;;  %v1532_v32 = vrot.slane %v1436_v16, 2  ;;  %v1533_v41 = vrot.slane %v3233_v21, 2  ;;  %v1680_v42 = vmul.f32 %v3189_v0, %v3194_v2 }
  0x1e   : > { %v843_v36 = vadd.f32 %v733_v25, %v566_v9  ;;  %v978_v40 = vsel %vm975_vm1, %v976_v15, %v977_v18  ;;  %v1748_v31 = vmul.f32 %v3241_v33, %v3194_v2  ;;  %v3258_v22 = vmul.f32 %v3241_v33, %v3196_v3  ;;  %2913 = vmatpush3.bf16.msra.mxu0 %v3110_v24 }
  0x1f   : > { %v1992_v43 = vmul.f32 %v3227_v17, %v3194_v2  ;;  %v3264_v44 = vmul.f32 %v3227_v17, %v3196_v3  ;;  %v1290_v46 = vsel %vm730_vm0, %v1288_v19, %v1289_v20  ;;  %v459_v57 = vadd.f32 %v3133_v30, %v399_v47  ;;  %2915 = vmatprep.subr.bf16.mxu0 %v3121_v28 }
  0x20   : > { %v1088_v45 = vadd.f32 %v978_v40, %v843_v36  ;;  %v1844_v49 = vrot.slane %v1748_v31, 1  ;;  %v1845_v50 = vrot.slane %v3258_v22, 1  ;;  %v462_v58 = vadd.f32 %v3133_v30, %v402_v48  ;;  %2935 = vmatpush3.bf16.msra.mxu1 %v3110_v24 }
  0x21   : > { %v2088_v52 = vrot.slane %v1992_v43, 2  ;;  %v2089_v53 = vrot.slane %v3264_v44, 2  ;;  %v1534_v4 = vsel %vm975_vm1, %v1532_v32, %v1533_v41  ;;  %v567_v7 = vmul.f32 %v3146_v37, %v3184_v62  ;;  %2928 = vmatprep.subr.bf16.mxu1 %v3121_v28 }
  0x22   : > { %v1156_v54 = vadd.f32 %v1124_v27, %v1088_v45  ;;  %v1846_v5 = vsel %vm730_vm0, %v1844_v49, %v1845_v50  ;;  %v510_v9 = vmax.f32 %v456_v56, 0.0  ;;  %v3290_v11 = vmax.f32 %v459_v57, 0.0  ;;  %2917 = vmatpush3.bf16.msra.mxu0 %v3121_v28 }
  0x23   : > { %v2090_v23 = vsel %vm975_vm1, %v2088_v52, %v2089_v53  ;;  %v1125_v13 = vmul.f32 %v3167_v51, %v3192_v1  ;;  %v3294_v15 = vmax.f32 %v462_v58, 0.0  ;;  %v3298_v16 = vmul.f32 %v3189_v0, %v3196_v3  ;;  %2919 = vmatprep.subr.bf16.mxu0 %v3123_v29 }
  0x24   : > { %v1400_v8 = vadd.f32 %v1290_v46, %v1156_v54  ;;  %v403_v19 = vmul.f32 %v3118_v26, %v343_v60  ;;  %v404_v25 = vmul.f32 %v3118_v26, %v344_v61  ;;  %v636_v27 = vmul.f32 %v3149_v38, %v510_v9  ;;  %2936 = vmatpush3.bf16.msra.mxu1 %v3121_v28 }
  0x25   : > { %v881_v32 = vmul.f32 %v3152_v39, %v510_v9  ;;  %v1194_v34 = vmul.f32 %v3173_v55, %v3290_v11  ;;  %v1438_v35 = vmul.f32 %v3179_v59, %v3290_v11  ;;  %v1750_v36 = vmul.f32 %v3241_v33, %v3294_v15  ;;  %2929 = vmatprep.subr.bf16.mxu1 %v3123_v29 }
  0x26   : > { %v1644_v62 = vadd.f32 %v1534_v4, %v1400_v8  ;;  %v1994_v24 = vmul.f32 %v3227_v17, %v3294_v15  ;;  %v463_v40 = vadd.f32 %v3133_v30, %v403_v19  ;;  %v734_v22 = vrot.slane %v636_v27, 1  ;;  %2921 = vmatpush3.bf16.msra.mxu0 %v3123_v29  ;;  %v345_v27 = vld [vmem:[%s3128_s23 + $0x58] sm:$0x3] }
  0x27   : > { %v979_v43 = vrot.slane %v881_v32, 2  ;;  %v1291_v44 = vrot.slane %v1194_v34, 1  ;;  %v1535_v45 = vrot.slane %v1438_v35, 2  ;;  %v1847_v46 = vrot.slane %v1750_v36, 1 }
  0x28   : > { %v1712_v31 = vadd.f32 %v1680_v42, %v1644_v62  ;;  %v2091_v47 = vrot.slane %v1994_v24, 2  ;;  %v568_v48 = vmul.f32 %v3146_v37, %v3186_v63  ;;  %v735_v52 = vsel %vm730_vm0, %v732_v14, %v734_v22  ;;  %2937 = vmatpush3.bf16.msra.mxu1 %v3123_v29 }
  0x29   : > { %v980_v42 = vsel %vm975_vm1, %v977_v18, %v979_v43  ;;  %v464_v54 = vadd.f32 %v3133_v30, %v404_v25  ;;  %v844_v56 = vadd.f32 %v735_v52, %v567_v7  ;;  %v1292_v28 = vsel %vm730_vm0, %v1289_v20, %v1291_v44 }
  0x2a   : > { %v1956_v49 = vadd.f32 %v1846_v5, %v1712_v31  ;;  %v1536_v6 = vsel %vm975_vm1, %v1533_v41, %v1535_v45  ;;  %v1848_v14 = vsel %vm730_vm0, %v1845_v50, %v1847_v46  ;;  %v2092_v18 = vsel %vm975_vm1, %v2089_v53, %v2091_v47 }
  0x2b   : > { %v3337_v57 = vmax.f32 %v463_v40, 0.0  ;;  %v637_v58 = vmul.f32 %v3149_v38, %v3186_v63  ;;  %v1089_v60 = vadd.f32 %v980_v42, %v844_v56  ;;  %v3343_v12 = vmul.f32 %v3149_v38, %v3192_v1 }
  0x2c   : > { %v2200_v10 = vadd.f32 %v2090_v23, %v1956_v49  ;;  %v882_v20 = vmul.f32 %v3152_v39, %v3186_v63  ;;  %v883_v21 = vmul.f32 %v3152_v39, %v3192_v1  ;;  %v3350_v41 = vmax.f32 %v464_v54, 0.0 }
  0x2d   : > { %v736_v50 = vrot.slane %v637_v58, 1  ;;  %v1195_v53 = vmul.f32 %v3173_v55, %v3194_v2  ;;  %v3356_v61 = vmul.f32 %v3173_v55, %v3196_v3  ;;  %v1157_v4 = vadd.f32 %v1125_v13, %v1089_v60 }
  0x2e   : > { %2842 = vmatprep.mubr.f32.mxu0 %v2200_v10  ;;  %v737_v63 = vrot.slane %v3343_v12, 1  ;;  %v981_v5 = vrot.slane %v882_v20, 2  ;;  %v982_v23 = vrot.slane %v883_v21, 2  ;;  %v1439_v8 = vmul.f32 %v3179_v59, %v3194_v2 }
  0x2f   : > { %v1293_v7 = vrot.slane %v1195_v53, 1  ;;  %v1294_v29 = vrot.slane %v3356_v61, 1  ;;  %v1440_v9 = vmul.f32 %v3179_v59, %v3196_v3  ;;  %v1401_v19 = vadd.f32 %v1292_v28, %v1157_v4 }
  0x30   : > { %v738_v25 = vsel %vm730_vm0, %v736_v50, %v737_v63  ;;  %v983_v62 = vsel %vm975_vm1, %v981_v5, %v982_v23  ;;  %v1126_v13 = vmul.f32 %v3167_v51, %v3194_v2  ;;  %v1537_v34 = vrot.slane %v1439_v8, 2  ;;  %v347_v8 = vld [vmem:[%s3128_s23 + $0x68] sm:$0xff] }
  0x31   : > { %v845_v32 = vadd.f32 %v738_v25, %v568_v48  ;;  %v1538_v35 = vrot.slane %v1440_v9, 2  ;;  %v1682_v36 = vmul.f32 %v3189_v0, %v3337_v57  ;;  %v1645_v24 = vadd.f32 %v1536_v6, %v1401_v19 }
  0x32   : > { %v1751_v40 = vmul.f32 %v3241_v33, %v3337_v57  ;;  %v1752_v31 = vmul.f32 %v3241_v33, %v3350_v41  ;;  %v1995_v22 = vmul.f32 %v3227_v17, %v3337_v57  ;;  %v1295_v44 = vsel %vm730_vm0, %v1293_v7, %v1294_v29  ;;  %v346_v7 = vld [vmem:[%s3128_s23 + $0x60] sm:$0xff] }
  0x33   : > { %v1090_v43 = vadd.f32 %v983_v62, %v845_v32  ;;  %v3380_v45 = vmul.f32 %v3227_v17, %v3350_v41  ;;  %v405_v46 = vmul.f32 %v3118_v26, %v345_v27  ;;  %v1713_v47 = vadd.f32 %v3298_v16, %v1645_v24 }
  0x34   : > { %v1849_v48 = vrot.slane %v1751_v40, 1  ;;  %v1850_v49 = vrot.slane %v1752_v31, 1  ;;  %v2093_v52 = vrot.slane %v1995_v22, 2  ;;  %v1539_v54 = vsel %vm975_vm1, %v1537_v34, %v1538_v35 }
  0x35   : > { %v1158_v42 = vadd.f32 %v1126_v13, %v1090_v43  ;;  %v2094_v56 = vrot.slane %v3380_v45, 2  ;;  %v465_v28 = vadd.f32 %v3133_v30, %v405_v46  ;;  %v1957_v6 = vadd.f32 %v1848_v14, %v1713_v47 }
  0x36   : > { %v569_v10 = vmul.f32 %v3146_v37, %v3192_v1  ;;  %v639_v58 = vmul.f32 %v3149_v38, %v3290_v11  ;;  %v884_v16 = vmul.f32 %v3152_v39, %v3290_v11  ;;  %v1851_v12 = vsel %vm730_vm0, %v1849_v48, %v1850_v49 }
  0x37   : > { %v1402_v60 = vadd.f32 %v1295_v44, %v1158_v42  ;;  %v2095_v20 = vsel %vm975_vm1, %v2093_v52, %v2094_v56  ;;  %v3397_v21 = vmax.f32 %v465_v28, 0.0  ;;  %v2201_v14 = vadd.f32 %v2092_v18, %v1957_v6 }
  0x38   : > { %v739_v50 = vrot.slane %v639_v58, 1  ;;  %v984_v53 = vrot.slane %v884_v16, 2  ;;  %v1197_v1 = vmul.f32 %v3173_v55, %v3294_v15  ;;  %v1127_v4 = vmul.f32 %v3167_v51, %v3196_v3 }
  0x39   : > { %v1646_v61 = vadd.f32 %v1539_v54, %v1402_v60  ;;  %v1441_v11 = vmul.f32 %v3179_v59, %v3294_v15  ;;  %v1753_v5 = vmul.f32 %v3241_v33, %v3397_v21  ;;  %2843 = vmatmul.mubr.f32.vlgmr.msra.gmra.mrb[0].mxu0 %v2201_v14  ;;  %v1997_v25 = vmul.f32 %v3227_v17, %v3397_v21 }
  0x3a   : > { %v740_v18 = vsel %vm730_vm0, %v737_v63, %v739_v50  ;;  %v985_v9 = vsel %vm975_vm1, %v982_v23, %v984_v53  ;;  %v1296_v19 = vrot.slane %v1197_v1, 1  ;;  %v1683_v24 = vmul.f32 %v3189_v0, %v3350_v41 }
  0x3b   : > { %v1714_v62 = vadd.f32 %v1682_v36, %v1646_v61  ;;  %v846_v13 = vadd.f32 %v740_v18, %v569_v10  ;;  %v1540_v27 = vrot.slane %v1441_v11, 2  ;;  %v1852_v32 = vrot.slane %v1753_v5, 1 }
  0x3c   : > { %v1297_v34 = vsel %vm730_vm0, %v1294_v29, %v1296_v19  ;;  %v406_v40 = vmul.f32 %v3118_v26, %v346_v7  ;;  %v407_v31 = vmul.f32 %v3118_v26, %v347_v8  ;;  %v2096_v43 = vrot.slane %v1997_v25, 2  ;;  %v348_v19 = vld [vmem:[%s3128_s23 + $0x70] sm:$0x3] }
  0x3d   : > { %v1958_v63 = vadd.f32 %v1851_v12, %v1714_v62  ;;  %v1091_v22 = vadd.f32 %v985_v9, %v846_v13  ;;  %v1541_v23 = vsel %vm975_vm1, %v1538_v35, %v1540_v27  ;;  %v1853_v44 = vsel %vm730_vm0, %v1850_v49, %v1852_v32 }
  0x3e   : > { %v466_v36 = vadd.f32 %v3133_v30, %v406_v40  ;;  %v467_v46 = vadd.f32 %v3133_v30, %v407_v31  ;;  %v570_v29 = vmul.f32 %v3146_v37, %v3194_v2  ;;  %v640_v52 = vmul.f32 %v3149_v38, %v3194_v2 }
  0x3f   : > { %v2202_v47 = vadd.f32 %v2095_v20, %v1958_v63  ;;  %v1159_v48 = vadd.f32 %v1127_v4, %v1091_v22  ;;  %v3428_v42 = vmul.f32 %v3149_v38, %v3196_v3  ;;  %v885_v49 = vmul.f32 %v3152_v39, %v3194_v2 }
  0x40   : > { %v3430_v35 = vmax.f32 %v466_v36, 0.0  ;;  %v3432_v54 = vmax.f32 %v467_v46, 0.0  ;;  %v3438_v28 = vmul.f32 %v3152_v39, %v3196_v3  ;;  %v741_v10 = vrot.slane %v640_v52, 1 }
  0x41   : > { %2845 = vmatprep.mubr.f32.mxu0 %v2202_v47  ;;  %v1403_v6 = vadd.f32 %v1297_v34, %v1159_v48  ;;  %v742_v58 = vrot.slane %v3428_v42, 1  ;;  %v1128_v16 = vmul.f32 %v3167_v51, %v3337_v57  ;;  %v986_v60 = vrot.slane %v885_v49, 2  ;;  %v349_v48 = vld [vmem:[%s3128_s23 + $0x78] sm:$0xff] }
  0x42   : > { %v987_v12 = vrot.slane %v3438_v28, 2  ;;  %v1198_v20 = vmul.f32 %v3173_v55, %v3337_v57  ;;  %v1199_v2 = vmul.f32 %v3173_v55, %v3350_v41  ;;  %v1442_v53 = vmul.f32 %v3179_v59, %v3337_v57 }
  0x43   : > { %v1647_v14 = vadd.f32 %v1541_v23, %v1403_v6  ;;  %v743_v50 = vsel %vm730_vm0, %v741_v10, %v742_v58  ;;  %v1443_v1 = vmul.f32 %v3179_v59, %v3350_v41  ;;  %v2097_v8 = vsel %vm975_vm1, %v2094_v56, %v2096_v43 }
  0x44   : > { %v847_v61 = vadd.f32 %v743_v50, %v570_v29  ;;  %v988_v4 = vsel %vm975_vm1, %v986_v60, %v987_v12  ;;  %v1298_v11 = vrot.slane %v1198_v20, 1  ;;  %v1299_v5 = vrot.slane %v1199_v2, 1 }
  0x45   : > { %v1715_v7 = vadd.f32 %v1683_v24, %v1647_v14  ;;  %v1542_v18 = vrot.slane %v1442_v53, 2  ;;  %v1543_v9 = vrot.slane %v1443_v1, 2  ;;  %v1684_v62 = vmul.f32 %v3189_v0, %v3430_v35  ;;  %v350_v14 = vld [vmem:[%s3128_s23 + $0x80] sm:$0xff] }
  0x46   : > { %v1092_v25 = vadd.f32 %v988_v4, %v847_v61  ;;  %v1754_v13 = vmul.f32 %v3241_v33, %v3430_v35  ;;  %v1755_v27 = vmul.f32 %v3241_v33, %v3432_v54  ;;  %v1300_v34 = vsel %vm730_vm0, %v1298_v11, %v1299_v5 }
  0x47   : > { %v1959_v32 = vadd.f32 %v1853_v44, %v1715_v7  ;;  %v1998_v45 = vmul.f32 %v3227_v17, %v3430_v35  ;;  %v1999_v56 = vmul.f32 %v3227_v17, %v3432_v54  ;;  %v408_v63 = vmul.f32 %v3118_v26, %v348_v19 }
  0x48   : > { %v1160_v24 = vadd.f32 %v1128_v16, %v1092_v25  ;;  %v1854_v40 = vrot.slane %v1754_v13, 1  ;;  %v1855_v31 = vrot.slane %v1755_v27, 1  ;;  %v1544_v23 = vsel %vm975_vm1, %v1542_v18, %v1543_v9 }
  0x49   : > { %v2203_v22 = vadd.f32 %v2097_v8, %v1959_v32  ;;  %v2098_v43 = vrot.slane %v1998_v45, 2  ;;  %v2099_v36 = vrot.slane %v1999_v56, 2  ;;  %v468_v46 = vadd.f32 %v3133_v30, %v408_v63 }
  0x4a   : > { %v1404_v44 = vadd.f32 %v1300_v34, %v1160_v24  ;;  %v571_v29 = vmul.f32 %v3146_v37, %v3196_v3  ;;  %v642_v47 = vmul.f32 %v3149_v38, %v3294_v15  ;;  %v1856_v52 = vsel %vm730_vm0, %v1854_v40, %v1855_v31 }
  0x4b   : > { %2846 = vmatmul.mubr.f32.gmra.mrb[2].mxu0 %v2203_v22  ;;  %v2100_v42 = vsel %vm975_vm1, %v2098_v43, %v2099_v36  ;;  %v887_v49 = vmul.f32 %v3152_v39, %v3294_v15  ;;  %v1200_v28 = vmul.f32 %v3173_v55, %v3397_v21  ;;  %v3483_v10 = vmax.f32 %v468_v46, 0.0 }
  0x4c   : > { %v1648_v6 = vadd.f32 %v1544_v23, %v1404_v44  ;;  %v744_v16 = vrot.slane %v642_v47, 1  ;;  %v1444_v3 = vmul.f32 %v3179_v59, %v3397_v21  ;;  %v1129_v20 = vmul.f32 %v3167_v51, %v3350_v41 }
  0x4d   : > { %v989_v60 = vrot.slane %v887_v49, 2  ;;  %v1301_v2 = vrot.slane %v1200_v28, 1  ;;  %v409_v50 = vmul.f32 %v3118_v26, %v349_v48  ;;  %v1756_v61 = vmul.f32 %v3241_v33, %v3483_v10 }
  0x4e   : > { %v1716_v53 = vadd.f32 %v1684_v62, %v1648_v6  ;;  %v745_v15 = vsel %vm730_vm0, %v742_v58, %v744_v16  ;;  %v1545_v1 = vrot.slane %v1444_v3, 2  ;;  %v1685_v7 = vmul.f32 %v3189_v0, %v3432_v54 }
  0x4f   : > { %v848_v4 = vadd.f32 %v745_v15, %v571_v29  ;;  %v990_v11 = vsel %vm975_vm1, %v987_v12, %v989_v60  ;;  %v2000_v8 = vmul.f32 %v3227_v17, %v3483_v10  ;;  %v1302_v19 = vsel %vm730_vm0, %v1299_v5, %v1301_v2 }
  0x50   : > { %v1960_v18 = vadd.f32 %v1856_v52, %v1716_v53  ;;  %v1857_v25 = vrot.slane %v1756_v61, 1  ;;  %v410_v62 = vmul.f32 %v3118_v26, %v350_v14  ;;  %v1546_v13 = vsel %vm975_vm1, %v1543_v9, %v1545_v1  ;;  %v351_v53 = vld [vmem:[%s3128_s23 + $0x88] sm:$0x3] }
  0x51   : > { %v1093_v58 = vadd.f32 %v990_v11, %v848_v4  ;;  %v2101_v27 = vrot.slane %v2000_v8, 2  ;;  %v469_v32 = vadd.f32 %v3133_v30, %v409_v50  ;;  %v572_v45 = vmul.f32 %v3146_v37, %v3337_v57 }
  0x52   : > { %v2204_v34 = vadd.f32 %v2100_v42, %v1960_v18  ;;  %v470_v12 = vadd.f32 %v3133_v30, %v410_v62  ;;  %v643_v56 = vmul.f32 %v3149_v38, %v3337_v57  ;;  %v1858_v5 = vsel %vm730_vm0, %v1855_v31, %v1857_v25 }
  0x53   : > { %v1161_v24 = vadd.f32 %v1129_v20, %v1093_v58  ;;  %v2102_v40 = vsel %vm975_vm1, %v2099_v36, %v2101_v27  ;;  %v644_v9 = vmul.f32 %v3149_v38, %v3350_v41  ;;  %v3512_v63 = vmax.f32 %v469_v32, 0.0 }
  0x54   : > { %2848 = vmatprep.mubr.f32.mxu0 %v2204_v34  ;;  %v746_v22 = vrot.slane %v643_v56, 1  ;;  %v888_v23 = vmul.f32 %v3152_v39, %v3337_v57  ;;  %v889_v43 = vmul.f32 %v3152_v39, %v3350_v41  ;;  %v3518_v46 = vmax.f32 %v470_v12, 0.0 }
  0x55   : > { %v1405_v44 = vadd.f32 %v1302_v19, %v1161_v24  ;;  %v747_v29 = vrot.slane %v644_v9, 1  ;;  %v1201_v31 = vmul.f32 %v3173_v55, %v3430_v35  ;;  %v1202_v48 = vmul.f32 %v3173_v55, %v3432_v54 }
  0x56   : > { %v991_v36 = vrot.slane %v888_v23, 2  ;;  %v992_v47 = vrot.slane %v889_v43, 2  ;;  %v1445_v52 = vmul.f32 %v3179_v59, %v3430_v35  ;;  %v1446_v28 = vmul.f32 %v3179_v59, %v3432_v54 }
  0x57   : > { %v1649_v57 = vadd.f32 %v1546_v13, %v1405_v44  ;;  %v748_v42 = vsel %vm730_vm0, %v746_v22, %v747_v29  ;;  %v1303_v49 = vrot.slane %v1201_v31, 1  ;;  %v1130_v3 = vmul.f32 %v3167_v51, %v3430_v35 }
  0x58   : > { %v849_v6 = vadd.f32 %v748_v42, %v572_v45  ;;  %v993_v16 = vsel %vm975_vm1, %v991_v36, %v992_v47  ;;  %v1304_v60 = vrot.slane %v1202_v48, 1  ;;  %v1547_v2 = vrot.slane %v1445_v52, 2  ;;  %v353_v36 = vld [vmem:[%s3128_s23 + $0x98] sm:$0xff] }
  0x59   : > { %v1717_v20 = vadd.f32 %v1685_v7, %v1649_v57  ;;  %v1548_v14 = vrot.slane %v1446_v28, 2  ;;  %v1757_v50 = vmul.f32 %v3241_v33, %v3512_v63  ;;  %v1686_v1 = vmul.f32 %v3189_v0, %v3512_v63 }
  0x5a   : > { %v1094_v15 = vadd.f32 %v993_v16, %v849_v6  ;;  %v1758_v61 = vmul.f32 %v3241_v33, %v3518_v46  ;;  %v2001_v4 = vmul.f32 %v3227_v17, %v3512_v63  ;;  %v1305_v7 = vsel %vm730_vm0, %v1303_v49, %v1304_v60 }
  0x5b   : > { %v1961_v11 = vadd.f32 %v1858_v5, %v1717_v20  ;;  %v1859_v8 = vrot.slane %v1757_v50, 1  ;;  %v2002_v18 = vmul.f32 %v3227_v17, %v3518_v46  ;;  %v411_v58 = vmul.f32 %v3118_v26, %v351_v53  ;;  %v352_v5 = vld [vmem:[%s3128_s23 + $0x90] sm:$0xff] }
  0x5c   : > { %v1162_v19 = vadd.f32 %v1130_v3, %v1094_v15  ;;  %v1860_v25 = vrot.slane %v1758_v61, 1  ;;  %v2103_v62 = vrot.slane %v2001_v4, 2  ;;  %v1549_v27 = vsel %vm975_vm1, %v1547_v2, %v1548_v14 }
  0x5d   : > { %v2205_v13 = vadd.f32 %v2102_v40, %v1961_v11  ;;  %v2104_v32 = vrot.slane %v2002_v18, 2  ;;  %v645_v34 = vmul.f32 %v3149_v38, %v3397_v21  ;;  %v471_v45 = vadd.f32 %v3133_v30, %v411_v58 }
  0x5e   : > { %v1406_v12 = vadd.f32 %v1305_v7, %v1162_v19  ;;  %v573_v56 = vmul.f32 %v3146_v37, %v3350_v41  ;;  %v890_v24 = vmul.f32 %v3152_v39, %v3397_v21  ;;  %v1861_v40 = vsel %vm730_vm0, %v1859_v8, %v1860_v25 }
  0x5f   : > { %2849 = vmatmul.mubr.f32.gmra.mrb[4].mxu0 %v2205_v13  ;;  %v2105_v9 = vsel %vm975_vm1, %v2103_v62, %v2104_v32  ;;  %v749_v22 = vrot.slane %v645_v34, 1  ;;  %v1203_v23 = vmul.f32 %v3173_v55, %v3483_v10  ;;  %v1131_v31 = vmul.f32 %v3167_v51, %v3432_v54 }
  0x60   : > { %v1650_v43 = vadd.f32 %v1549_v27, %v1406_v12  ;;  %v994_v44 = vrot.slane %v890_v24, 2  ;;  %v1447_v41 = vmul.f32 %v3179_v59, %v3483_v10  ;;  %v3563_v21 = vmax.f32 %v471_v45, 0.0 }
  0x61   : > { %v750_v48 = vsel %vm730_vm0, %v747_v29, %v749_v22  ;;  %v1306_v52 = vrot.slane %v1203_v23, 1  ;;  %v412_v57 = vmul.f32 %v3118_v26, %v352_v5  ;;  %v1687_v16 = vmul.f32 %v3189_v0, %v3518_v46 }
  0x62   : > { %v1718_v42 = vadd.f32 %v1686_v1, %v1650_v43  ;;  %v850_v49 = vadd.f32 %v750_v48, %v573_v56  ;;  %v995_v28 = vsel %vm975_vm1, %v992_v47, %v994_v44  ;;  %v1550_v6 = vrot.slane %v1447_v41, 2 }
  0x63   : > { %v1759_v3 = vmul.f32 %v3241_v33, %v3563_v21  ;;  %v2003_v20 = vmul.f32 %v3227_v17, %v3563_v21  ;;  %v413_v2 = vmul.f32 %v3118_v26, %v353_v36  ;;  %v1307_v53 = vsel %vm730_vm0, %v1304_v60, %v1306_v52  ;;  %v354_v36 = vld [vmem:[%s3128_s23 + $0xa0] sm:$0x3] }
  0x64   : > { %v1962_v29 = vadd.f32 %v1861_v40, %v1718_v42  ;;  %v1095_v50 = vadd.f32 %v995_v28, %v850_v49  ;;  %v472_v15 = vadd.f32 %v3133_v30, %v412_v57  ;;  %v1551_v47 = vsel %vm975_vm1, %v1548_v14, %v1550_v6 }
  0x65   : > { %v1862_v1 = vrot.slane %v1759_v3, 1  ;;  %v2106_v61 = vrot.slane %v2003_v20, 2  ;;  %v473_v4 = vadd.f32 %v3133_v30, %v413_v2  ;;  %v574_v8 = vmul.f32 %v3146_v37, %v3430_v35 }
  0x66   : > { %v2206_v11 = vadd.f32 %v2105_v9, %v1962_v29  ;;  %v1163_v7 = vadd.f32 %v1131_v31, %v1095_v50  ;;  %v646_v18 = vmul.f32 %v3149_v38, %v3430_v35  ;;  %v3585_v62 = vmax.f32 %v472_v15, 0.0 }
  0x67   : > { %v1863_v19 = vsel %vm730_vm0, %v1860_v25, %v1862_v1  ;;  %v2107_v60 = vsel %vm975_vm1, %v2104_v32, %v2106_v61  ;;  %v647_v14 = vmul.f32 %v3149_v38, %v3432_v54  ;;  %v891_v27 = vmul.f32 %v3152_v39, %v3430_v35 }
  0x68   : > { %2851 = vmatprep.mubr.f32.mxu0 %v2206_v11  ;;  %v1407_v58 = vadd.f32 %v1307_v53, %v1163_v7  ;;  %v751_v13 = vrot.slane %v646_v18, 1  ;;  %v892_v34 = vmul.f32 %v3152_v39, %v3432_v54  ;;  %v3593_v12 = vmax.f32 %v473_v4, 0.0 }
  0x69   : > { %v752_v25 = vrot.slane %v647_v14, 1  ;;  %v1204_v32 = vmul.f32 %v3173_v55, %v3512_v63  ;;  %v3599_v45 = vmul.f32 %v3173_v55, %v3518_v46  ;;  %v996_v24 = vrot.slane %v891_v27, 2 }
  0x6a   : > { %v1651_v56 = vadd.f32 %v1551_v47, %v1407_v58  ;;  %v997_v5 = vrot.slane %v892_v34, 2  ;;  %v1448_v35 = vmul.f32 %v3179_v59, %v3512_v63  ;;  %v1449_v23 = vmul.f32 %v3179_v59, %v3518_v46 }
  0x6b   : > { %v753_v40 = vsel %vm730_vm0, %v751_v13, %v752_v25  ;;  %v1308_v9 = vrot.slane %v1204_v32, 1  ;;  %v1309_v22 = vrot.slane %v3599_v45, 1  ;;  %v1132_v41 = vmul.f32 %v3167_v51, %v3512_v63 }
  0x6c   : > { %v1719_v43 = vadd.f32 %v1687_v16, %v1651_v56  ;;  %v851_v44 = vadd.f32 %v753_v40, %v574_v8  ;;  %v998_v31 = vsel %vm975_vm1, %v996_v24, %v997_v5  ;;  %v1552_v52 = vrot.slane %v1448_v35, 2  ;;  %v356_v40 = vld [vmem:[%s3128_s23 + $0xb0] sm:$0xff] }
  0x6d   : > { %v1310_v48 = vsel %vm730_vm0, %v1308_v9, %v1309_v22  ;;  %v1553_v57 = vrot.slane %v1449_v23, 2  ;;  %v1760_v42 = vmul.f32 %v3241_v33, %v3585_v62  ;;  %v1761_v6 = vmul.f32 %v3241_v33, %v3593_v12 }
  0x6e   : > { %v1963_v49 = vadd.f32 %v1863_v19, %v1719_v43  ;;  %v1096_v28 = vadd.f32 %v998_v31, %v851_v44  ;;  %v2004_v16 = vmul.f32 %v3227_v17, %v3585_v62  ;;  %v1688_v3 = vmul.f32 %v3189_v0, %v3585_v62 }
  0x6f   : > { %v1864_v20 = vrot.slane %v1760_v42, 1  ;;  %v2005_v2 = vmul.f32 %v3227_v17, %v3593_v12  ;;  %v414_v29 = vmul.f32 %v3118_v26, %v354_v36  ;;  %v1865_v15 = vrot.slane %v1761_v6, 1 }
  0x70   : > { %v2207_v50 = vadd.f32 %v2107_v60, %v1963_v49  ;;  %v1164_v53 = vadd.f32 %v1132_v41, %v1096_v28  ;;  %v2108_v47 = vrot.slane %v2004_v16, 2  ;;  %v1554_v1 = vsel %vm975_vm1, %v1552_v52, %v1553_v57 }
  0x71   : > { %v2109_v61 = vrot.slane %v2005_v2, 2  ;;  %v474_v4 = vadd.f32 %v3133_v30, %v414_v29  ;;  %v648_v11 = vmul.f32 %v3149_v38, %v3483_v10  ;;  %v1866_v8 = vsel %vm730_vm0, %v1864_v20, %v1865_v15 }
  0x72   : > { %2852 = vmatmul.mubr.f32.gmra.mrb[6].mxu0 %v2207_v50  ;;  %v1408_v7 = vadd.f32 %v1310_v48, %v1164_v53  ;;  %v575_v18 = vmul.f32 %v3146_v37, %v3432_v54  ;;  %v893_v19 = vmul.f32 %v3152_v39, %v3483_v10  ;;  %v1133_v58 = vmul.f32 %v3167_v51, %v3518_v46  ;;  %v355_v54 = vld [vmem:[%s3128_s23 + $0xa8] sm:$0xff] }
  0x73   : > { %v3632_v60 = vmax.f32 %v474_v4, 0.0  ;;  %v754_v14 = vrot.slane %v648_v11, 1  ;;  %v1206_v13 = vmul.f32 %v3173_v55, %v3563_v21  ;;  %v2110_v34 = vsel %vm975_vm1, %v2108_v47, %v2109_v61 }
  0x74   : > { %v1652_v27 = vadd.f32 %v1554_v1, %v1408_v7  ;;  %v999_v32 = vrot.slane %v893_v19, 2  ;;  %v1450_v45 = vmul.f32 %v3179_v59, %v3563_v21  ;;  %v1689_v31 = vmul.f32 %v3189_v0, %v3593_v12 }
  0x75   : > { %v755_v56 = vsel %vm730_vm0, %v752_v25, %v754_v14  ;;  %v1311_v10 = vrot.slane %v1206_v13, 1  ;;  %v1762_v24 = vmul.f32 %v3241_v33, %v3632_v60  ;;  %v2006_v35 = vmul.f32 %v3227_v17, %v3632_v60 }
  0x76   : > { %v1720_v9 = vadd.f32 %v1688_v3, %v1652_v27  ;;  %v852_v23 = vadd.f32 %v755_v56, %v575_v18  ;;  %v1000_v43 = vsel %vm975_vm1, %v997_v5, %v999_v32  ;;  %v1555_v44 = vrot.slane %v1450_v45, 2 }
  0x77   : > { %v1867_v41 = vrot.slane %v1762_v24, 1  ;;  %v2111_v36 = vrot.slane %v2006_v35, 2  ;;  %v415_v25 = vmul.f32 %v3118_v26, %v355_v54  ;;  %v1312_v42 = vsel %vm730_vm0, %v1309_v22, %v1311_v10  ;;  %v357_v35 = vld [vmem:[%s3128_s23 + $0xb8] sm:$0x3] }
  0x78   : > { %v1964_v48 = vadd.f32 %v1866_v8, %v1720_v9  ;;  %v1097_v52 = vadd.f32 %v1000_v43, %v852_v23  ;;  %v416_v49 = vmul.f32 %v3118_v26, %v356_v40  ;;  %v1556_v28 = vsel %vm975_vm1, %v1553_v57, %v1555_v44 }
  0x79   : > { %v1868_v6 = vsel %vm730_vm0, %v1865_v15, %v1867_v41  ;;  %v2112_v5 = vsel %vm975_vm1, %v2109_v61, %v2111_v36  ;;  %v475_v16 = vadd.f32 %v3133_v30, %v415_v25  ;;  %v649_v29 = vmul.f32 %v3149_v38, %v3512_v63 }
  0x7a   : > { %v2208_v3 = vadd.f32 %v2110_v34, %v1964_v48  ;;  %v1165_v20 = vadd.f32 %v1133_v58, %v1097_v52  ;;  %v476_v2 = vadd.f32 %v3133_v30, %v416_v49  ;;  %v576_v22 = vmul.f32 %v3146_v37, %v3512_v63 }
  0x7b   : > { %v3665_v26 = vmul.f32 %v3149_v38, %v3518_v46  ;;  %v894_v57 = vmul.f32 %v3152_v39, %v3512_v63  ;;  %v3671_v50 = vmul.f32 %v3152_v39, %v3518_v46  ;;  %v3673_v30 = vmax.f32 %v475_v16, 0.0 }
  0x7c   : > { %2854 = vmatprep.mubr.f32.mxu0 %v2208_v3  ;;  %v1409_v53 = vadd.f32 %v1312_v42, %v1165_v20  ;;  %v3675_v15 = vmax.f32 %v476_v2, 0.0  ;;  %v756_v47 = vrot.slane %v649_v29, 1  ;;  %v1207_v11 = vmul.f32 %v3173_v55, %v3585_v62  ;;  %v3709_v42 = vld [vmem:[%s4679_s1] ss:$0 sm:$0xff] }
  0x7d   : > { %v757_v1 = vrot.slane %v3665_v26, 1  ;;  %v1001_v61 = vrot.slane %v894_v57, 2  ;;  %v1002_v4 = vrot.slane %v3671_v50, 2  ;;  %v1208_v7 = vmul.f32 %v3173_v55, %v3593_v12  ;;  %v358_v3 = vld [vmem:[%s3128_s23 + $0xc0] sm:$0xff] }
  0x7e   : > { %v1653_v63 = vadd.f32 %v1556_v28, %v1409_v53  ;;  %v1451_v8 = vmul.f32 %v3179_v59, %v3585_v62  ;;  %v3687_v18 = vmul.f32 %v3179_v59, %v3593_v12  ;;  %v1134_v58 = vmul.f32 %v3167_v51, %v3585_v62  ;;  %v3723_v29 = vld [vmem:[%s4680_s2] ss:$0 sm:$0xff] }
  0x7f   : > { %v758_v19 = vsel %vm730_vm0, %v756_v47, %v757_v1  ;;  %v1003_v14 = vsel %vm975_vm1, %v1001_v61, %v1002_v4  ;;  %v1313_v13 = vrot.slane %v1207_v11, 1  ;;  %v1314_v32 = vrot.slane %v1208_v7, 1 }
  0x80   : > { %v1721_v27 = vadd.f32 %v1689_v31, %v1653_v63  ;;  %v853_v34 = vadd.f32 %v758_v19, %v576_v22  ;;  %v1557_v45 = vrot.slane %v1451_v8, 2  ;;  %v1558_v54 = vrot.slane %v3687_v18, 2  ;;  %v359_v63 = vld [vmem:[%s3128_s23 + $0xc8] sm:$0xff] }
  0x81   : > { %v1763_v56 = vmul.f32 %v3241_v33, %v3673_v30  ;;  %v1764_v10 = vmul.f32 %v3241_v33, %v3675_v15  ;;  %v2007_v24 = vmul.f32 %v3227_v17, %v3673_v30  ;;  %v1690_v23 = vmul.f32 %v3189_v0, %v3673_v30 }
  0x82   : > { %v1965_v40 = vadd.f32 %v1868_v6, %v1721_v27  ;;  %v1098_v9 = vadd.f32 %v1003_v14, %v853_v34  ;;  %v2008_v43 = vmul.f32 %v3227_v17, %v3675_v15  ;;  %v1315_v44 = vsel %vm730_vm0, %v1313_v13, %v1314_v32 }
  0x83   : > { %v1869_v31 = vrot.slane %v1763_v56, 1  ;;  %v1870_v41 = vrot.slane %v1764_v10, 1  ;;  %v2113_v36 = vrot.slane %v2007_v24, 2  ;;  %v417_v49 = vmul.f32 %v3709_v42, %v357_v35 }
  0x84   : > { %v2209_v25 = vadd.f32 %v2112_v5, %v1965_v40  ;;  %v1166_v48 = vadd.f32 %v1134_v58, %v1098_v9  ;;  %v2114_v52 = vrot.slane %v2008_v43, 2  ;;  %v1559_v28 = vsel %vm975_vm1, %v1557_v45, %v1558_v54 }
  0x85   : > { %v1871_v6 = vsel %vm730_vm0, %v1869_v31, %v1870_v41  ;;  %v651_v16 = vmul.f32 %v3149_v38, %v3563_v21  ;;  %v896_v5 = vmul.f32 %v3152_v39, %v3563_v21  ;;  %v477_v22 = vadd.f32 %v3723_v29, %v417_v49 }
  0x86   : > { %2855 = vmatmul.mubr.f32.gmra.mrb[8].mxu0 %v2209_v25  ;;  %v1410_v20 = vadd.f32 %v1315_v44, %v1166_v48  ;;  %v2115_v2 = vsel %vm975_vm1, %v2113_v36, %v2114_v52  ;;  %v577_v26 = vmul.f32 %v3146_v37, %v3518_v46  ;;  %v1209_v21 = vmul.f32 %v3173_v55, %v3632_v60 }
  0x87   : > { %v759_v57 = vrot.slane %v651_v16, 1  ;;  %v1004_v50 = vrot.slane %v896_v5, 2  ;;  %v1453_v53 = vmul.f32 %v3179_v59, %v3632_v60  ;;  %v3732_v61 = vmax.f32 %v477_v22, 0.0 }
  0x88   : > { %v1654_v47 = vadd.f32 %v1559_v28, %v1410_v20  ;;  %v1135_v11 = vmul.f32 %v3167_v51, %v3593_v12  ;;  %v418_v7 = vmul.f32 %v3709_v42, %v358_v3  ;;  %v1316_v18 = vrot.slane %v1209_v21, 1 }
  0x89   : > { %v760_v8 = vsel %vm730_vm0, %v757_v1, %v759_v57  ;;  %v1005_v46 = vsel %vm975_vm1, %v1002_v4, %v1004_v50  ;;  %v1560_v19 = vrot.slane %v1453_v53, 2  ;;  %v1765_v13 = vmul.f32 %v3241_v33, %v3732_v61 }
  0x8a   : > { %v1722_v14 = vadd.f32 %v1690_v23, %v1654_v47  ;;  %v854_v58 = vadd.f32 %v760_v8, %v577_v26  ;;  %v2009_v27 = vmul.f32 %v3227_v17, %v3732_v61  ;;  %v1317_v34 = vsel %vm730_vm0, %v1314_v32, %v1316_v18 }
  0x8b   : > { %v1691_v45 = vmul.f32 %v3189_v0, %v3675_v15  ;;  %v419_v56 = vmul.f32 %v3709_v42, %v359_v63  ;;  %v478_v1 = vadd.f32 %v3723_v29, %v418_v7  ;;  %v1872_v24 = vrot.slane %v1765_v13, 1  ;;  %v360_v7 = vld [vmem:[%s3128_s23 + $0xd0] sm:$0x3] }
  0x8c   : > { %v1966_v4 = vadd.f32 %v1871_v6, %v1722_v14  ;;  %v1099_v10 = vadd.f32 %v1005_v46, %v854_v58  ;;  %v2116_v35 = vrot.slane %v2009_v27, 2  ;;  %v1561_v40 = vsel %vm975_vm1, %v1558_v54, %v1560_v19  ;;  %v3792_v19 = vld [vmem:[%s4681_s3 + $0x8] ss:$0 sm:$0xff] }
  0x8d   : > { %v479_v9 = vadd.f32 %v3723_v29, %v419_v56  ;;  %v3751_v23 = vmax.f32 %v478_v1, 0.0  ;;  %v652_v17 = vmul.f32 %v3149_v38, %v3585_v62  ;;  %v1873_v44 = vsel %vm730_vm0, %v1870_v41, %v1872_v24 }
  0x8e   : > { %v2210_v32 = vadd.f32 %v2115_v2, %v1966_v4  ;;  %v1167_v43 = vadd.f32 %v1135_v11, %v1099_v10  ;;  %v578_v31 = vmul.f32 %v3146_v37, %v3585_v62  ;;  %v2117_v36 = vsel %vm975_vm1, %v2114_v52, %v2116_v35 }
  0x8f   : > { %v3761_v25 = vmul.f32 %v3149_v38, %v3593_v12  ;;  %v761_v54 = vrot.slane %v652_v17, 1  ;;  %v897_v48 = vmul.f32 %v3152_v39, %v3585_v62  ;;  %v3765_v28 = vmax.f32 %v479_v9, 0.0 }
  0x90   : > { %2857 = vmatprep.mubr.f32.mxu0 %v2210_v32  ;;  %v1411_v49 = vadd.f32 %v1317_v34, %v1167_v43  ;;  %v898_v41 = vmul.f32 %v3152_v39, %v3593_v12  ;;  %v1210_v6 = vmul.f32 %v3173_v55, %v3673_v30  ;;  %v1211_v5 = vmul.f32 %v3173_v55, %v3675_v15 }
  0x91   : > { %v762_v52 = vrot.slane %v3761_v25, 1  ;;  %v1006_v16 = vrot.slane %v897_v48, 2  ;;  %v1454_v62 = vmul.f32 %v3179_v59, %v3673_v30  ;;  %v1455_v22 = vmul.f32 %v3179_v59, %v3675_v15 }
  0x92   : > { %v1655_v3 = vadd.f32 %v1561_v40, %v1411_v49  ;;  %v1007_v20 = vrot.slane %v898_v41, 2  ;;  %v1318_v2 = vrot.slane %v1210_v6, 1  ;;  %v1136_v57 = vmul.f32 %v3167_v51, %v3673_v30 }
  0x93   : > { %v763_v26 = vsel %vm730_vm0, %v761_v54, %v762_v52  ;;  %v1319_v50 = vrot.slane %v1211_v5, 1  ;;  %v1562_v21 = vrot.slane %v1454_v62, 2  ;;  %v1563_v63 = vrot.slane %v1455_v22, 2  ;;  %v362_v5 = vld [vmem:[%s3128_s23 + $0xe0] sm:$0xff] }
  0x94   : > { %v1723_v53 = vadd.f32 %v1691_v45, %v1655_v3  ;;  %v855_v47 = vadd.f32 %v763_v26, %v578_v31  ;;  %v1008_v11 = vsel %vm975_vm1, %v1006_v16, %v1007_v20  ;;  %v1692_v8 = vmul.f32 %v3189_v0, %v3751_v23 }
  0x95   : > { %v1766_v46 = vmul.f32 %v3241_v33, %v3751_v23  ;;  %v1767_v18 = vmul.f32 %v3241_v33, %v3765_v28  ;;  %v2010_v14 = vmul.f32 %v3792_v19, %v3751_v23  ;;  %v1320_v27 = vsel %vm730_vm0, %v1318_v2, %v1319_v50 }
  0x96   : > { %v1967_v58 = vadd.f32 %v1873_v44, %v1723_v53  ;;  %v1100_v13 = vadd.f32 %v1008_v11, %v855_v47  ;;  %v2011_v34 = vmul.f32 %v3792_v19, %v3765_v28  ;;  %v420_v4 = vmul.f32 %v3709_v42, %v360_v7  ;;  %v361_v44 = vld [vmem:[%s3128_s23 + $0xd8] sm:$0xff] }
  0x97   : > { %v1874_v45 = vrot.slane %v1766_v46, 1  ;;  %v1875_v56 = vrot.slane %v1767_v18, 1  ;;  %v2118_v1 = vrot.slane %v2010_v14, 2  ;;  %v1564_v35 = vsel %vm975_vm1, %v1562_v21, %v1563_v63 }
  0x98   : > { %v2211_v10 = vadd.f32 %v2117_v36, %v1967_v58  ;;  %v1168_v24 = vadd.f32 %v1136_v57, %v1100_v13  ;;  %v2119_v40 = vrot.slane %v2011_v34, 2  ;;  %v480_v9 = vadd.f32 %v3723_v29, %v420_v4 }
  0x99   : > { %v579_v17 = vmul.f32 %v3146_v37, %v3593_v12  ;;  %v654_v32 = vmul.f32 %v3149_v38, %v3632_v60  ;;  %v899_v43 = vmul.f32 %v3152_v39, %v3632_v60  ;;  %v1876_v36 = vsel %vm730_vm0, %v1874_v45, %v1875_v56 }
  0x9a   : > { %2858 = vmatmul.mubr.f32.gmra.mrb[10].mxu0 %v2211_v10  ;;  %v1412_v31 = vadd.f32 %v1320_v27, %v1168_v24  ;;  %v2120_v25 = vsel %vm975_vm1, %v2118_v1, %v2119_v40  ;;  %v1212_v54 = vmul.f32 %v3173_v55, %v3732_v61  ;;  %v3813_v48 = vmax.f32 %v480_v9, 0.0 }
  0x9b   : > { %v764_v12 = vrot.slane %v654_v32, 1  ;;  %v1009_v49 = vrot.slane %v899_v43, 2  ;;  %v1456_v41 = vmul.f32 %v3179_v59, %v3732_v61  ;;  %v1137_v60 = vmul.f32 %v3167_v51, %v3675_v15 }
  0x9c   : > { %v1656_v6 = vadd.f32 %v1564_v35, %v1412_v31  ;;  %v1321_v16 = vrot.slane %v1212_v54, 1  ;;  %v421_v62 = vmul.f32 %v3709_v42, %v361_v44  ;;  %v1768_v26 = vmul.f32 %v3241_v33, %v3813_v48 }
  0x9d   : > { %v765_v3 = vsel %vm730_vm0, %v762_v52, %v764_v12  ;;  %v1010_v2 = vsel %vm975_vm1, %v1007_v20, %v1009_v49  ;;  %v1565_v22 = vrot.slane %v1456_v41, 2  ;;  %v1693_v53 = vmul.f32 %v3189_v0, %v3765_v28 }
  0x9e   : > { %v1724_v57 = vadd.f32 %v1692_v8, %v1656_v6  ;;  %v856_v21 = vadd.f32 %v765_v3, %v579_v17  ;;  %v2012_v47 = vmul.f32 %v3792_v19, %v3813_v48  ;;  %v1322_v11 = vsel %vm730_vm0, %v1319_v50, %v1321_v16  ;;  %v363_v3 = vld [vmem:[%s3128_s23 + $0xe8] sm:$0x3] }
  0x9f   : > { %v1877_v7 = vrot.slane %v1768_v26, 1  ;;  %v422_v46 = vmul.f32 %v3709_v42, %v362_v5  ;;  %v481_v52 = vadd.f32 %v3723_v29, %v421_v62  ;;  %v1566_v14 = vsel %vm975_vm1, %v1563_v63, %v1565_v22 }
  0xa0   : > { %v1968_v20 = vadd.f32 %v1876_v36, %v1724_v57  ;;  %v1101_v18 = vadd.f32 %v1010_v2, %v856_v21  ;;  %v2121_v58 = vrot.slane %v2012_v47, 2  ;;  %v580_v27 = vmul.f32 %v3146_v37, %v3673_v30 }
  0xa1   : > { %v1878_v8 = vsel %vm730_vm0, %v1875_v56, %v1877_v7  ;;  %v482_v13 = vadd.f32 %v3723_v29, %v422_v46  ;;  %v655_v50 = vmul.f32 %v3149_v38, %v3673_v30  ;;  %v3839_v1 = vmax.f32 %v481_v52, 0.0 }
  0xa2   : > { %v2212_v34 = vadd.f32 %v2120_v25, %v1968_v20  ;;  %v1169_v45 = vadd.f32 %v1137_v60, %v1101_v18  ;;  %v656_v4 = vmul.f32 %v3149_v38, %v3675_v15  ;;  %v2122_v63 = vsel %vm975_vm1, %v2119_v40, %v2121_v58 }
  0xa3   : > { %v766_v10 = vrot.slane %v655_v50, 1  ;;  %v900_v56 = vmul.f32 %v3152_v39, %v3673_v30  ;;  %v901_v24 = vmul.f32 %v3152_v39, %v3675_v15  ;;  %v3848_v9 = vmax.f32 %v482_v13, 0.0 }
  0xa4   : > { %2860 = vmatprep.mubr.f32.mxu0 %v2212_v34  ;;  %v1413_v35 = vadd.f32 %v1322_v11, %v1169_v45  ;;  %v767_v17 = vrot.slane %v656_v4, 1  ;;  %v1213_v32 = vmul.f32 %v3173_v55, %v3751_v23  ;;  %v1214_v40 = vmul.f32 %v3173_v55, %v3765_v28  ;;  %v364_v45 = vld [vmem:[%s3128_s23 + $0xf0] sm:$0xff] }
  0xa5   : > { %v1011_v43 = vrot.slane %v900_v56, 2  ;;  %v1012_v44 = vrot.slane %v901_v24, 2  ;;  %v1457_v30 = vmul.f32 %v3179_v59, %v3751_v23  ;;  %v1458_v54 = vmul.f32 %v3179_v59, %v3765_v28 }
  0xa6   : > { %v1657_v31 = vadd.f32 %v1566_v14, %v1413_v35  ;;  %v768_v36 = vsel %vm730_vm0, %v766_v10, %v767_v17  ;;  %v1323_v25 = vrot.slane %v1213_v32, 1  ;;  %v1138_v41 = vmul.f32 %v3167_v51, %v3751_v23 }
  0xa7   : > { %v857_v12 = vadd.f32 %v768_v36, %v580_v27  ;;  %v1013_v49 = vsel %vm975_vm1, %v1011_v43, %v1012_v44  ;;  %v1324_v6 = vrot.slane %v1214_v40, 1  ;;  %v1567_v16 = vrot.slane %v1457_v30, 2  ;;  %v365_v43 = vld [vmem:[%s3128_s23 + $0xf8] sm:$0xff] }
  0xa8   : > { %v1725_v60 = vadd.f32 %v1693_v53, %v1657_v31  ;;  %v1568_v5 = vrot.slane %v1458_v54, 2  ;;  %v1769_v62 = vmul.f32 %v3241_v33, %v3839_v1  ;;  %v1694_v22 = vmul.f32 %v3189_v0, %v3839_v1 }
  0xa9   : > { %v1102_v2 = vadd.f32 %v1013_v49, %v857_v12  ;;  %v1770_v26 = vmul.f32 %v3241_v33, %v3848_v9  ;;  %v2013_v57 = vmul.f32 %v3792_v19, %v3839_v1  ;;  %v1325_v53 = vsel %vm730_vm0, %v1323_v25, %v1324_v6 }
  0xaa   : > { %v1969_v21 = vadd.f32 %v1878_v8, %v1725_v60  ;;  %v1879_v47 = vrot.slane %v1769_v62, 1  ;;  %v2014_v11 = vmul.f32 %v3792_v19, %v3848_v9  ;;  %v423_v20 = vmul.f32 %v3709_v42, %v363_v3 }
  0xab   : > { %v1170_v7 = vadd.f32 %v1138_v41, %v1102_v2  ;;  %v1880_v46 = vrot.slane %v1770_v26, 1  ;;  %v2123_v52 = vrot.slane %v2013_v57, 2  ;;  %v1569_v14 = vsel %vm975_vm1, %v1567_v16, %v1568_v5 }
  0xac   : > { %v2213_v18 = vadd.f32 %v2122_v63, %v1969_v21  ;;  %v2124_v58 = vrot.slane %v2014_v11, 2  ;;  %v657_v8 = vmul.f32 %v3149_v38, %v3732_v61  ;;  %v483_v27 = vadd.f32 %v3723_v29, %v423_v20 }
  0xad   : > { %v1414_v13 = vadd.f32 %v1325_v53, %v1170_v7  ;;  %v581_v50 = vmul.f32 %v3146_v37, %v3675_v15  ;;  %v902_v34 = vmul.f32 %v3152_v39, %v3732_v61  ;;  %v1881_v4 = vsel %vm730_vm0, %v1879_v47, %v1880_v46 }
  0xae   : > { %2861 = vmatmul.mubr.f32.gmra.mrb[12].mxu0 %v2213_v18  ;;  %v2125_v63 = vsel %vm975_vm1, %v2123_v52, %v2124_v58  ;;  %v769_v10 = vrot.slane %v657_v8, 1  ;;  %v1215_v56 = vmul.f32 %v3173_v55, %v3813_v48  ;;  %v1139_v32 = vmul.f32 %v3167_v51, %v3765_v28 }
  0xaf   : > { %v1658_v24 = vadd.f32 %v1569_v14, %v1414_v13  ;;  %v1014_v35 = vrot.slane %v902_v34, 2  ;;  %v1459_v15 = vmul.f32 %v3179_v59, %v3813_v48  ;;  %v3893_v61 = vmax.f32 %v483_v27, 0.0 }
  0xb0   : > { %v770_v40 = vsel %vm730_vm0, %v767_v17, %v769_v10  ;;  %v1326_v30 = vrot.slane %v1215_v56, 1  ;;  %v424_v31 = vmul.f32 %v3709_v42, %v364_v45  ;;  %v1695_v49 = vmul.f32 %v3189_v0, %v3848_v9 }
  0xb1   : > { %v1726_v36 = vadd.f32 %v1694_v22, %v1658_v24  ;;  %v858_v25 = vadd.f32 %v770_v40, %v581_v50  ;;  %v1015_v54 = vsel %vm975_vm1, %v1012_v44, %v1014_v35  ;;  %v1570_v12 = vrot.slane %v1459_v15, 2 }
  0xb2   : > { %v1771_v41 = vmul.f32 %v3241_v33, %v3893_v61  ;;  %v2015_v60 = vmul.f32 %v3792_v19, %v3893_v61  ;;  %v425_v16 = vmul.f32 %v3709_v42, %v365_v43  ;;  %v1327_v3 = vsel %vm730_vm0, %v1324_v6, %v1326_v30  ;;  %v366_v43 = vld [vmem:[%s3128_s23 + $0x100] sm:$0x3] }
  0xb3   : > { %v1970_v17 = vadd.f32 %v1881_v4, %v1726_v36  ;;  %v1103_v62 = vadd.f32 %v1015_v54, %v858_v25  ;;  %v484_v2 = vadd.f32 %v3723_v29, %v424_v31  ;;  %v1571_v44 = vsel %vm975_vm1, %v1568_v5, %v1570_v12 }
  0xb4   : > { %v1882_v22 = vrot.slane %v1771_v41, 1  ;;  %v2126_v26 = vrot.slane %v2015_v60, 2  ;;  %v485_v57 = vadd.f32 %v3723_v29, %v425_v16  ;;  %v582_v47 = vmul.f32 %v3146_v37, %v3751_v23 }
  0xb5   : > { %v2214_v21 = vadd.f32 %v2125_v63, %v1970_v17  ;;  %v1171_v53 = vadd.f32 %v1139_v32, %v1103_v62  ;;  %v658_v11 = vmul.f32 %v3149_v38, %v3751_v23  ;;  %v3915_v52 = vmax.f32 %v484_v2, 0.0 }
  0xb6   : > { %v1883_v7 = vsel %vm730_vm0, %v1880_v46, %v1882_v22  ;;  %v2127_v6 = vsel %vm975_vm1, %v2124_v58, %v2126_v26  ;;  %v659_v5 = vmul.f32 %v3149_v38, %v3765_v28  ;;  %v903_v14 = vmul.f32 %v3152_v39, %v3751_v23 }
  0xb7   : > { %2863 = vmatprep.mubr.f32.mxu0 %v2214_v21  ;;  %v1415_v20 = vadd.f32 %v1327_v3, %v1171_v53  ;;  %v771_v18 = vrot.slane %v658_v11, 1  ;;  %v904_v8 = vmul.f32 %v3152_v39, %v3765_v28  ;;  %v3923_v13 = vmax.f32 %v485_v57, 0.0 }
  0xb8   : > { %v772_v46 = vrot.slane %v659_v5, 1  ;;  %v1216_v58 = vmul.f32 %v3173_v55, %v3839_v1  ;;  %v3929_v27 = vmul.f32 %v3173_v55, %v3848_v9  ;;  %v1016_v34 = vrot.slane %v903_v14, 2 }
  0xb9   : > { %v1659_v50 = vadd.f32 %v1571_v44, %v1415_v20  ;;  %v1017_v45 = vrot.slane %v904_v8, 2  ;;  %v1460_v23 = vmul.f32 %v3179_v59, %v3839_v1  ;;  %v1461_v56 = vmul.f32 %v3179_v59, %v3848_v9 }
  0xba   : > { %v773_v4 = vsel %vm730_vm0, %v771_v18, %v772_v46  ;;  %v1328_v63 = vrot.slane %v1216_v58, 1  ;;  %v1329_v10 = vrot.slane %v3929_v27, 1  ;;  %v1140_v15 = vmul.f32 %v3167_v51, %v3839_v1 }
  0xbb   : > { %v1727_v24 = vadd.f32 %v1695_v49, %v1659_v50  ;;  %v859_v35 = vadd.f32 %v773_v4, %v582_v47  ;;  %v1018_v32 = vsel %vm975_vm1, %v1016_v34, %v1017_v45  ;;  %v1572_v30 = vrot.slane %v1460_v23, 2  ;;  %v368_v4 = vld [vmem:[%s3128_s23 + $0x110] sm:$0xff] }
  0xbc   : > { %v1330_v40 = vsel %vm730_vm0, %v1328_v63, %v1329_v10  ;;  %v1573_v31 = vrot.slane %v1461_v56, 2  ;;  %v1772_v36 = vmul.f32 %v3241_v33, %v3915_v52  ;;  %v1773_v12 = vmul.f32 %v3241_v33, %v3923_v13 }
  0xbd   : > { %v1971_v25 = vadd.f32 %v1883_v7, %v1727_v24  ;;  %v1104_v54 = vadd.f32 %v1018_v32, %v859_v35  ;;  %v2016_v49 = vmul.f32 %v3792_v19, %v3915_v52  ;;  %v1696_v41 = vmul.f32 %v3189_v0, %v3915_v52 }
  0xbe   : > { %v1884_v60 = vrot.slane %v1772_v36, 1  ;;  %v2017_v16 = vmul.f32 %v3792_v19, %v3923_v13  ;;  %v426_v17 = vmul.f32 %v3709_v42, %v366_v43  ;;  %v1885_v2 = vrot.slane %v1773_v12, 1 }
  0xbf   : > { %v2215_v62 = vadd.f32 %v2127_v6, %v1971_v25  ;;  %v1172_v3 = vadd.f32 %v1140_v15, %v1104_v54  ;;  %v2128_v44 = vrot.slane %v2016_v49, 2  ;;  %v1574_v22 = vsel %vm975_vm1, %v1572_v30, %v1573_v31 }
  0xc0   : > { %v2129_v26 = vrot.slane %v2017_v16, 2  ;;  %v486_v57 = vadd.f32 %v3723_v29, %v426_v17  ;;  %v660_v21 = vmul.f32 %v3149_v38, %v3813_v48  ;;  %v1886_v47 = vsel %vm730_vm0, %v1884_v60, %v1885_v2 }
  0xc1   : > { %2864 = vmatmul.mubr.f32.gmra.mrb[14].mxu0 %v2215_v62  ;;  %v1416_v53 = vadd.f32 %v1330_v40, %v1172_v3  ;;  %v583_v11 = vmul.f32 %v3146_v37, %v3765_v28  ;;  %v905_v7 = vmul.f32 %v3152_v39, %v3813_v48  ;;  %v1141_v20 = vmul.f32 %v3167_v51, %v3848_v9  ;;  %v367_v28 = vld [vmem:[%s3128_s23 + $0x108] sm:$0xff] }
  0xc2   : > { %v3962_v6 = vmax.f32 %v486_v57, 0.0  ;;  %v774_v5 = vrot.slane %v660_v21, 1  ;;  %v1218_v18 = vmul.f32 %v3173_v55, %v3893_v61  ;;  %v2130_v8 = vsel %vm975_vm1, %v2128_v44, %v2129_v26 }
  0xc3   : > { %v1660_v14 = vadd.f32 %v1574_v22, %v1416_v53  ;;  %v1019_v58 = vrot.slane %v905_v7, 2  ;;  %v1462_v27 = vmul.f32 %v3179_v59, %v3893_v61  ;;  %v1697_v32 = vmul.f32 %v3189_v0, %v3923_v13 }
  0xc4   : > { %v775_v50 = vsel %vm730_vm0, %v772_v46, %v774_v5  ;;  %v1331_v48 = vrot.slane %v1218_v18, 1  ;;  %v1774_v34 = vmul.f32 %v3241_v33, %v3962_v6  ;;  %v2018_v23 = vmul.f32 %v3792_v19, %v3962_v6 }
  0xc5   : > { %v1728_v63 = vadd.f32 %v1696_v41, %v1660_v14  ;;  %v860_v56 = vadd.f32 %v775_v50, %v583_v11  ;;  %v1020_v24 = vsel %vm975_vm1, %v1017_v45, %v1019_v58  ;;  %v1575_v35 = vrot.slane %v1462_v27, 2 }
  0xc6   : > { %v1887_v15 = vrot.slane %v1774_v34, 1  ;;  %v2131_v43 = vrot.slane %v2018_v23, 2  ;;  %v427_v46 = vmul.f32 %v3709_v42, %v367_v28  ;;  %v1332_v36 = vsel %vm730_vm0, %v1329_v10, %v1331_v48 }
  0xc7   : > { %v1972_v40 = vadd.f32 %v1886_v47, %v1728_v63  ;;  %v1105_v30 = vadd.f32 %v1020_v24, %v860_v56  ;;  %v428_v25 = vmul.f32 %v3709_v42, %v368_v4  ;;  %v1576_v54 = vsel %vm975_vm1, %v1573_v31, %v1575_v35  ;;  %v369_v63 = vld [vmem:[%s3128_s23 + $0x118] sm:$0x3] }
  0xc8   : > { %v1888_v12 = vsel %vm730_vm0, %v1885_v2, %v1887_v15  ;;  %v2132_v45 = vsel %vm975_vm1, %v2129_v26, %v2131_v43  ;;  %v487_v49 = vadd.f32 %v3723_v29, %v427_v46  ;;  %v661_v17 = vmul.f32 %v3149_v38, %v3839_v1 }
  0xc9   : > { %v2216_v41 = vadd.f32 %v2130_v8, %v1972_v40  ;;  %v1173_v60 = vadd.f32 %v1141_v20, %v1105_v30  ;;  %v488_v16 = vadd.f32 %v3723_v29, %v428_v25  ;;  %v584_v10 = vmul.f32 %v3146_v37, %v3839_v1 }
  0xca   : > { %v662_v62 = vmul.f32 %v3149_v38, %v3848_v9  ;;  %v906_v31 = vmul.f32 %v3152_v39, %v3839_v1  ;;  %v907_v3 = vmul.f32 %v3152_v39, %v3848_v9  ;;  %v3999_v44 = vmax.f32 %v487_v49, 0.0 }
  0xcb   : > { %2866 = vmatprep.mubr.f32.mxu1 %v2216_v41  ;;  %v1417_v2 = vadd.f32 %v1332_v36, %v1173_v60  ;;  %v4001_v22 = vmax.f32 %v488_v16, 0.0  ;;  %v776_v26 = vrot.slane %v661_v17, 1  ;;  %v1219_v47 = vmul.f32 %v3173_v55, %v3915_v52  ;;  %v370_v16 = vld [vmem:[%s3128_s23 + $0x120] sm:$0xff] }
  0xcc   : > { %v777_v57 = vrot.slane %v662_v62, 1  ;;  %v1021_v21 = vrot.slane %v906_v31, 2  ;;  %v1022_v53 = vrot.slane %v907_v3, 2  ;;  %v1220_v1 = vmul.f32 %v3173_v55, %v3923_v13 }
  0xcd   : > { %v1661_v11 = vadd.f32 %v1576_v54, %v1417_v2  ;;  %v1463_v7 = vmul.f32 %v3179_v59, %v3915_v52  ;;  %v4011_v5 = vmul.f32 %v3179_v59, %v3923_v13  ;;  %v1142_v14 = vmul.f32 %v3167_v51, %v3915_v52 }
  0xce   : > { %v778_v20 = vsel %vm730_vm0, %v776_v26, %v777_v57  ;;  %v1023_v18 = vsel %vm975_vm1, %v1021_v21, %v1022_v53  ;;  %v1333_v8 = vrot.slane %v1219_v47, 1  ;;  %v1334_v28 = vrot.slane %v1220_v1, 1 }
  0xcf   : > { %v1729_v58 = vadd.f32 %v1697_v32, %v1661_v11  ;;  %v861_v27 = vadd.f32 %v778_v20, %v584_v10  ;;  %v1577_v50 = vrot.slane %v1463_v7, 2  ;;  %v1578_v48 = vrot.slane %v4011_v5, 2  ;;  %v371_v11 = vld [vmem:[%s3128_s23 + $0x128] sm:$0xff] }
  0xd0   : > { %v1775_v34 = vmul.f32 %v3241_v33, %v3999_v44  ;;  %v1776_v23 = vmul.f32 %v3241_v33, %v4001_v22  ;;  %v2019_v4 = vmul.f32 %v3792_v19, %v3999_v44  ;;  %v1698_v35 = vmul.f32 %v3189_v0, %v3999_v44 }
  0xd1   : > { %v1973_v56 = vadd.f32 %v1888_v12, %v1729_v58  ;;  %v1106_v24 = vadd.f32 %v1023_v18, %v861_v27  ;;  %v2020_v32 = vmul.f32 %v3792_v19, %v4001_v22  ;;  %v1335_v15 = vsel %vm730_vm0, %v1333_v8, %v1334_v28 }
  0xd2   : > { %v1889_v43 = vrot.slane %v1775_v34, 1  ;;  %v1890_v46 = vrot.slane %v1776_v23, 1  ;;  %v2133_v40 = vrot.slane %v2019_v4, 2  ;;  %v429_v54 = vmul.f32 %v3709_v42, %v369_v63 }
  0xd3   : > { %v2217_v30 = vadd.f32 %v2132_v45, %v1973_v56  ;;  %v1174_v36 = vadd.f32 %v1142_v14, %v1106_v24  ;;  %v2134_v25 = vrot.slane %v2020_v32, 2  ;;  %v1579_v12 = vsel %vm975_vm1, %v1577_v50, %v1578_v48 }
  0xd4   : > { %v1891_v49 = vsel %vm730_vm0, %v1889_v43, %v1890_v46  ;;  %v663_v41 = vmul.f32 %v3149_v38, %v3893_v61  ;;  %v908_v60 = vmul.f32 %v3152_v39, %v3893_v61  ;;  %v489_v10 = vadd.f32 %v3723_v29, %v429_v54 }
  0xd5   : > { %2867 = vmatmul.mubr.f32.vlgmr.msra.gmra.mrb[0].mxu1 %v2217_v30  ;;  %v1418_v17 = vadd.f32 %v1335_v15, %v1174_v36  ;;  %v2135_v45 = vsel %vm975_vm1, %v2133_v40, %v2134_v25  ;;  %v585_v62 = vmul.f32 %v3146_v37, %v3848_v9  ;;  %v1221_v2 = vmul.f32 %v3173_v55, %v3962_v6 }
  0xd6   : > { %v779_v31 = vrot.slane %v663_v41, 1  ;;  %v1024_v3 = vrot.slane %v908_v60, 2  ;;  %v1465_v26 = vmul.f32 %v3179_v59, %v3962_v6  ;;  %v4046_v61 = vmax.f32 %v489_v10, 0.0 }
  0xd7   : > { %v1662_v21 = vadd.f32 %v1579_v12, %v1418_v17  ;;  %v1143_v47 = vmul.f32 %v3167_v51, %v3923_v13  ;;  %v430_v1 = vmul.f32 %v3709_v42, %v370_v16  ;;  %v1336_v5 = vrot.slane %v1221_v2, 1 }
  0xd8   : > { %v780_v7 = vsel %vm730_vm0, %v777_v57, %v779_v31  ;;  %v1025_v9 = vsel %vm975_vm1, %v1022_v53, %v1024_v3  ;;  %v1580_v20 = vrot.slane %v1465_v26, 2  ;;  %v1777_v8 = vmul.f32 %v3241_v33, %v4046_v61 }
  0xd9   : > { %v1730_v18 = vadd.f32 %v1698_v35, %v1662_v21  ;;  %v862_v14 = vadd.f32 %v780_v7, %v585_v62  ;;  %v2021_v58 = vmul.f32 %v3792_v19, %v4046_v61  ;;  %v1337_v27 = vsel %vm730_vm0, %v1334_v28, %v1336_v5  ;;  %v372_v7 = vld [vmem:[%s3128_s23 + $0x130] sm:$0x3] }
  0xda   : > { %v1699_v50 = vmul.f32 %v3189_v0, %v4001_v22  ;;  %v431_v34 = vmul.f32 %v3709_v42, %v371_v11  ;;  %v490_v57 = vadd.f32 %v3723_v29, %v430_v1  ;;  %v1892_v4 = vrot.slane %v1777_v8, 1 }
  0xdb   : > { %v1974_v53 = vadd.f32 %v1891_v49, %v1730_v18  ;;  %v1107_v23 = vadd.f32 %v1025_v9, %v862_v14  ;;  %v2136_v63 = vrot.slane %v2021_v58, 2  ;;  %v1581_v56 = vsel %vm975_vm1, %v1578_v48, %v1580_v20 }
  0xdc   : > { %v491_v24 = vadd.f32 %v3723_v29, %v431_v34  ;;  %v4065_v35 = vmax.f32 %v490_v57, 0.0  ;;  %v664_v28 = vmul.f32 %v3149_v38, %v3915_v52  ;;  %v1893_v43 = vsel %vm730_vm0, %v1890_v46, %v1892_v4 }
  0xdd   : > { %v2218_v32 = vadd.f32 %v2135_v45, %v1974_v53  ;;  %v1175_v15 = vadd.f32 %v1143_v47, %v1107_v23  ;;  %v586_v40 = vmul.f32 %v3146_v37, %v3915_v52  ;;  %v2137_v30 = vsel %vm975_vm1, %v2134_v25, %v2136_v63 }
  0xde   : > { %v665_v36 = vmul.f32 %v3149_v38, %v3923_v13  ;;  %v781_v48 = vrot.slane %v664_v28, 1  ;;  %v909_v54 = vmul.f32 %v3152_v39, %v3915_v52  ;;  %v4077_v49 = vmax.f32 %v491_v24, 0.0 }
  0xdf   : > { %2869 = vmatprep.mubr.f32.mxu1 %v2218_v32  ;;  %v1419_v12 = vadd.f32 %v1337_v27, %v1175_v15  ;;  %v910_v41 = vmul.f32 %v3152_v39, %v3923_v13  ;;  %v1222_v46 = vmul.f32 %v3173_v55, %v3999_v44  ;;  %v1223_v16 = vmul.f32 %v3173_v55, %v4001_v22 }
  0xe0   : > { %v782_v60 = vrot.slane %v665_v36, 1  ;;  %v1026_v25 = vrot.slane %v909_v54, 2  ;;  %v1466_v17 = vmul.f32 %v3179_v59, %v3999_v44  ;;  %v1467_v62 = vmul.f32 %v3179_v59, %v4001_v22 }
  0xe1   : > { %v1663_v52 = vadd.f32 %v1581_v56, %v1419_v12  ;;  %v1027_v45 = vrot.slane %v910_v41, 2  ;;  %v1338_v10 = vrot.slane %v1222_v46, 1  ;;  %v1144_v3 = vmul.f32 %v3167_v51, %v3999_v44 }
  0xe2   : > { %v783_v31 = vsel %vm730_vm0, %v781_v48, %v782_v60  ;;  %v1339_v2 = vrot.slane %v1223_v16, 1  ;;  %v1582_v26 = vrot.slane %v1466_v17, 2  ;;  %v1583_v1 = vrot.slane %v1467_v62, 2  ;;  %v374_v16 = vld [vmem:[%s3128_s23 + $0x140] sm:$0xff] }
  0xe3   : > { %v1731_v21 = vadd.f32 %v1699_v50, %v1663_v52  ;;  %v863_v47 = vadd.f32 %v783_v31, %v586_v40  ;;  %v1028_v11 = vsel %vm975_vm1, %v1026_v25, %v1027_v45  ;;  %v1700_v9 = vmul.f32 %v3189_v0, %v4065_v35 }
  0xe4   : > { %v1778_v5 = vmul.f32 %v3241_v33, %v4065_v35  ;;  %v1779_v20 = vmul.f32 %v3241_v33, %v4077_v49  ;;  %v2022_v18 = vmul.f32 %v3792_v19, %v4065_v35  ;;  %v1340_v58 = vsel %vm730_vm0, %v1338_v10, %v1339_v2 }
  0xe5   : > { %v1975_v14 = vadd.f32 %v1893_v43, %v1731_v21  ;;  %v1108_v8 = vadd.f32 %v1028_v11, %v863_v47  ;;  %v2023_v27 = vmul.f32 %v3792_v19, %v4077_v49  ;;  %v432_v53 = vmul.f32 %v3709_v42, %v372_v7  ;;  %v373_v43 = vld [vmem:[%s3128_s23 + $0x138] sm:$0xff] }
  0xe6   : > { %v1894_v50 = vrot.slane %v1778_v5, 1  ;;  %v1895_v34 = vrot.slane %v1779_v20, 1  ;;  %v2138_v57 = vrot.slane %v2022_v18, 2  ;;  %v1584_v63 = vsel %vm975_vm1, %v1582_v26, %v1583_v1 }
  0xe7   : > { %v2219_v23 = vadd.f32 %v2137_v30, %v1975_v14  ;;  %v1176_v4 = vadd.f32 %v1144_v3, %v1108_v8  ;;  %v2139_v56 = vrot.slane %v2023_v27, 2  ;;  %v492_v24 = vadd.f32 %v3723_v29, %v432_v53 }
  0xe8   : > { %v587_v28 = vmul.f32 %v3146_v37, %v3923_v13  ;;  %v666_v32 = vmul.f32 %v3149_v38, %v3962_v6  ;;  %v911_v15 = vmul.f32 %v3152_v39, %v3962_v6  ;;  %v1896_v30 = vsel %vm730_vm0, %v1894_v50, %v1895_v34 }
  0xe9   : > { %2870 = vmatmul.mubr.f32.gmra.mrb[2].mxu1 %v2219_v23  ;;  %v1420_v40 = vadd.f32 %v1340_v58, %v1176_v4  ;;  %v2140_v36 = vsel %vm975_vm1, %v2138_v57, %v2139_v56  ;;  %v1224_v48 = vmul.f32 %v3173_v55, %v4046_v61  ;;  %v4119_v54 = vmax.f32 %v492_v24, 0.0 }
  0xea   : > { %v784_v13 = vrot.slane %v666_v32, 1  ;;  %v1029_v12 = vrot.slane %v911_v15, 2  ;;  %v1468_v41 = vmul.f32 %v3179_v59, %v4046_v61  ;;  %v1145_v6 = vmul.f32 %v3167_v51, %v4001_v22 }
  0xeb   : > { %v1664_v46 = vadd.f32 %v1584_v63, %v1420_v40  ;;  %v1341_v25 = vrot.slane %v1224_v48, 1  ;;  %v433_v17 = vmul.f32 %v3709_v42, %v373_v43  ;;  %v1780_v31 = vmul.f32 %v3241_v33, %v4119_v54 }
  0xec   : > { %v785_v52 = vsel %vm730_vm0, %v782_v60, %v784_v13  ;;  %v1030_v10 = vsel %vm975_vm1, %v1027_v45, %v1029_v12  ;;  %v1585_v62 = vrot.slane %v1468_v41, 2  ;;  %v1701_v21 = vmul.f32 %v3189_v0, %v4077_v49 }
  0xed   : > { %v1732_v3 = vadd.f32 %v1700_v9, %v1664_v46  ;;  %v864_v26 = vadd.f32 %v785_v52, %v587_v28  ;;  %v2024_v47 = vmul.f32 %v3792_v19, %v4119_v54  ;;  %v1342_v11 = vsel %vm730_vm0, %v1339_v2, %v1341_v25  ;;  %v375_v52 = vld [vmem:[%s3128_s23 + $0x148] sm:$0x3] }
  0xee   : > { %v1897_v7 = vrot.slane %v1780_v31, 1  ;;  %v434_v5 = vmul.f32 %v3709_v42, %v374_v16  ;;  %v493_v60 = vadd.f32 %v3723_v29, %v433_v17  ;;  %v1586_v18 = vsel %vm975_vm1, %v1583_v1, %v1585_v62 }
  0xef   : > { %v1976_v45 = vadd.f32 %v1896_v30, %v1732_v3  ;;  %v1109_v20 = vadd.f32 %v1030_v10, %v864_v26  ;;  %v2141_v14 = vrot.slane %v2024_v47, 2  ;;  %v588_v58 = vmul.f32 %v3146_v37, %v3999_v44 }
  0xf0   : > { %v1898_v9 = vsel %vm730_vm0, %v1895_v34, %v1897_v7  ;;  %v494_v8 = vadd.f32 %v3723_v29, %v434_v5  ;;  %v667_v2 = vmul.f32 %v3149_v38, %v3999_v44  ;;  %v4145_v57 = vmax.f32 %v493_v60, 0.0 }
  0xf1   : > { %v2220_v27 = vadd.f32 %v2140_v36, %v1976_v45  ;;  %v1177_v50 = vadd.f32 %v1145_v6, %v1109_v20  ;;  %v668_v53 = vmul.f32 %v3149_v38, %v4001_v22  ;;  %v2142_v1 = vsel %vm975_vm1, %v2139_v56, %v2141_v14 }
  0xf2   : > { %v786_v23 = vrot.slane %v667_v2, 1  ;;  %v912_v34 = vmul.f32 %v3152_v39, %v3999_v44  ;;  %v4154_v4 = vmul.f32 %v3152_v39, %v4001_v22  ;;  %v4156_v24 = vmax.f32 %v494_v8, 0.0 }
  0xf3   : > { %2872 = vmatprep.mubr.f32.mxu1 %v2220_v27  ;;  %v1421_v63 = vadd.f32 %v1342_v11, %v1177_v50  ;;  %v787_v28 = vrot.slane %v668_v53, 1  ;;  %v1225_v32 = vmul.f32 %v3173_v55, %v4065_v35  ;;  %v4163_v43 = vmul.f32 %v3173_v55, %v4077_v49  ;;  %v376_v50 = vld [vmem:[%s3128_s23 + $0x150] sm:$0xff] }
  0xf4   : > { %v1031_v15 = vrot.slane %v912_v34, 2  ;;  %v1032_v56 = vrot.slane %v4154_v4, 2  ;;  %v1469_v44 = vmul.f32 %v3179_v59, %v4065_v35  ;;  %v1470_v48 = vmul.f32 %v3179_v59, %v4077_v49 }
  0xf5   : > { %v1665_v40 = vadd.f32 %v1586_v18, %v1421_v63  ;;  %v788_v30 = vsel %vm730_vm0, %v786_v23, %v787_v28  ;;  %v1343_v36 = vrot.slane %v1225_v32, 1  ;;  %v1146_v41 = vmul.f32 %v3167_v51, %v4065_v35  ;;  %v377_v63 = vld [vmem:[%s3128_s23 + $0x158] sm:$0xff] }
  0xf6   : > { %v865_v13 = vadd.f32 %v788_v30, %v588_v58  ;;  %v1033_v12 = vsel %vm975_vm1, %v1031_v15, %v1032_v56  ;;  %v1344_v46 = vrot.slane %v4163_v43, 1  ;;  %v1587_v25 = vrot.slane %v1469_v44, 2  ;;  %v4211_v43 = vld [vmem:[%s4679_s1] ss:$0 sm:$0xff] }
  0xf7   : > { %v1733_v6 = vadd.f32 %v1701_v21, %v1665_v40  ;;  %v1588_v16 = vrot.slane %v1470_v48, 2  ;;  %v1781_v17 = vmul.f32 %v3241_v33, %v4145_v57  ;;  %v1702_v62 = vmul.f32 %v3189_v0, %v4145_v57 }
  0xf8   : > { %v1110_v10 = vadd.f32 %v1033_v12, %v865_v13  ;;  %v1782_v31 = vmul.f32 %v3241_v33, %v4156_v24  ;;  %v2025_v3 = vmul.f32 %v3792_v19, %v4145_v57  ;;  %v1345_v21 = vsel %vm730_vm0, %v1343_v36, %v1344_v46 }
  0xf9   : > { %v1977_v26 = vadd.f32 %v1898_v9, %v1733_v6  ;;  %v1899_v47 = vrot.slane %v1781_v17, 1  ;;  %v2026_v11 = vmul.f32 %v3792_v19, %v4156_v24  ;;  %v435_v45 = vmul.f32 %v3709_v42, %v375_v52 }
  0xfa   : > { %v1178_v7 = vadd.f32 %v1146_v41, %v1110_v10  ;;  %v1900_v5 = vrot.slane %v1782_v31, 1  ;;  %v2143_v60 = vrot.slane %v2025_v3, 2  ;;  %v1589_v18 = vsel %vm975_vm1, %v1587_v25, %v1588_v16 }
  0xfb   : > { %v2221_v20 = vadd.f32 %v2142_v1, %v1977_v26  ;;  %v2144_v14 = vrot.slane %v2026_v11, 2  ;;  %v669_v9 = vmul.f32 %v3149_v38, %v4046_v61  ;;  %v495_v58 = vadd.f32 %v3723_v29, %v435_v45 }
  0xfc   : > { %v1422_v8 = vadd.f32 %v1345_v21, %v1178_v7  ;;  %v589_v2 = vmul.f32 %v3146_v37, %v4001_v22  ;;  %v914_v27 = vmul.f32 %v3152_v39, %v4046_v61  ;;  %v1901_v42 = vsel %vm730_vm0, %v1899_v47, %v1900_v5 }
  0xfd   : > { %2873 = vmatmul.mubr.f32.gmra.mrb[4].mxu1 %v2221_v20  ;;  %v2145_v53 = vsel %vm975_vm1, %v2143_v60, %v2144_v14  ;;  %v789_v1 = vrot.slane %v669_v9, 1  ;;  %v1227_v23 = vmul.f32 %v3173_v55, %v4119_v54  ;;  %v1147_v29 = vmul.f32 %v3167_v51, %v4077_v49 }
  0xfe   : > { %v1666_v34 = vadd.f32 %v1589_v18, %v1422_v8  ;;  %v1034_v4 = vrot.slane %v914_v27, 2  ;;  %v1471_v22 = vmul.f32 %v3179_v59, %v4119_v54  ;;  %v4205_v61 = vmax.f32 %v495_v58, 0.0 }
  0xff   : > { %v790_v32 = vsel %vm730_vm0, %v787_v28, %v789_v1  ;;  %v1346_v15 = vrot.slane %v1227_v23, 1  ;;  %v436_v44 = vmul.f32 %v4211_v43, %v376_v50  ;;  %v1703_v13 = vmul.f32 %v3189_v0, %v4156_v24 }
 0x100   : > { %v1734_v40 = vadd.f32 %v1702_v62, %v1666_v34  ;;  %v866_v30 = vadd.f32 %v790_v32, %v589_v2  ;;  %v1035_v36 = vsel %vm975_vm1, %v1032_v56, %v1034_v4  ;;  %v1590_v48 = vrot.slane %v1471_v22, 2  ;;  %v4226_v56 = vld [vmem:[%s4680_s2] ss:$0 sm:$0xff] }
 0x101   : > { %v1783_v12 = vmul.f32 %v3241_v33, %v4205_v61  ;;  %v2027_v28 = vmul.f32 %v3792_v19, %v4205_v61  ;;  %v437_v41 = vmul.f32 %v4211_v43, %v377_v63  ;;  %v1347_v17 = vsel %vm730_vm0, %v1344_v46, %v1346_v15  ;;  %v378_v63 = vld [vmem:[%s3128_s23 + $0x160] sm:$0x3] }
 0x102   : > { %v1978_v6 = vadd.f32 %v1901_v42, %v1734_v40  ;;  %v1111_v25 = vadd.f32 %v1035_v36, %v866_v30  ;;  %v496_v52 = vadd.f32 %v4226_v56, %v436_v44  ;;  %v1591_v10 = vsel %vm975_vm1, %v1588_v16, %v1590_v48 }
 0x103   : > { %v1902_v62 = vrot.slane %v1783_v12, 1  ;;  %v2146_v31 = vrot.slane %v2027_v28, 2  ;;  %v497_v3 = vadd.f32 %v4226_v56, %v437_v41  ;;  %v590_v47 = vmul.f32 %v3146_v37, %v4065_v35 }
 0x104   : > { %v2222_v26 = vadd.f32 %v2145_v53, %v1978_v6  ;;  %v1179_v21 = vadd.f32 %v1147_v29, %v1111_v25  ;;  %v670_v46 = vmul.f32 %v3149_v38, %v4065_v35  ;;  %v4237_v60 = vmax.f32 %v496_v52, 0.0 }
 0x105   : > { %v1903_v11 = vsel %vm730_vm0, %v1900_v5, %v1902_v62  ;;  %v2147_v7 = vsel %vm975_vm1, %v2144_v14, %v2146_v31  ;;  %v4241_v16 = vmul.f32 %v3149_v38, %v4077_v49  ;;  %v915_v18 = vmul.f32 %v3152_v39, %v4065_v35 }
 0x106   : > { %2875 = vmatprep.mubr.f32.mxu1 %v2222_v26  ;;  %v1423_v45 = vadd.f32 %v1347_v17, %v1179_v21  ;;  %v791_v20 = vrot.slane %v670_v46, 1  ;;  %v4247_v9 = vmul.f32 %v3152_v39, %v4077_v49  ;;  %v4249_v5 = vmax.f32 %v497_v3, 0.0 }
 0x107   : > { %v792_v14 = vrot.slane %v4241_v16, 1  ;;  %v1228_v8 = vmul.f32 %v3173_v55, %v4145_v57  ;;  %v4256_v58 = vmul.f32 %v3173_v55, %v4156_v24  ;;  %v1036_v27 = vrot.slane %v915_v18, 2 }
 0x108   : > { %v1667_v2 = vadd.f32 %v1591_v10, %v1423_v45  ;;  %v1037_v35 = vrot.slane %v4247_v9, 2  ;;  %v1472_v50 = vmul.f32 %v3179_v59, %v4145_v57  ;;  %v4266_v23 = vmul.f32 %v3179_v59, %v4156_v24 }
 0x109   : > { %v793_v42 = vsel %vm730_vm0, %v791_v20, %v792_v14  ;;  %v1348_v53 = vrot.slane %v1228_v8, 1  ;;  %v1349_v1 = vrot.slane %v4256_v58, 1  ;;  %v1148_v22 = vmul.f32 %v3167_v51, %v4145_v57 }
 0x10a   : > { %v1735_v34 = vadd.f32 %v1703_v13, %v1667_v2  ;;  %v867_v4 = vadd.f32 %v793_v42, %v590_v47  ;;  %v1038_v29 = vsel %vm975_vm1, %v1036_v27, %v1037_v35  ;;  %v1592_v15 = vrot.slane %v1472_v50, 2  ;;  %v379_v27 = vld [vmem:[%s3128_s23 + $0x168] sm:$0xff] }
 0x10b   : > { %v1350_v32 = vsel %vm730_vm0, %v1348_v53, %v1349_v1  ;;  %v1593_v44 = vrot.slane %v4266_v23, 2  ;;  %v1784_v40 = vmul.f32 %v3241_v33, %v4237_v60  ;;  %v1785_v48 = vmul.f32 %v3241_v33, %v4249_v5  ;;  %v4325_v53 = vld [vmem:[%s4681_s3 + $0x8] ss:$0 sm:$0xff] }
 0x10c   : > { %v1979_v30 = vadd.f32 %v1903_v11, %v1735_v34  ;;  %v1112_v36 = vadd.f32 %v1038_v29, %v867_v4  ;;  %v2028_v13 = vmul.f32 %v3792_v19, %v4237_v60  ;;  %v1704_v12 = vmul.f32 %v3189_v0, %v4237_v60  ;;  %v4292_v25 = vpop.f32.mrb[0].mxu0  ;;  %v380_v34 = vld [vmem:[%s3128_s23 + $0x170] sm:$0xff] }
 0x10d   : > { %v1904_v28 = vrot.slane %v1784_v40, 1  ;;  %v2029_v41 = vmul.f32 %v3792_v19, %v4249_v5  ;;  %v438_v6 = vmul.f32 %v4211_v43, %v378_v63  ;;  %v1905_v10 = vrot.slane %v1785_v48, 1  ;;  %2474 = vst [vmem:[%s4281_s29 + $0x8] sm:$0xff] %v4292_v25  ;;  %v4296_v31 = vpop.f32.mrb[1].mxu0 }
 0x10e   : > { %v2223_v17 = vadd.f32 %v2147_v7, %v1979_v30  ;;  %v1180_v52 = vadd.f32 %v1148_v22, %v1112_v36  ;;  %v2148_v62 = vrot.slane %v2028_v13, 2  ;;  %v1594_v3 = vsel %vm975_vm1, %v1592_v15, %v1593_v44  ;;  %2473 = vst [vmem:[%s4281_s29] sm:$0xff] %v4296_v31 }
 0x10f   : > { %v2149_v26 = vrot.slane %v2029_v41, 2  ;;  %v498_v21 = vadd.f32 %v4226_v56, %v438_v6  ;;  %v672_v19 = vmul.f32 %v3149_v38, %v4119_v54  ;;  %v1906_v46 = vsel %vm730_vm0, %v1904_v28, %v1905_v10 }
 0x110   : > { %2876 = vmatmul.mubr.f32.gmra.mrb[6].mxu1 %v2223_v17  ;;  %v1424_v47 = vadd.f32 %v1350_v32, %v1180_v52  ;;  %v591_v11 = vmul.f32 %v3146_v37, %v4077_v49  ;;  %v917_v7 = vmul.f32 %v3152_v39, %v4119_v54  ;;  %v1149_v20 = vmul.f32 %v3167_v51, %v4156_v24 }
 0x111   : > { %v4309_v16 = vmax.f32 %v498_v21, 0.0  ;;  %v794_v45 = vrot.slane %v672_v19, 1  ;;  %v1230_v18 = vmul.f32 %v3173_v55, %v4205_v61  ;;  %v2150_v8 = vsel %vm975_vm1, %v2148_v62, %v2149_v26 }
 0x112   : > { %v1668_v9 = vadd.f32 %v1594_v3, %v1424_v47  ;;  %v1039_v2 = vrot.slane %v917_v7, 2  ;;  %v1474_v49 = vmul.f32 %v3179_v59, %v4205_v61  ;;  %v439_v40 = vmul.f32 %v4211_v43, %v379_v27 }
 0x113   : > { %v795_v50 = vsel %vm730_vm0, %v792_v14, %v794_v45  ;;  %v1351_v54 = vrot.slane %v1230_v18, 1  ;;  %v1786_v42 = vmul.f32 %v3241_v33, %v4309_v16  ;;  %v2030_v23 = vmul.f32 %v4325_v53, %v4309_v16 }
 0x114   : > { %v1736_v4 = vadd.f32 %v1704_v12, %v1668_v9  ;;  %v868_v29 = vadd.f32 %v795_v50, %v591_v11  ;;  %v1040_v22 = vsel %vm975_vm1, %v1037_v35, %v1039_v2  ;;  %v1595_v63 = vrot.slane %v1474_v49, 2 }
 0x115   : > { %v1705_v14 = vmul.f32 %v3189_v0, %v4249_v5  ;;  %v1907_v32 = vrot.slane %v1786_v42, 1  ;;  %v2151_v15 = vrot.slane %v2030_v23, 2  ;;  %v1352_v48 = vsel %vm730_vm0, %v1349_v1, %v1351_v54 }
 0x116   : > { %v1980_v30 = vadd.f32 %v1906_v46, %v1736_v4  ;;  %v1113_v36 = vadd.f32 %v1040_v22, %v868_v29  ;;  %v440_v13 = vmul.f32 %v4211_v43, %v380_v34  ;;  %v1596_v12 = vsel %vm975_vm1, %v1593_v44, %v1595_v63  ;;  %v381_v63 = vld [vmem:[%s3128_s23 + $0x178] sm:$0x3] }
 0x117   : > { %v1908_v35 = vsel %vm730_vm0, %v1905_v10, %v1907_v32  ;;  %v2152_v28 = vsel %vm975_vm1, %v2149_v26, %v2151_v15  ;;  %v499_v41 = vadd.f32 %v4226_v56, %v439_v40  ;;  %v673_v62 = vmul.f32 %v3149_v38, %v4145_v57 }
 0x118   : > { %v2224_v6 = vadd.f32 %v2150_v8, %v1980_v30  ;;  %v1181_v17 = vadd.f32 %v1149_v20, %v1113_v36  ;;  %v500_v52 = vadd.f32 %v4226_v56, %v440_v13  ;;  %v592_v58 = vmul.f32 %v3146_v37, %v4145_v57 }
 0x119   : > { %v4349_v1 = vmul.f32 %v3149_v38, %v4156_v24  ;;  %v918_v44 = vmul.f32 %v3152_v39, %v4145_v57  ;;  %v4355_v10 = vmul.f32 %v3152_v39, %v4156_v24  ;;  %v4357_v26 = vmax.f32 %v499_v41, 0.0 }
 0x11a   : > { %2878 = vmatprep.mubr.f32.mxu1 %v2224_v6  ;;  %v1425_v3 = vadd.f32 %v1352_v48, %v1181_v17  ;;  %v4359_v21 = vmax.f32 %v500_v52, 0.0  ;;  %v796_v19 = vrot.slane %v673_v62, 1  ;;  %v1231_v7 = vmul.f32 %v3173_v55, %v4237_v60 }
 0x11b   : > { %v797_v47 = vrot.slane %v4349_v1, 1  ;;  %v1041_v46 = vrot.slane %v918_v44, 2  ;;  %v1042_v11 = vrot.slane %v4355_v10, 2  ;;  %v1232_v45 = vmul.f32 %v3173_v55, %v4249_v5  ;;  %v382_v44 = vld [vmem:[%s3128_s23 + $0x180] sm:$0xff] }
 0x11c   : > { %v1669_v57 = vadd.f32 %v1596_v12, %v1425_v3  ;;  %v1475_v20 = vmul.f32 %v3179_v59, %v4237_v60  ;;  %v4371_v18 = vmul.f32 %v3179_v59, %v4249_v5  ;;  %v1150_v2 = vmul.f32 %v3167_v51, %v4237_v60 }
 0x11d   : > { %v798_v9 = vsel %vm730_vm0, %v796_v19, %v797_v47  ;;  %v1043_v8 = vsel %vm975_vm1, %v1041_v46, %v1042_v11  ;;  %v1353_v49 = vrot.slane %v1231_v7, 1  ;;  %v1354_v54 = vrot.slane %v1232_v45, 1 }
 0x11e   : > { %v1737_v27 = vadd.f32 %v1705_v14, %v1669_v57  ;;  %v869_v50 = vadd.f32 %v798_v9, %v592_v58  ;;  %v1597_v42 = vrot.slane %v1475_v20, 2  ;;  %v4377_v23 = vpop.f32.mrb[2].mxu0  ;;  %v1598_v34 = vrot.slane %v4371_v18, 2  ;;  %v383_v9 = vld [vmem:[%s3128_s23 + $0x188] sm:$0xff] }
 0x11f   : > { %v1787_v4 = vmul.f32 %v3241_v33, %v4357_v26  ;;  %v1788_v29 = vmul.f32 %v3241_v33, %v4359_v21  ;;  %v2031_v22 = vmul.f32 %v4325_v53, %v4357_v26  ;;  %2476 = vst [vmem:[%s4281_s29 + $0x18] sm:$0xff] %v4377_v23  ;;  %v4389_v14 = vpop.f32.mrb[3].mxu0  ;;  %v1706_v40 = vmul.f32 %v3189_v0, %v4357_v26 }
 0x120   : > { %v1981_v32 = vadd.f32 %v1908_v35, %v1737_v27  ;;  %v1114_v15 = vadd.f32 %v1043_v8, %v869_v50  ;;  %v2032_v30 = vmul.f32 %v4325_v53, %v4359_v21  ;;  %2475 = vst [vmem:[%s4281_s29 + $0x10] sm:$0xff] %v4389_v14  ;;  %v1355_v36 = vsel %vm730_vm0, %v1353_v49, %v1354_v54 }
 0x121   : > { %v1909_v48 = vrot.slane %v1787_v4, 1  ;;  %v1910_v13 = vrot.slane %v1788_v29, 1  ;;  %v2153_v12 = vrot.slane %v2031_v22, 2  ;;  %v441_v35 = vmul.f32 %v4211_v43, %v381_v63 }
 0x122   : > { %v2225_v41 = vadd.f32 %v2152_v28, %v1981_v32  ;;  %v1182_v6 = vadd.f32 %v1150_v2, %v1114_v15  ;;  %v2154_v17 = vrot.slane %v2032_v30, 2  ;;  %v1599_v52 = vsel %vm975_vm1, %v1597_v42, %v1598_v34 }
 0x123   : > { %v1911_v62 = vsel %vm730_vm0, %v1909_v48, %v1910_v13  ;;  %v675_v58 = vmul.f32 %v3149_v38, %v4205_v61  ;;  %v920_v1 = vmul.f32 %v3152_v39, %v4205_v61  ;;  %v501_v3 = vadd.f32 %v4226_v56, %v441_v35 }
 0x124   : > { %2879 = vmatmul.mubr.f32.gmra.mrb[8].mxu1 %v2225_v41  ;;  %v1426_v10 = vadd.f32 %v1355_v36, %v1182_v6  ;;  %v2155_v28 = vsel %vm975_vm1, %v2153_v12, %v2154_v17  ;;  %v593_v19 = vmul.f32 %v3146_v37, %v4156_v24  ;;  %v1233_v57 = vmul.f32 %v3173_v55, %v4309_v16 }
 0x125   : > { %v799_v46 = vrot.slane %v675_v58, 1  ;;  %v1044_v7 = vrot.slane %v920_v1, 2  ;;  %v1477_v45 = vmul.f32 %v3179_v59, %v4309_v16  ;;  %v4414_v61 = vmax.f32 %v501_v3, 0.0 }
 0x126   : > { %v1670_v20 = vadd.f32 %v1599_v52, %v1426_v10  ;;  %v1151_v18 = vmul.f32 %v3167_v51, %v4249_v5  ;;  %v442_v8 = vmul.f32 %v4211_v43, %v382_v44  ;;  %v1356_v49 = vrot.slane %v1233_v57, 1 }
 0x127   : > { %v800_v2 = vsel %vm730_vm0, %v797_v47, %v799_v46  ;;  %v1045_v24 = vsel %vm975_vm1, %v1042_v11, %v1044_v7  ;;  %v1600_v27 = vrot.slane %v1477_v45, 2  ;;  %v1789_v4 = vmul.f32 %v3241_v33, %v4414_v61 }
 0x128   : > { %v1738_v50 = vadd.f32 %v1706_v40, %v1670_v20  ;;  %v870_v42 = vadd.f32 %v800_v2, %v593_v19  ;;  %v2033_v29 = vmul.f32 %v4325_v53, %v4414_v61  ;;  %v1357_v22 = vsel %vm730_vm0, %v1354_v54, %v1356_v49 }
 0x129   : > { %v1707_v63 = vmul.f32 %v3189_v0, %v4359_v21  ;;  %v443_v32 = vmul.f32 %v4211_v43, %v383_v9  ;;  %v502_v47 = vadd.f32 %v4226_v56, %v442_v8  ;;  %v1912_v30 = vrot.slane %v1789_v4, 1 }
 0x12a   : > { %v1982_v11 = vadd.f32 %v1911_v62, %v1738_v50  ;;  %v1115_v15 = vadd.f32 %v1045_v24, %v870_v42  ;;  %v2156_v40 = vrot.slane %v2033_v29, 2  ;;  %v1601_v36 = vsel %vm975_vm1, %v1598_v34, %v1600_v27  ;;  %v384_v50 = vld [vmem:[%s3128_s23 + $0x190] sm:$0x3] }
 0x12b   : > { %v503_v48 = vadd.f32 %v4226_v56, %v443_v32  ;;  %v4433_v12 = vmax.f32 %v502_v47, 0.0  ;;  %v676_v54 = vmul.f32 %v3149_v38, %v4237_v60  ;;  %v1913_v35 = vsel %vm730_vm0, %v1910_v13, %v1912_v30 }
 0x12c   : > { %v2226_v41 = vadd.f32 %v2155_v28, %v1982_v11  ;;  %v1183_v6 = vadd.f32 %v1151_v18, %v1115_v15  ;;  %v594_v52 = vmul.f32 %v3146_v37, %v4237_v60  ;;  %v2157_v62 = vsel %vm975_vm1, %v2154_v17, %v2156_v40 }
 0x12d   : > { %v4443_v58 = vmul.f32 %v3149_v38, %v4249_v5  ;;  %v801_v34 = vrot.slane %v676_v54, 1  ;;  %v921_v1 = vmul.f32 %v3152_v39, %v4237_v60  ;;  %v4447_v10 = vmax.f32 %v503_v48, 0.0 }
 0x12e   : > { %2881 = vmatprep.mubr.f32.mxu1 %v2226_v41  ;;  %v1427_v44 = vadd.f32 %v1357_v22, %v1183_v6  ;;  %v922_v13 = vmul.f32 %v3152_v39, %v4249_v5  ;;  %v1234_v28 = vmul.f32 %v3173_v55, %v4357_v26  ;;  %v4456_v19 = vmul.f32 %v3173_v55, %v4359_v21 }
 0x12f   : > { %v802_v17 = vrot.slane %v4443_v58, 1  ;;  %v1046_v3 = vrot.slane %v921_v1, 2  ;;  %v1478_v60 = vmul.f32 %v3179_v59, %v4357_v26  ;;  %v4462_v45 = vmul.f32 %v3179_v59, %v4359_v21 }
 0x130   : > { %v1671_v46 = vadd.f32 %v1601_v36, %v1427_v44  ;;  %v1047_v7 = vrot.slane %v922_v13, 2  ;;  %v1358_v57 = vrot.slane %v1234_v28, 1  ;;  %v1152_v18 = vmul.f32 %v3167_v51, %v4357_v26  ;;  %v385_v13 = vld [vmem:[%s3128_s23 + $0x198] sm:$0xff] }
 0x131   : > { %v803_v20 = vsel %vm730_vm0, %v801_v34, %v802_v17  ;;  %v1359_v9 = vrot.slane %v4456_v19, 1  ;;  %v1602_v8 = vrot.slane %v1478_v60, 2  ;;  %v1603_v27 = vrot.slane %v4462_v45, 2 }
 0x132   : > { %v1739_v2 = vadd.f32 %v1707_v63, %v1671_v46  ;;  %v871_v24 = vadd.f32 %v803_v20, %v594_v52  ;;  %v1048_v49 = vsel %vm975_vm1, %v1046_v3, %v1047_v7  ;;  %v4471_v42 = vpop.f32.mrb[4].mxu0  ;;  %v1708_v4 = vmul.f32 %v3189_v0, %v4433_v12 }
 0x133   : > { %v1790_v29 = vmul.f32 %v3241_v33, %v4433_v12  ;;  %v1791_v22 = vmul.f32 %v3241_v33, %v4447_v10  ;;  %v2034_v63 = vmul.f32 %v4325_v53, %v4433_v12  ;;  %2478 = vst [vmem:[%s4281_s29 + $0x28] sm:$0xff] %v4471_v42  ;;  %v4483_v32 = vpop.f32.mrb[5].mxu0  ;;  %v1360_v15 = vsel %vm730_vm0, %v1358_v57, %v1359_v9 }
 0x134   : > { %v1983_v47 = vadd.f32 %v1913_v35, %v1739_v2  ;;  %v1116_v11 = vadd.f32 %v1048_v49, %v871_v24  ;;  %v4488_v30 = vmul.f32 %v4325_v53, %v4447_v10  ;;  %2477 = vst [vmem:[%s4281_s29 + $0x20] sm:$0xff] %v4483_v32  ;;  %v444_v54 = vmul.f32 %v4211_v43, %v384_v50 }
 0x135   : > { %v1914_v40 = vrot.slane %v1790_v29, 1  ;;  %v1915_v36 = vrot.slane %v1791_v22, 1  ;;  %v2158_v48 = vrot.slane %v2034_v63, 2  ;;  %v1604_v52 = vsel %vm975_vm1, %v1602_v8, %v1603_v27 }
 0x136   : > { %v2227_v41 = vadd.f32 %v2157_v62, %v1983_v47  ;;  %v1184_v6 = vadd.f32 %v1152_v18, %v1116_v11  ;;  %v2159_v35 = vrot.slane %v4488_v30, 2  ;;  %v504_v58 = vadd.f32 %v4226_v56, %v444_v54  ;;  %v386_v18 = vld [vmem:[%s3128_s23 + $0x1a0] sm:$0xff] }
 0x137   : > { %v595_v34 = vmul.f32 %v3146_v37, %v4249_v5  ;;  %v678_v1 = vmul.f32 %v3149_v38, %v4309_v16  ;;  %v923_v44 = vmul.f32 %v3152_v39, %v4309_v16  ;;  %v1916_v28 = vsel %vm730_vm0, %v1914_v40, %v1915_v36 }
 0x138   : > { %2882 = vmatmul.mubr.f32.gmra.mrb[10].mxu1 %v2227_v41  ;;  %v1428_v62 = vadd.f32 %v1360_v15, %v1184_v6  ;;  %v2160_v3 = vsel %vm975_vm1, %v2158_v48, %v2159_v35  ;;  %v1236_v19 = vmul.f32 %v3173_v55, %v4414_v61  ;;  %v4509_v5 = vmax.f32 %v504_v58, 0.0 }
 0x139   : > { %v804_v60 = vrot.slane %v678_v1, 1  ;;  %v1049_v46 = vrot.slane %v923_v44, 2  ;;  %v1480_v57 = vmul.f32 %v3179_v59, %v4414_v61  ;;  %v1153_v45 = vmul.f32 %v3167_v51, %v4359_v21 }
 0x13a   : > { %v1672_v16 = vadd.f32 %v1604_v52, %v1428_v62  ;;  %v1361_v20 = vrot.slane %v1236_v19, 1  ;;  %v445_v8 = vmul.f32 %v4211_v43, %v385_v13  ;;  %v1792_v50 = vmul.f32 %v3241_v33, %v4509_v5 }
 0x13b   : > { %v805_v2 = vsel %vm730_vm0, %v802_v17, %v804_v60  ;;  %v1050_v24 = vsel %vm975_vm1, %v1047_v7, %v1049_v46  ;;  %v1605_v49 = vrot.slane %v1480_v57, 2  ;;  %v1709_v63 = vmul.f32 %v3189_v0, %v4447_v10 }
 0x13c   : > { %v1740_v29 = vadd.f32 %v1708_v4, %v1672_v16  ;;  %v872_v22 = vadd.f32 %v805_v2, %v595_v34  ;;  %v2036_v47 = vmul.f32 %v4325_v53, %v4509_v5  ;;  %v1362_v11 = vsel %vm730_vm0, %v1359_v9, %v1361_v20 }
 0x13d   : > { %v1917_v15 = vrot.slane %v1792_v50, 1  ;;  %v446_v40 = vmul.f32 %v4211_v43, %v386_v18  ;;  %v505_v17 = vadd.f32 %v4226_v56, %v445_v8  ;;  %v1606_v54 = vsel %vm975_vm1, %v1603_v27, %v1605_v49 }
 0x13e   : > { %v1984_v7 = vadd.f32 %v1916_v28, %v1740_v29  ;;  %v1117_v48 = vadd.f32 %v1050_v24, %v872_v22  ;;  %v2161_v41 = vrot.slane %v2036_v47, 2  ;;  %v596_v52 = vmul.f32 %v3146_v37, %v4357_v26 }
 0x13f   : > { %v1918_v4 = vsel %vm730_vm0, %v1915_v36, %v1917_v15  ;;  %v506_v6 = vadd.f32 %v4226_v56, %v446_v40  ;;  %v679_v9 = vmul.f32 %v3149_v38, %v4357_v26  ;;  %v559_v1 = vmax.f32 %v505_v17, 0.0 }
 0x140   : > { %v2228_v58 = vadd.f32 %v2160_v3, %v1984_v7  ;;  %v1185_v34 = vadd.f32 %v1153_v45, %v1117_v48  ;;  %v680_v44 = vmul.f32 %v3149_v38, %v4359_v21  ;;  %v924_v36 = vmul.f32 %v3152_v39, %v4357_v26 }
 0x141   : > { %v4537_v13 = vmax.f32 %v506_v6, 0.0  ;;  %v806_v27 = vrot.slane %v679_v9, 1  ;;  %v925_v62 = vmul.f32 %v3152_v39, %v4359_v21  ;;  %v1154_v3 = vmul.f32 %v3167_v51, %v4433_v12 }
 0x142   : > { %2884 = vmatprep.mubr.f32.mxu1 %v2228_v58  ;;  %v1429_v28 = vadd.f32 %v1362_v11, %v1185_v34  ;;  %v807_v19 = vrot.slane %v680_v44, 1  ;;  %v1237_v60 = vmul.f32 %v3173_v55, %v4433_v12  ;;  %v1051_v46 = vrot.slane %v924_v36, 2  ;;  %v387_v11 = vld [vmem:[%s3128_s23 + $0x1a8] sm:$0x3]  ;;  %s2754_s23 = sshll.u32 %s4691_s24, 3 }
 0x143   : > { %v1052_v57 = vrot.slane %v925_v62, 2  ;;  %v4549_v16 = vmul.f32 %v3173_v55, %v4447_v10  ;;  %v1481_v26 = vmul.f32 %v3179_v59, %v4433_v12  ;;  %v4556_v8 = vmul.f32 %v3179_v59, %v4447_v10  ;;  %s319_s11 = scalar_lea.vmem %s4684_s6, %s2754_s23  ;;  %s323_s14 = scalar_lea.vmem %s4685_s7, %s2754_s23 }
 0x144   : > { %v1673_v45 = vadd.f32 %v1606_v54, %v1429_v28  ;;  %v808_v20 = vsel %vm730_vm0, %v806_v27, %v807_v19  ;;  %v1363_v18 = vrot.slane %v1237_v60, 1  ;;  %v1793_v47 = vmul.f32 %v3241_v33, %v559_v1 }
 0x145   : > { %v873_v2 = vadd.f32 %v808_v20, %v596_v52  ;;  %v1053_v24 = vsel %vm975_vm1, %v1051_v46, %v1052_v57  ;;  %v1364_v49 = vrot.slane %v4549_v16, 1  ;;  %v1607_v50 = vrot.slane %v1481_v26, 2  ;;  %v4560_v29 = vpop.f32.mrb[6].mxu0 }
 0x146   : > { %v1741_v22 = vadd.f32 %v1709_v63, %v1673_v45  ;;  %v1608_v12 = vrot.slane %v4556_v8, 2  ;;  %2480 = vst [vmem:[%s4281_s29 + $0x38] sm:$0xff] %v4560_v29  ;;  %v4567_v15 = vpop.f32.mrb[7].mxu0  ;;  %v2162_v40 = vsel %vm975_vm1, %v2159_v35, %v2161_v41  ;;  %v4574_v7 = vmul.f32 %v3241_v33, %v4537_v13 }
 0x147   : > { %v1118_v17 = vadd.f32 %v1053_v24, %v873_v2  ;;  %2479 = vst [vmem:[%s4281_s29 + $0x30] sm:$0xff] %v4567_v15  ;;  %v1365_v48 = vsel %vm730_vm0, %v1363_v18, %v1364_v49  ;;  %v2037_v54 = vmul.f32 %v4325_v53, %v559_v1  ;;  %v4582_v6 = vmul.f32 %v4325_v53, %v4537_v13 }
 0x148   : > { %v1985_v63 = vadd.f32 %v1918_v4, %v1741_v22  ;;  %v1609_v30 = vsel %vm975_vm1, %v1607_v50, %v1608_v12  ;;  %v1710_v35 = vmul.f32 %v3189_v0, %v559_v1  ;;  %v447_v41 = vmul.f32 %v4211_v43, %v387_v11 }
 0x149   : > { %v1186_v52 = vadd.f32 %v1154_v3, %v1118_v17  ;;  %v1919_v58 = vrot.slane %v1793_v47, 1  ;;  %v1920_v34 = vrot.slane %v4574_v7, 1  ;;  %v681_v4 = vmul.f32 %v3149_v38, %v4414_v61 }
 0x14a   : > { %v2229_v9 = vadd.f32 %v2162_v40, %v1985_v63  ;;  %v507_v27 = vadd.f32 %v4226_v56, %v447_v41  ;;  %v597_v36 = vmul.f32 %v3146_v37, %v4359_v21  ;;  %v926_v62 = vmul.f32 %v3152_v39, %v4414_v61 }
 0x14b   : > { %v1430_v44 = vadd.f32 %v1365_v48, %v1186_v52  ;;  %v2163_v1 = vrot.slane %v2037_v54, 2  ;;  %v2164_v43 = vrot.slane %v4582_v6, 2  ;;  %v809_v28 = vrot.slane %v681_v4, 1 }
 0x14c   : > { %2885 = vmatmul.mubr.f32.gmra.mrb[12].mxu1 %v2229_v9  ;;  %v1239_v3 = vmul.f32 %v3173_v55, %v4509_v5  ;;  %v561_v46 = vmax.f32 %v507_v27, 0.0  ;;  %v1054_v38 = vrot.slane %v926_v62, 2  ;;  %v1483_v56 = vmul.f32 %v3179_v59, %v4509_v5 }
 0x14d   : > { %v1674_v60 = vadd.f32 %v1609_v30, %v1430_v44  ;;  %v1921_v16 = vsel %vm730_vm0, %v1919_v58, %v1920_v34  ;;  %v810_v37 = vsel %vm730_vm0, %v807_v19, %v809_v28  ;;  %v1155_v39 = vmul.f32 %v3167_v51, %v4447_v10 }
 0x14e   : > { %v1366_v21 = vrot.slane %v1239_v3, 1  ;;  %v874_v26 = vadd.f32 %v810_v37, %v597_v36  ;;  %v1055_v45 = vsel %vm975_vm1, %v1052_v57, %v1054_v38  ;;  %v2547_v55 = vmul.f32 %v4292_v25, %v4292_v25 }
 0x14f   : > { %v1742_v61 = vadd.f32 %v1710_v35, %v1674_v60  ;;  %v2165_v20 = vsel %vm975_vm1, %v2163_v1, %v2164_v43  ;;  %v1610_v18 = vrot.slane %v1483_v56, 2  ;;  %v1795_v59 = vmul.f32 %v3241_v33, %v561_v46 }
 0x150   : > { %v2506_v5 = vadd.f32 %v4292_v25, %v4296_v31  ;;  %v1119_v8 = vadd.f32 %v1055_v45, %v874_v26  ;;  %v2546_v51 = vmul.f32 %v4296_v31, %v4296_v31  ;;  %v1367_v10 = vsel %vm730_vm0, %v1364_v49, %v1366_v21 }
 0x151   : > { %v1986_v19 = vadd.f32 %v1921_v16, %v1742_v61  ;;  %v2039_v57 = vmul.f32 %v4325_v53, %v561_v46  ;;  %v2548_v33 = vmul.f32 %v4389_v14, %v4389_v14  ;;  %v1611_v47 = vsel %vm975_vm1, %v1608_v12, %v1610_v18 }
 0x152   : > { %v2507_v2 = vadd.f32 %v2506_v5, %v4389_v14  ;;  %v1187_v50 = vadd.f32 %v1155_v39, %v1119_v8  ;;  %v2578_v22 = vadd.f32 %v2547_v55, %v2546_v51  ;;  %v1711_v25 = vmul.f32 %v3189_v0, %v4537_v13 }
 0x153   : > { %v2230_v24 = vadd.f32 %v2165_v20, %v1986_v19  ;;  %v1922_v11 = vrot.slane %v1795_v59, 1  ;;  %v2549_v53 = vmul.f32 %v4377_v23, %v4377_v23  ;;  %v2550_v17 = vmul.f32 %v4483_v32, %v4483_v32 }
 0x154   : > { %v2508_v31 = vadd.f32 %v4377_v23, %v2507_v2  ;;  %v1431_v49 = vadd.f32 %v1367_v10, %v1187_v50  ;;  %v2579_v40 = vadd.f32 %v2578_v22, %v2548_v33  ;;  %v2166_v7 = vrot.slane %v2039_v57, 2 }
 0x155   : > { %2887 = vmatprep.mubr.f32.mxu1 %v2230_v24  ;;  %v1923_v0 = vsel %vm730_vm0, %v1920_v34, %v1922_v11  ;;  %v2551_v54 = vmul.f32 %v4471_v42, %v4471_v42  ;;  %v2552_v6 = vmul.f32 %v4567_v15, %v4567_v15 }
 0x156   : > { %v2509_v14 = vadd.f32 %v2508_v31, %v4483_v32  ;;  %v1675_v12 = vadd.f32 %v1611_v47, %v1431_v49  ;;  %v2580_v63 = vadd.f32 %v2579_v40, %v2549_v53  ;;  %v2167_v30 = vsel %vm975_vm1, %v2164_v43, %v2166_v7 }
 0x158   : > { %v2510_v13 = vadd.f32 %v4471_v42, %v2509_v14  ;;  %v1743_v48 = vadd.f32 %v1711_v25, %v1675_v12  ;;  %v2581_v23 = vadd.f32 %v2580_v63, %v2550_v17  ;;  %v2553_v42 = vmul.f32 %v4560_v29, %v4560_v29 }
 0x159   : > { %v2856_v52 = vpop.f32.mrb[8].mxu0 }
 0x15a   : > { %v2511_v32 = vadd.f32 %v2510_v13, %v4567_v15  ;;  %2482 = vst [vmem:[%s4281_s29 + $0x48] sm:$0xff] %v2856_v52  ;;  %v2354_v35 = vpop.f32.mrb[9].mxu0  ;;  %v1987_v41 = vadd.f32 %v1923_v0, %v1743_v48  ;;  %v2582_v9 = vadd.f32 %v2581_v23, %v2551_v54  ;;  %v2555_v62 = vmul.f32 %v2856_v52, %v2856_v52 }
 0x15b   : > { %2481 = vst [vmem:[%s4281_s29 + $0x40] sm:$0xff] %v2354_v35  ;;  %v2554_v44 = vmul.f32 %v2354_v35, %v2354_v35 }
 0x15c   : > { %v2512_v58 = vadd.f32 %v4560_v29, %v2511_v32  ;;  %v2231_v34 = vadd.f32 %v2167_v30, %v1987_v41  ;;  %v2583_v4 = vadd.f32 %v2582_v9, %v2552_v6 }
 0x15e   : > { %v2513_v27 = vadd.f32 %v2512_v58, %v2354_v35  ;;  %2888 = vmatmul.mubr.f32.gmra.mrb[14].mxu1 %v2231_v34  ;;  %v2584_v36 = vadd.f32 %v2583_v4, %v2553_v42 }
 0x160   : > { %v2514_v15 = vadd.f32 %v2856_v52, %v2513_v27  ;;  %v2585_v1 = vadd.f32 %v2584_v36, %v2554_v44 }
 0x162   : > { %v2586_v43 = vadd.f32 %v2585_v1, %v2555_v62 }
 0x16d   : > { %v2859_v28 = vpop.f32.mrb[10].mxu0 }
 0x16e   : > { %2484 = vst [vmem:[%s4281_s29 + $0x58] sm:$0xff] %v2859_v28  ;;  %v2364_v3 = vpop.f32.mrb[11].mxu0  ;;  %v2557_v38 = vmul.f32 %v2859_v28, %v2859_v28 }
 0x16f   : > { %2483 = vst [vmem:[%s4281_s29 + $0x50] sm:$0xff] %v2364_v3  ;;  %v2515_v60 = vadd.f32 %v2514_v15, %v2364_v3  ;;  %v2556_v46 = vmul.f32 %v2364_v3, %v2364_v3 }
 0x171   : > { %v2587_v29 = vadd.f32 %v2586_v43, %v2556_v46  ;;  %v2516_v56 = vadd.f32 %v2859_v28, %v2515_v60 }
 0x173   : > { %v2588_v16 = vadd.f32 %v2587_v29, %v2557_v38 }
 0x181   : > { %v2862_v37 = vpop.f32.mrb[12].mxu0 }
 0x182   : > { %2486 = vst [vmem:[%s4281_s29 + $0x68] sm:$0xff] %v2862_v37  ;;  %v2374_v39 = vpop.f32.mrb[13].mxu0  ;;  %v2559_v26 = vmul.f32 %v2862_v37, %v2862_v37 }
 0x183   : > { %2485 = vst [vmem:[%s4281_s29 + $0x60] sm:$0xff] %v2374_v39  ;;  %v2517_v21 = vadd.f32 %v2516_v56, %v2374_v39  ;;  %v2558_v61 = vmul.f32 %v2374_v39, %v2374_v39 }
 0x185   : > { %v2589_v45 = vadd.f32 %v2588_v16, %v2558_v61  ;;  %v2518_v55 = vadd.f32 %v2862_v37, %v2517_v21 }
 0x187   : > { %v2590_v20 = vadd.f32 %v2589_v45, %v2559_v26 }
 0x194   : > { %v2865_v18 = vpop.f32.mrb[14].mxu0 }
 0x195   : > { %2488 = vst [vmem:[%s4281_s29 + $0x78] sm:$0xff] %v2865_v18  ;;  %v2384_v59 = vpop.f32.mrb[15].mxu0  ;;  %v2561_v8 = vmul.f32 %v2865_v18, %v2865_v18 }
 0x196   : > { %2487 = vst [vmem:[%s4281_s29 + $0x70] sm:$0xff] %v2384_v59  ;;  %v2519_v5 = vadd.f32 %v2518_v55, %v2384_v59  ;;  %v2560_v19 = vmul.f32 %v2384_v59, %v2384_v59 }
 0x198   : > { %v2520_v51 = vadd.f32 %v2865_v18, %v2519_v5  ;;  %v2591_v10 = vadd.f32 %v2590_v20, %v2560_v19 }
 0x19a   : > { %v2592_v57 = vadd.f32 %v2591_v10, %v2561_v8 }
 0x1a8   : > { %v2868_v2 = vpop.f32.mrb[0].mxu1 }
 0x1a9   : > { %2490 = vst [vmem:[%s4281_s29 + $0x88] sm:$0xff] %v2868_v2  ;;  %v2394_v24 = vpop.f32.mrb[1].mxu1  ;;  %v2563_v33 = vmul.f32 %v2868_v2, %v2868_v2 }
 0x1aa   : > { %2489 = vst [vmem:[%s4281_s29 + $0x80] sm:$0xff] %v2394_v24  ;;  %v2521_v50 = vadd.f32 %v2520_v51, %v2394_v24  ;;  %v2562_v22 = vmul.f32 %v2394_v24, %v2394_v24 }
 0x1ac   : > { %v2593_v47 = vadd.f32 %v2592_v57, %v2562_v22  ;;  %v2522_v25 = vadd.f32 %v2868_v2, %v2521_v50 }
 0x1ae   : > { %v2594_v11 = vadd.f32 %v2593_v47, %v2563_v33 }
 0x1bc   : > { %v2871_v31 = vpop.f32.mrb[2].mxu1 }
 0x1bd   : > { %2492 = vst [vmem:[%s4281_s29 + $0x98] sm:$0xff] %v2871_v31  ;;  %v2404_v49 = vpop.f32.mrb[3].mxu1  ;;  %v2565_v17 = vmul.f32 %v2871_v31, %v2871_v31 }
 0x1be   : > { %2491 = vst [vmem:[%s4281_s29 + $0x90] sm:$0xff] %v2404_v49  ;;  %v2523_v53 = vadd.f32 %v2522_v25, %v2404_v49  ;;  %v2564_v40 = vmul.f32 %v2404_v49, %v2404_v49 }
 0x1c0   : > { %v2595_v7 = vadd.f32 %v2594_v11, %v2564_v40  ;;  %v2524_v14 = vadd.f32 %v2871_v31, %v2523_v53 }
 0x1c2   : > { %v2596_v12 = vadd.f32 %v2595_v7, %v2565_v17 }
 0x1d0   : > { %v2874_v63 = vpop.f32.mrb[4].mxu1 }
 0x1d1   : > { %2494 = vst [vmem:[%s4281_s29 + $0xa8] sm:$0xff] %v2874_v63  ;;  %v2414_v0 = vpop.f32.mrb[5].mxu1  ;;  %v2567_v54 = vmul.f32 %v2874_v63, %v2874_v63 }
 0x1d2   : > { %2493 = vst [vmem:[%s4281_s29 + $0xa0] sm:$0xff] %v2414_v0  ;;  %v2525_v13 = vadd.f32 %v2524_v14, %v2414_v0  ;;  %v2566_v48 = vmul.f32 %v2414_v0, %v2414_v0 }
 0x1d4   : > { %v2597_v23 = vadd.f32 %v2596_v12, %v2566_v48  ;;  %v2526_v6 = vadd.f32 %v2874_v63, %v2525_v13 }
 0x1d6   : > { %v2598_v52 = vadd.f32 %v2597_v23, %v2567_v54 }
 0x1e3   : > { %v2877_v30 = vpop.f32.mrb[6].mxu1 }
 0x1e4   : > { %2496 = vst [vmem:[%s4281_s29 + $0xb8] sm:$0xff] %v2877_v30  ;;  %v2424_v32 = vpop.f32.mrb[7].mxu1  ;;  %v2569_v9 = vmul.f32 %v2877_v30, %v2877_v30 }
 0x1e5   : > { %2495 = vst [vmem:[%s4281_s29 + $0xb0] sm:$0xff] %v2424_v32  ;;  %v2527_v35 = vadd.f32 %v2526_v6, %v2424_v32  ;;  %v2568_v41 = vmul.f32 %v2424_v32, %v2424_v32 }
 0x1e7   : > { %v2599_v58 = vadd.f32 %v2598_v52, %v2568_v41  ;;  %v2528_v34 = vadd.f32 %v2877_v30, %v2527_v35 }
 0x1e9   : > { %v2600_v42 = vadd.f32 %v2599_v58, %v2569_v9 }
 0x1f7   : > { %v2880_v4 = vpop.f32.mrb[8].mxu1 }
 0x1f8   : > { %2498 = vst [vmem:[%s4281_s29 + $0xc8] sm:$0xff] %v2880_v4  ;;  %v2434_v44 = vpop.f32.mrb[9].mxu1  ;;  %v2571_v15 = vmul.f32 %v2880_v4, %v2880_v4 }
 0x1f9   : > { %2497 = vst [vmem:[%s4281_s29 + $0xc0] sm:$0xff] %v2434_v44  ;;  %v2529_v27 = vadd.f32 %v2528_v34, %v2434_v44  ;;  %v2570_v36 = vmul.f32 %v2434_v44, %v2434_v44 }
 0x1fb   : > { %v2601_v62 = vadd.f32 %v2600_v42, %v2570_v36  ;;  %v2530_v1 = vadd.f32 %v2880_v4, %v2529_v27 }
 0x1fd   : > { %v2602_v43 = vadd.f32 %v2601_v62, %v2571_v15 }
 0x20b   : > { %v2883_v28 = vpop.f32.mrb[10].mxu1 }
 0x20c   : > { %2500 = vst [vmem:[%s4281_s29 + $0xd8] sm:$0xff] %v2883_v28  ;;  %v2444_v3 = vpop.f32.mrb[11].mxu1  ;;  %v2573_v38 = vmul.f32 %v2883_v28, %v2883_v28 }
 0x20d   : > { %2499 = vst [vmem:[%s4281_s29 + $0xd0] sm:$0xff] %v2444_v3  ;;  %v2531_v60 = vadd.f32 %v2530_v1, %v2444_v3  ;;  %v2572_v46 = vmul.f32 %v2444_v3, %v2444_v3 }
 0x20f   : > { %v2603_v29 = vadd.f32 %v2602_v43, %v2572_v46  ;;  %v2532_v56 = vadd.f32 %v2883_v28, %v2531_v60 }
 0x211   : > { %v2604_v16 = vadd.f32 %v2603_v29, %v2573_v38 }
 0x21f   : > { %v2886_v37 = vpop.f32.mrb[12].mxu1 }
 0x220   : > { %2502 = vst [vmem:[%s4281_s29 + $0xe8] sm:$0xff] %v2886_v37  ;;  %v2454_v39 = vpop.f32.mrb[13].mxu1  ;;  %v2575_v26 = vmul.f32 %v2886_v37, %v2886_v37 }
 0x221   : > { %2501 = vst [vmem:[%s4281_s29 + $0xe0] sm:$0xff] %v2454_v39  ;;  %v2533_v21 = vadd.f32 %v2532_v56, %v2454_v39  ;;  %v2574_v61 = vmul.f32 %v2454_v39, %v2454_v39 }
 0x223   : > { %v2605_v45 = vadd.f32 %v2604_v16, %v2574_v61  ;;  %v2534_v55 = vadd.f32 %v2886_v37, %v2533_v21 }
 0x225   : > { %v2606_v20 = vadd.f32 %v2605_v45, %v2575_v26 }
 0x231   : > { %v2889_v18 = vpop.f32.mrb[14].mxu1 }
 0x232   : > { %2504 = vst [vmem:[%s4281_s29 + $0xf8] sm:$0xff] %v2889_v18  ;;  %v2464_v59 = vpop.f32.mrb[15].mxu1  ;;  %v2577_v8 = vmul.f32 %v2889_v18, %v2889_v18 }
 0x233   : > { %2503 = vst [vmem:[%s4281_s29 + $0xf0] sm:$0xff] %v2464_v59  ;;  %v2535_v5 = vadd.f32 %v2534_v55, %v2464_v59  ;;  %v2576_v19 = vmul.f32 %v2464_v59, %v2464_v59 }
 0x235   : > { %v2536_v51 = vadd.f32 %v2889_v18, %v2535_v5  ;;  %v2607_v10 = vadd.f32 %v2606_v20, %v2576_v19 }
 0x237   : > { %v2537_v57 = vrot.slane %v2536_v51, 4  ;;  %v2608_v2 = vadd.f32 %v2607_v10, %v2577_v8 }
 0x239   : > { %v2538_v24 = vadd.f32 %v2537_v57, %v2536_v51  ;;  %v2609_v50 = vrot.slane %v2608_v2, 4 }
 0x23b   : > { %v2539_v22 = vrot.slane %v2538_v24, 2  ;;  %v2610_v33 = vadd.f32 %v2609_v50, %v2608_v2 }
 0x23d   : > { %v2540_v47 = vadd.f32 %v2539_v22, %v2538_v24  ;;  %v2611_v25 = vrot.slane %v2610_v33, 2 }
 0x23f   : > { %v2541_v11 = vrot.slane %v2540_v47, 1  ;;  %v2612_v31 = vadd.f32 %v2611_v25, %v2610_v33 }
 0x241   : > { %v2542_v49 = vadd.f32 %v2541_v11, %v2540_v47  ;;  %v2613_v53 = vrot.slane %v2612_v31, 1 }
 0x243   : > { %v2614_v40 = vadd.f32 %v2613_v53, %v2612_v31  ;;  %2544 = vst [vmem:[%s319_s11] sm:$0xff] %v2542_v49 }
 0x245   : > { %2616 = vst [vmem:[%s323_s14] sm:$0xff] %v2614_v40 }
 0x246 PF: > { %s18_s26 = sadd.s32 1, %s2992_s26   ;;  %s4686_s24 = smov %s2988_s25 }
 0x247   : > { %p15_p5 = scmp.ge.s32.totalorder %s18_s26, 4   ;;  %s4687_s25 = smov %s4689_s27 }
 0x249   :  { %17 = sbr.rel (!%p15_p5) target bundleno = 2 (0x2), region = 98 }

</bundles_post_ra>
